<compile_context>
chip_gen: v5e
topology: v5e:2x2
jax: 0.10.0
libtpu: 0.0.40
codegen_flags: <defaults>
</compile_context>

<pallas_src>
import jax
import jax.numpy as jnp
from jax.experimental import pallas as pl
from jax.experimental.pallas import tpu as pltpu


LANES = 128  # class-dim padding target for a lane-dense output store


# ----------------------------------------------------------------------------
# Single fused kernel: conv1->relu->pool -> conv2->relu->pool -> fc1->relu->fc2
# Grid: one step per image in the batch.
# ----------------------------------------------------------------------------
def _net_kernel(x_ref, w1_ref, b1_ref, w2_ref, b2_ref,
                fw1_ref, fb1_ref, fw2_ref, fb2_ref,
                out_ref, s1_ref, pad2_ref, s2_ref):
    H = x_ref.shape[1] - 2            # spatial dims (input is pre-padded +1)
    W = x_ref.shape[2] - 2
    CIN = x_ref.shape[3]              # zero-padded input channels (8)
    C1 = w1_ref.shape[2]              # 16
    C2 = w2_ref.shape[2]              # 32
    H2, W2 = H // 2, W // 2
    H4, W4 = H // 4, W // 4

    def conv3x3_relu(load_patch, w_ref, b_ref):
        # 3x3 "same" conv as 9 accumulated (HW, Cin) @ (Cin, Cout) matmuls.
        acc = None
        for kh in range(3):
            for kw in range(3):
                tap = jnp.dot(load_patch(kh, kw), w_ref[kh * 3 + kw],
                              preferred_element_type=jnp.float32)
                acc = tap if acc is None else acc + tap
        return jnp.maximum(acc + b_ref[...], 0.0)

    def maxpool2x2(y, h, w, c, row_scr):
        # y: (h*w, c), row index = r*w + col.
        # Row pairs: leading-dim split (layout no-op) + elementwise max.
        yr = y.reshape(h // 2, 2, w, c)
        row_scr[...] = jnp.maximum(yr[:, 0, :, :], yr[:, 1, :, :])
        # Column pairs: stride-2 loads from the VMEM scratch.
        return jnp.maximum(row_scr[:, pl.ds(0, w // 2, stride=2), :],
                           row_scr[:, pl.ds(1, w // 2, stride=2), :])

    # ---- conv1 -> ReLU -> pool ---------------------------------------------
    y1 = conv3x3_relu(
        lambda kh, kw: x_ref[0, kh:kh + H, kw:kw + W, :].reshape(H * W, CIN),
        w1_ref, b1_ref)                                   # (H*W, C1)
    p1 = maxpool2x2(y1, H, W, C1, s1_ref)                 # (H2, W2, C1)

    # ---- conv2 -> ReLU -> pool  (zero-pad the pooled map inside VMEM) -------
    pad2_ref[...] = jnp.zeros_like(pad2_ref)
    pad2_ref[1:H2 + 1, 1:W2 + 1, :] = p1
    y2 = conv3x3_relu(
        lambda kh, kw: pad2_ref[kh:kh + H2, kw:kw + W2, :].reshape(H2 * W2, C1),
        w2_ref, b2_ref)                                   # (H2*W2, C2)
    p2 = maxpool2x2(y2, H2, W2, C2, s2_ref)               # (H4, W4, C2)

    # ---- fc1 (+ReLU): sum of per-pixel (1, C2) @ (C2, hidden) matmuls -------
    # fw1 rows were permuted on the host to the NHWC (h, w, c) order, so the
    # channel-major flatten transpose is gone.
    hidden = None
    for h in range(H4):
        for w in range(W4):
            t = jnp.dot(p2[h, w:w + 1, :], fw1_ref[h * W4 + w],
                        preferred_element_type=jnp.float32)
            hidden = t if hidden is None else hidden + t
    hidden = jnp.maximum(hidden + fb1_ref[...], 0.0)      # (1, hidden)

    # ---- fc2 (class dim zero-padded to 128 lanes -> dense 128-lane store) ---
    logits = jnp.dot(hidden, fw2_ref[...],
                     preferred_element_type=jnp.float32) + fb2_ref[...]
    out_ref[0] = logits                                   # (1, 128)


# ----------------------------------------------------------------------------
# Wrapper: one-time layout prep + the single fused pallas_call.
# ----------------------------------------------------------------------------
def net_forward(x_nchw, params):
    n, cin, h, w = x_nchw.shape
    assert h % 4 == 0 and w % 4 == 0, "spatial dims must be divisible by 4"
    cin_p = ((cin + 7) // 8) * 8          # pad contraction dim to sublane multiple
    c1 = params["w1"].shape[3]
    c2 = params["w2"].shape[3]
    h4, w4 = h // 4, w // 4
    fhid = params["fw1"].shape[1]
    classes = params["fw2"].shape[1]

    # NCHW -> NHWC, pad spatial (+1 ring for the 3x3 conv) and channels 3->8.
    x = jnp.transpose(x_nchw, (0, 2, 3, 1))
    x = jnp.pad(x, ((0, 0), (1, 1), (1, 1), (0, cin_p - cin)))

    # Conv weights as (tap, cin, cout); conv1 cin zero-padded to match x.
    w1 = jnp.pad(params["w1"], ((0, 0), (0, 0), (0, cin_p - cin), (0, 0)))
    w1 = w1.reshape(9, cin_p, c1)
    w2 = params["w2"].reshape(9, c1, c2)

    # fc1 rows: torch flatten order is (c, h, w); permute once to (h, w, c).
    fw1 = (params["fw1"].reshape(c2, h4, w4, fhid)
           .transpose(1, 2, 0, 3)
           .reshape(h4 * w4, c2, fhid))

    # fc2: pad class dim to 128 lanes (sliced off after the kernel).
    fw2 = jnp.pad(params["fw2"], ((0, 0), (0, LANES - classes)))
    fb2 = jnp.pad(params["fb2"], ((0, 0), (0, LANES - classes)))

    out = pl.pallas_call(
        _net_kernel,
        out_shape=jax.ShapeDtypeStruct((n, 1, LANES), jnp.float32),
        grid_spec=pltpu.PrefetchScalarGridSpec(
            num_scalar_prefetch=0,
            grid=(n,),
            in_specs=[
                pl.BlockSpec((1, h + 2, w + 2, cin_p), lambda b: (b, 0, 0, 0)),
                pl.BlockSpec((9, cin_p, c1), lambda b: (0, 0, 0)),
                pl.BlockSpec((1, c1), lambda b: (0, 0)),
                pl.BlockSpec((9, c1, c2), lambda b: (0, 0, 0)),
                pl.BlockSpec((1, c2), lambda b: (0, 0)),
                pl.BlockSpec((h4 * w4, c2, fhid), lambda b: (0, 0, 0)),
                pl.BlockSpec((1, fhid), lambda b: (0, 0)),
                pl.BlockSpec((fhid, LANES), lambda b: (0, 0)),
                pl.BlockSpec((1, LANES), lambda b: (0, 0)),
            ],
            out_specs=pl.BlockSpec((1, 1, LANES), lambda b: (b, 0, 0)),
            scratch_shapes=[
                pltpu.VMEM((h // 2, w, c1), jnp.float32),              # row-pooled conv1
                pltpu.VMEM((h // 2 + 2, w // 2 + 2, c1), jnp.float32),  # padded conv2 in
                pltpu.VMEM((h // 4, w // 2, c2), jnp.float32),         # row-pooled conv2
            ]),
        compiler_params=pltpu.CompilerParams(
            dimension_semantics=("parallel",)),
    )(x, w1, params["b1"], w2, params["b2"],
      fw1, params["fb1"], fw2, fb2)
    return out[:, 0, :classes]


# ----------------------------------------------------------------------------
# Pure-JAX reference (for correctness check only)
# ----------------------------------------------------------------------------
def reference_forward(x_nchw, params):
    x = jnp.transpose(x_nchw, (0, 2, 3, 1))

    def conv_relu(z, w, b):
        y = jax.lax.conv_general_dilated(
            z, w, (1, 1), "SAME",
            dimension_numbers=("NHWC", "HWIO", "NHWC"))
        return jnp.maximum(y + b.reshape(1, 1, 1, -1), 0.0)

    def pool(z):
        return jax.lax.reduce_window(z, -jnp.inf, jax.lax.max,
                                     (1, 2, 2, 1), (1, 2, 2, 1), "VALID")

    y = pool(conv_relu(x, params["w1"], params["b1"]))
    y = pool(conv_relu(y, params["w2"], params["b2"]))
    n = y.shape[0]
    y = jnp.transpose(y, (0, 3, 1, 2)).reshape(n, -1)     # torch flatten order
    y = jnp.maximum(y @ params["fw1"] + params["fb1"], 0.0)
    return y @ params["fw2"] + params["fb2"]


if __name__ == "__main__":
    # Shapes consistent with Net(input_size=(16, 16), classes_count=10)
    H, W, CLASSES, BATCH = 16, 16, 10, 2
    flat = 32 * (H // 4) * (W // 4)   # 512

    key = jax.random.PRNGKey(0)
    ks = jax.random.split(key, 9)
    params = {
        # conv weights HWIO (kh, kw, cin, cout); biases (1, cout)
        "w1": 0.10 * jax.random.normal(ks[0], (3, 3, 3, 16), jnp.float32),
        "b1": 0.05 * jax.random.normal(ks[1], (1, 16), jnp.float32),
        "w2": 0.10 * jax.random.normal(ks[2], (3, 3, 16, 32), jnp.float32),
        "b2": 0.05 * jax.random.normal(ks[3], (1, 32), jnp.float32),
        # fc weights (in, out); fw1 rows in torch (c-major) flatten order
        "fw1": 0.05 * jax.random.normal(ks[4], (flat, 64), jnp.float32),
        "fb1": 0.05 * jax.random.normal(ks[5], (1, 64), jnp.float32),
        "fw2": 0.05 * jax.random.normal(ks[6], (64, CLASSES), jnp.float32),
        "fb2": 0.05 * jax.random.normal(ks[7], (1, CLASSES), jnp.float32),
    }

    x = jax.random.normal(ks[8], (BATCH, 3, H, W), jnp.float32)  # NCHW input

    fwd = jax.jit(net_forward)
    out = jax.block_until_ready(fwd(x, params))
    assert out.shape == (BATCH, CLASSES), out.shape

    ref = reference_forward(x, params)
    err = jnp.max(jnp.abs(out - ref))
    assert jnp.allclose(out, ref, atol=2e-3, rtol=2e-3), f"max abs err {err}"

    print("KERNEL_OK")
</pallas_src>

<mosaic_0001>
module attributes {stable_mosaic.version = 11 : i64} {
  func.func @_net_kernel(%arg0: i32, %arg1: memref<1x18x18x8xf32, #tpu.memory_space<vmem>>, %arg2: memref<9x8x16xf32, #tpu.memory_space<vmem>>, %arg3: memref<1x16xf32, #tpu.memory_space<vmem>>, %arg4: memref<9x16x32xf32, #tpu.memory_space<vmem>>, %arg5: memref<1x32xf32, #tpu.memory_space<vmem>>, %arg6: memref<16x32x64xf32, #tpu.memory_space<vmem>>, %arg7: memref<1x64xf32, #tpu.memory_space<vmem>>, %arg8: memref<64x128xf32, #tpu.memory_space<vmem>>, %arg9: memref<1x128xf32, #tpu.memory_space<vmem>>, %arg10: memref<1x1x128xf32, #tpu.memory_space<vmem>>, %arg11: memref<8x16x16xf32, #tpu.memory_space<vmem>>, %arg12: memref<10x10x16xf32, #tpu.memory_space<vmem>>, %arg13: memref<4x8x32xf32, #tpu.memory_space<vmem>>) attributes {dimension_semantics = [#tpu.dimension_semantics<parallel>], iteration_bounds = array<i64: 2>, scalar_prefetch = 0 : i64, scratch_operands = 3 : i64, tpu.core_type = #tpu.core_type<tc>, window_params = [{transform_indices = @transform_0, window_bounds = array<i64: 1, 18, 18, 8>}, {pipeline_mode = #tpu.pipeline_mode<synchronous>, transform_indices = @transform_1, window_bounds = array<i64: 9, 8, 16>}, {pipeline_mode = #tpu.pipeline_mode<synchronous>, transform_indices = @transform_2, window_bounds = array<i64: 1, 16>}, {pipeline_mode = #tpu.pipeline_mode<synchronous>, transform_indices = @transform_3, window_bounds = array<i64: 9, 16, 32>}, {pipeline_mode = #tpu.pipeline_mode<synchronous>, transform_indices = @transform_4, window_bounds = array<i64: 1, 32>}, {pipeline_mode = #tpu.pipeline_mode<synchronous>, transform_indices = @transform_5, window_bounds = array<i64: 16, 32, 64>}, {pipeline_mode = #tpu.pipeline_mode<synchronous>, transform_indices = @transform_6, window_bounds = array<i64: 1, 64>}, {pipeline_mode = #tpu.pipeline_mode<synchronous>, transform_indices = @transform_7, window_bounds = array<i64: 64, 128>}, {pipeline_mode = #tpu.pipeline_mode<synchronous>, transform_indices = @transform_8, window_bounds = array<i64: 1, 128>}, {transform_indices = @transform_9, window_bounds = array<i64: 1, 1, 128>}]} {
    %c0 = arith.constant 0 : index
    %c0_0 = arith.constant 0 : index
    %c0_1 = arith.constant 0 : index
    %c0_2 = arith.constant 0 : index
    %0 = vector.load %arg1[%c0, %c0_0, %c0_1, %c0_2] : memref<1x18x18x8xf32, #tpu.memory_space<vmem>>, vector<1x16x16x8xf32>
    %1 = vector.shape_cast %0 : vector<1x16x16x8xf32> to vector<16x16x8xf32>
    %2 = vector.shape_cast %1 : vector<16x16x8xf32> to vector<256x8xf32>
    %c0_3 = arith.constant 0 : index
    %c0_4 = arith.constant 0 : index
    %c0_5 = arith.constant 0 : index
    %3 = vector.load %arg2[%c0_3, %c0_4, %c0_5] : memref<9x8x16xf32, #tpu.memory_space<vmem>>, vector<1x8x16xf32>
    %4 = vector.shape_cast %3 : vector<1x8x16xf32> to vector<8x16xf32>
    %cst = arith.constant dense<0.000000e+00> : vector<256x16xf32>
    %5 = tpu.matmul %2, %4, %cst {dimension_numbers = #tpu.dot_dimension_numbers<[1], [0], [0], [1], [0, 0, 1, 1], [], []>} : vector<256x8xf32>, vector<8x16xf32>, vector<256x16xf32> -> vector<256x16xf32>
    %c0_6 = arith.constant 0 : index
    %c0_7 = arith.constant 0 : index
    %c1 = arith.constant 1 : index
    %c0_8 = arith.constant 0 : index
    %6 = vector.load %arg1[%c0_6, %c0_7, %c1, %c0_8] : memref<1x18x18x8xf32, #tpu.memory_space<vmem>>, vector<1x16x16x8xf32>
    %7 = vector.shape_cast %6 : vector<1x16x16x8xf32> to vector<16x16x8xf32>
    %8 = vector.shape_cast %7 : vector<16x16x8xf32> to vector<256x8xf32>
    %c1_9 = arith.constant 1 : index
    %c0_10 = arith.constant 0 : index
    %c0_11 = arith.constant 0 : index
    %9 = vector.load %arg2[%c1_9, %c0_10, %c0_11] : memref<9x8x16xf32, #tpu.memory_space<vmem>>, vector<1x8x16xf32>
    %10 = vector.shape_cast %9 : vector<1x8x16xf32> to vector<8x16xf32>
    %cst_12 = arith.constant dense<0.000000e+00> : vector<256x16xf32>
    %11 = tpu.matmul %8, %10, %cst_12 {dimension_numbers = #tpu.dot_dimension_numbers<[1], [0], [0], [1], [0, 0, 1, 1], [], []>} : vector<256x8xf32>, vector<8x16xf32>, vector<256x16xf32> -> vector<256x16xf32>
    %12 = arith.addf %5, %11 : vector<256x16xf32>
    %c0_13 = arith.constant 0 : index
    %c0_14 = arith.constant 0 : index
    %c2 = arith.constant 2 : index
    %c0_15 = arith.constant 0 : index
    %13 = vector.load %arg1[%c0_13, %c0_14, %c2, %c0_15] : memref<1x18x18x8xf32, #tpu.memory_space<vmem>>, vector<1x16x16x8xf32>
    %14 = vector.shape_cast %13 : vector<1x16x16x8xf32> to vector<16x16x8xf32>
    %15 = vector.shape_cast %14 : vector<16x16x8xf32> to vector<256x8xf32>
    %c2_16 = arith.constant 2 : index
    %c0_17 = arith.constant 0 : index
    %c0_18 = arith.constant 0 : index
    %16 = vector.load %arg2[%c2_16, %c0_17, %c0_18] : memref<9x8x16xf32, #tpu.memory_space<vmem>>, vector<1x8x16xf32>
    %17 = vector.shape_cast %16 : vector<1x8x16xf32> to vector<8x16xf32>
    %cst_19 = arith.constant dense<0.000000e+00> : vector<256x16xf32>
    %18 = tpu.matmul %15, %17, %cst_19 {dimension_numbers = #tpu.dot_dimension_numbers<[1], [0], [0], [1], [0, 0, 1, 1], [], []>} : vector<256x8xf32>, vector<8x16xf32>, vector<256x16xf32> -> vector<256x16xf32>
    %19 = arith.addf %12, %18 : vector<256x16xf32>
    %c0_20 = arith.constant 0 : index
    %c1_21 = arith.constant 1 : index
    %c0_22 = arith.constant 0 : index
    %c0_23 = arith.constant 0 : index
    %20 = vector.load %arg1[%c0_20, %c1_21, %c0_22, %c0_23] : memref<1x18x18x8xf32, #tpu.memory_space<vmem>>, vector<1x16x16x8xf32>
    %21 = vector.shape_cast %20 : vector<1x16x16x8xf32> to vector<16x16x8xf32>
    %22 = vector.shape_cast %21 : vector<16x16x8xf32> to vector<256x8xf32>
    %c3 = arith.constant 3 : index
    %c0_24 = arith.constant 0 : index
    %c0_25 = arith.constant 0 : index
    %23 = vector.load %arg2[%c3, %c0_24, %c0_25] : memref<9x8x16xf32, #tpu.memory_space<vmem>>, vector<1x8x16xf32>
    %24 = vector.shape_cast %23 : vector<1x8x16xf32> to vector<8x16xf32>
    %cst_26 = arith.constant dense<0.000000e+00> : vector<256x16xf32>
    %25 = tpu.matmul %22, %24, %cst_26 {dimension_numbers = #tpu.dot_dimension_numbers<[1], [0], [0], [1], [0, 0, 1, 1], [], []>} : vector<256x8xf32>, vector<8x16xf32>, vector<256x16xf32> -> vector<256x16xf32>
    %26 = arith.addf %19, %25 : vector<256x16xf32>
    %c0_27 = arith.constant 0 : index
    %c1_28 = arith.constant 1 : index
    %c1_29 = arith.constant 1 : index
    %c0_30 = arith.constant 0 : index
    %27 = vector.load %arg1[%c0_27, %c1_28, %c1_29, %c0_30] : memref<1x18x18x8xf32, #tpu.memory_space<vmem>>, vector<1x16x16x8xf32>
    %28 = vector.shape_cast %27 : vector<1x16x16x8xf32> to vector<16x16x8xf32>
    %29 = vector.shape_cast %28 : vector<16x16x8xf32> to vector<256x8xf32>
    %c4 = arith.constant 4 : index
    %c0_31 = arith.constant 0 : index
    %c0_32 = arith.constant 0 : index
    %30 = vector.load %arg2[%c4, %c0_31, %c0_32] : memref<9x8x16xf32, #tpu.memory_space<vmem>>, vector<1x8x16xf32>
    %31 = vector.shape_cast %30 : vector<1x8x16xf32> to vector<8x16xf32>
    %cst_33 = arith.constant dense<0.000000e+00> : vector<256x16xf32>
    %32 = tpu.matmul %29, %31, %cst_33 {dimension_numbers = #tpu.dot_dimension_numbers<[1], [0], [0], [1], [0, 0, 1, 1], [], []>} : vector<256x8xf32>, vector<8x16xf32>, vector<256x16xf32> -> vector<256x16xf32>
    %33 = arith.addf %26, %32 : vector<256x16xf32>
    %c0_34 = arith.constant 0 : index
    %c1_35 = arith.constant 1 : index
    %c2_36 = arith.constant 2 : index
    %c0_37 = arith.constant 0 : index
    %34 = vector.load %arg1[%c0_34, %c1_35, %c2_36, %c0_37] : memref<1x18x18x8xf32, #tpu.memory_space<vmem>>, vector<1x16x16x8xf32>
    %35 = vector.shape_cast %34 : vector<1x16x16x8xf32> to vector<16x16x8xf32>
    %36 = vector.shape_cast %35 : vector<16x16x8xf32> to vector<256x8xf32>
    %c5 = arith.constant 5 : index
    %c0_38 = arith.constant 0 : index
    %c0_39 = arith.constant 0 : index
    %37 = vector.load %arg2[%c5, %c0_38, %c0_39] : memref<9x8x16xf32, #tpu.memory_space<vmem>>, vector<1x8x16xf32>
    %38 = vector.shape_cast %37 : vector<1x8x16xf32> to vector<8x16xf32>
    %cst_40 = arith.constant dense<0.000000e+00> : vector<256x16xf32>
    %39 = tpu.matmul %36, %38, %cst_40 {dimension_numbers = #tpu.dot_dimension_numbers<[1], [0], [0], [1], [0, 0, 1, 1], [], []>} : vector<256x8xf32>, vector<8x16xf32>, vector<256x16xf32> -> vector<256x16xf32>
    %40 = arith.addf %33, %39 : vector<256x16xf32>
    %c0_41 = arith.constant 0 : index
    %c2_42 = arith.constant 2 : index
    %c0_43 = arith.constant 0 : index
    %c0_44 = arith.constant 0 : index
    %41 = vector.load %arg1[%c0_41, %c2_42, %c0_43, %c0_44] : memref<1x18x18x8xf32, #tpu.memory_space<vmem>>, vector<1x16x16x8xf32>
    %42 = vector.shape_cast %41 : vector<1x16x16x8xf32> to vector<16x16x8xf32>
    %43 = vector.shape_cast %42 : vector<16x16x8xf32> to vector<256x8xf32>
    %c6 = arith.constant 6 : index
    %c0_45 = arith.constant 0 : index
    %c0_46 = arith.constant 0 : index
    %44 = vector.load %arg2[%c6, %c0_45, %c0_46] : memref<9x8x16xf32, #tpu.memory_space<vmem>>, vector<1x8x16xf32>
    %45 = vector.shape_cast %44 : vector<1x8x16xf32> to vector<8x16xf32>
    %cst_47 = arith.constant dense<0.000000e+00> : vector<256x16xf32>
    %46 = tpu.matmul %43, %45, %cst_47 {dimension_numbers = #tpu.dot_dimension_numbers<[1], [0], [0], [1], [0, 0, 1, 1], [], []>} : vector<256x8xf32>, vector<8x16xf32>, vector<256x16xf32> -> vector<256x16xf32>
    %47 = arith.addf %40, %46 : vector<256x16xf32>
    %c0_48 = arith.constant 0 : index
    %c2_49 = arith.constant 2 : index
    %c1_50 = arith.constant 1 : index
    %c0_51 = arith.constant 0 : index
    %48 = vector.load %arg1[%c0_48, %c2_49, %c1_50, %c0_51] : memref<1x18x18x8xf32, #tpu.memory_space<vmem>>, vector<1x16x16x8xf32>
    %49 = vector.shape_cast %48 : vector<1x16x16x8xf32> to vector<16x16x8xf32>
    %50 = vector.shape_cast %49 : vector<16x16x8xf32> to vector<256x8xf32>
    %c7 = arith.constant 7 : index
    %c0_52 = arith.constant 0 : index
    %c0_53 = arith.constant 0 : index
    %51 = vector.load %arg2[%c7, %c0_52, %c0_53] : memref<9x8x16xf32, #tpu.memory_space<vmem>>, vector<1x8x16xf32>
    %52 = vector.shape_cast %51 : vector<1x8x16xf32> to vector<8x16xf32>
    %cst_54 = arith.constant dense<0.000000e+00> : vector<256x16xf32>
    %53 = tpu.matmul %50, %52, %cst_54 {dimension_numbers = #tpu.dot_dimension_numbers<[1], [0], [0], [1], [0, 0, 1, 1], [], []>} : vector<256x8xf32>, vector<8x16xf32>, vector<256x16xf32> -> vector<256x16xf32>
    %54 = arith.addf %47, %53 : vector<256x16xf32>
    %c0_55 = arith.constant 0 : index
    %c2_56 = arith.constant 2 : index
    %c2_57 = arith.constant 2 : index
    %c0_58 = arith.constant 0 : index
    %55 = vector.load %arg1[%c0_55, %c2_56, %c2_57, %c0_58] : memref<1x18x18x8xf32, #tpu.memory_space<vmem>>, vector<1x16x16x8xf32>
    %56 = vector.shape_cast %55 : vector<1x16x16x8xf32> to vector<16x16x8xf32>
    %57 = vector.shape_cast %56 : vector<16x16x8xf32> to vector<256x8xf32>
    %c8 = arith.constant 8 : index
    %c0_59 = arith.constant 0 : index
    %c0_60 = arith.constant 0 : index
    %58 = vector.load %arg2[%c8, %c0_59, %c0_60] : memref<9x8x16xf32, #tpu.memory_space<vmem>>, vector<1x8x16xf32>
    %59 = vector.shape_cast %58 : vector<1x8x16xf32> to vector<8x16xf32>
    %cst_61 = arith.constant dense<0.000000e+00> : vector<256x16xf32>
    %60 = tpu.matmul %57, %59, %cst_61 {dimension_numbers = #tpu.dot_dimension_numbers<[1], [0], [0], [1], [0, 0, 1, 1], [], []>} : vector<256x8xf32>, vector<8x16xf32>, vector<256x16xf32> -> vector<256x16xf32>
    %61 = arith.addf %54, %60 : vector<256x16xf32>
    %c0_62 = arith.constant 0 : index
    %c0_63 = arith.constant 0 : index
    %62 = vector.load %arg3[%c0_62, %c0_63] : memref<1x16xf32, #tpu.memory_space<vmem>>, vector<1x16xf32>
    %63 = vector.broadcast %62 : vector<1x16xf32> to vector<256x16xf32>
    %64 = arith.addf %61, %63 : vector<256x16xf32>
    %cst_64 = arith.constant 0.000000e+00 : f32
    %65 = vector.broadcast %cst_64 : f32 to vector<256x16xf32>
    %66 = arith.maximumf %64, %65 : vector<256x16xf32>
    %67 = vector.shape_cast %66 : vector<256x16xf32> to vector<8x2x16x16xf32>
    %68 = vector.extract_strided_slice %67 {offsets = [0, 0, 0, 0], sizes = [8, 1, 16, 16], strides = [1, 1, 1, 1]} : vector<8x2x16x16xf32> to vector<8x1x16x16xf32>
    %69 = vector.shape_cast %68 : vector<8x1x16x16xf32> to vector<8x16x16xf32>
    %70 = vector.extract_strided_slice %67 {offsets = [0, 1, 0, 0], sizes = [8, 1, 16, 16], strides = [1, 1, 1, 1]} : vector<8x2x16x16xf32> to vector<8x1x16x16xf32>
    %71 = vector.shape_cast %70 : vector<8x1x16x16xf32> to vector<8x16x16xf32>
    %72 = arith.maximumf %69, %71 : vector<8x16x16xf32>
    %c0_65 = arith.constant 0 : index
    %c0_66 = arith.constant 0 : index
    %c0_67 = arith.constant 0 : index
    %73 = vector.load %arg11[%c0_65, %c0_66, %c0_67] : memref<8x16x16xf32, #tpu.memory_space<vmem>>, vector<8x16x16xf32>
    tpu.vector_store %arg11[%c0_65, %c0_66, %c0_67], %72 {strides = array<i32>} : memref<8x16x16xf32, #tpu.memory_space<vmem>>, vector<8x16x16xf32>,
    %c0_68 = arith.constant 0 : index
    %c0_69 = arith.constant 0 : index
    %c0_70 = arith.constant 0 : index
    %74 = tpu.strided_load %arg11[%c0_68, %c0_69, %c0_70] {strides = array<i32: 1, 2, 1>} : memref<8x16x16xf32, #tpu.memory_space<vmem>>, vector<8x8x16xf32>
    %c0_71 = arith.constant 0 : index
    %c1_72 = arith.constant 1 : index
    %c0_73 = arith.constant 0 : index
    %75 = tpu.strided_load %arg11[%c0_71, %c1_72, %c0_73] {strides = array<i32: 1, 2, 1>} : memref<8x16x16xf32, #tpu.memory_space<vmem>>, vector<8x8x16xf32>
    %76 = arith.maximumf %74, %75 : vector<8x8x16xf32>
    %cst_74 = arith.constant 0.000000e+00 : f32
    %77 = vector.broadcast %cst_74 : f32 to vector<10x10x16xf32>
    %c0_75 = arith.constant 0 : index
    %c0_76 = arith.constant 0 : index
    %c0_77 = arith.constant 0 : index
    %78 = vector.load %arg12[%c0_75, %c0_76, %c0_77] : memref<10x10x16xf32, #tpu.memory_space<vmem>>, vector<10x10x16xf32>
    tpu.vector_store %arg12[%c0_75, %c0_76, %c0_77], %77 {strides = array<i32>} : memref<10x10x16xf32, #tpu.memory_space<vmem>>, vector<10x10x16xf32>,
    %c1_78 = arith.constant 1 : index
    %c1_79 = arith.constant 1 : index
    %c0_80 = arith.constant 0 : index
    %79 = vector.load %arg12[%c1_78, %c1_79, %c0_80] : memref<10x10x16xf32, #tpu.memory_space<vmem>>, vector<8x8x16xf32>
    tpu.vector_store %arg12[%c1_78, %c1_79, %c0_80], %76 {strides = array<i32>} : memref<10x10x16xf32, #tpu.memory_space<vmem>>, vector<8x8x16xf32>,
    %c0_81 = arith.constant 0 : index
    %c0_82 = arith.constant 0 : index
    %c0_83 = arith.constant 0 : index
    %80 = vector.load %arg12[%c0_81, %c0_82, %c0_83] : memref<10x10x16xf32, #tpu.memory_space<vmem>>, vector<8x8x16xf32>
    %81 = vector.shape_cast %80 : vector<8x8x16xf32> to vector<64x16xf32>
    %c0_84 = arith.constant 0 : index
    %c0_85 = arith.constant 0 : index
    %c0_86 = arith.constant 0 : index
    %82 = vector.load %arg4[%c0_84, %c0_85, %c0_86] : memref<9x16x32xf32, #tpu.memory_space<vmem>>, vector<1x16x32xf32>
    %83 = vector.shape_cast %82 : vector<1x16x32xf32> to vector<16x32xf32>
    %cst_87 = arith.constant dense<0.000000e+00> : vector<64x32xf32>
    %84 = tpu.matmul %81, %83, %cst_87 {dimension_numbers = #tpu.dot_dimension_numbers<[1], [0], [0], [1], [0, 0, 1, 1], [], []>} : vector<64x16xf32>, vector<16x32xf32>, vector<64x32xf32> -> vector<64x32xf32>
    %c0_88 = arith.constant 0 : index
    %c1_89 = arith.constant 1 : index
    %c0_90 = arith.constant 0 : index
    %85 = vector.load %arg12[%c0_88, %c1_89, %c0_90] : memref<10x10x16xf32, #tpu.memory_space<vmem>>, vector<8x8x16xf32>
    %86 = vector.shape_cast %85 : vector<8x8x16xf32> to vector<64x16xf32>
    %c1_91 = arith.constant 1 : index
    %c0_92 = arith.constant 0 : index
    %c0_93 = arith.constant 0 : index
    %87 = vector.load %arg4[%c1_91, %c0_92, %c0_93] : memref<9x16x32xf32, #tpu.memory_space<vmem>>, vector<1x16x32xf32>
    %88 = vector.shape_cast %87 : vector<1x16x32xf32> to vector<16x32xf32>
    %cst_94 = arith.constant dense<0.000000e+00> : vector<64x32xf32>
    %89 = tpu.matmul %86, %88, %cst_94 {dimension_numbers = #tpu.dot_dimension_numbers<[1], [0], [0], [1], [0, 0, 1, 1], [], []>} : vector<64x16xf32>, vector<16x32xf32>, vector<64x32xf32> -> vector<64x32xf32>
    %90 = arith.addf %84, %89 : vector<64x32xf32>
    %c0_95 = arith.constant 0 : index
    %c2_96 = arith.constant 2 : index
    %c0_97 = arith.constant 0 : index
    %91 = vector.load %arg12[%c0_95, %c2_96, %c0_97] : memref<10x10x16xf32, #tpu.memory_space<vmem>>, vector<8x8x16xf32>
    %92 = vector.shape_cast %91 : vector<8x8x16xf32> to vector<64x16xf32>
    %c2_98 = arith.constant 2 : index
    %c0_99 = arith.constant 0 : index
    %c0_100 = arith.constant 0 : index
    %93 = vector.load %arg4[%c2_98, %c0_99, %c0_100] : memref<9x16x32xf32, #tpu.memory_space<vmem>>, vector<1x16x32xf32>
    %94 = vector.shape_cast %93 : vector<1x16x32xf32> to vector<16x32xf32>
    %cst_101 = arith.constant dense<0.000000e+00> : vector<64x32xf32>
    %95 = tpu.matmul %92, %94, %cst_101 {dimension_numbers = #tpu.dot_dimension_numbers<[1], [0], [0], [1], [0, 0, 1, 1], [], []>} : vector<64x16xf32>, vector<16x32xf32>, vector<64x32xf32> -> vector<64x32xf32>
    %96 = arith.addf %90, %95 : vector<64x32xf32>
    %c1_102 = arith.constant 1 : index
    %c0_103 = arith.constant 0 : index
    %c0_104 = arith.constant 0 : index
    %97 = vector.load %arg12[%c1_102, %c0_103, %c0_104] : memref<10x10x16xf32, #tpu.memory_space<vmem>>, vector<8x8x16xf32>
    %98 = vector.shape_cast %97 : vector<8x8x16xf32> to vector<64x16xf32>
    %c3_105 = arith.constant 3 : index
    %c0_106 = arith.constant 0 : index
    %c0_107 = arith.constant 0 : index
    %99 = vector.load %arg4[%c3_105, %c0_106, %c0_107] : memref<9x16x32xf32, #tpu.memory_space<vmem>>, vector<1x16x32xf32>
    %100 = vector.shape_cast %99 : vector<1x16x32xf32> to vector<16x32xf32>
    %cst_108 = arith.constant dense<0.000000e+00> : vector<64x32xf32>
    %101 = tpu.matmul %98, %100, %cst_108 {dimension_numbers = #tpu.dot_dimension_numbers<[1], [0], [0], [1], [0, 0, 1, 1], [], []>} : vector<64x16xf32>, vector<16x32xf32>, vector<64x32xf32> -> vector<64x32xf32>
    %102 = arith.addf %96, %101 : vector<64x32xf32>
    %c1_109 = arith.constant 1 : index
    %c1_110 = arith.constant 1 : index
    %c0_111 = arith.constant 0 : index
    %103 = vector.load %arg12[%c1_109, %c1_110, %c0_111] : memref<10x10x16xf32, #tpu.memory_space<vmem>>, vector<8x8x16xf32>
    %104 = vector.shape_cast %103 : vector<8x8x16xf32> to vector<64x16xf32>
    %c4_112 = arith.constant 4 : index
    %c0_113 = arith.constant 0 : index
    %c0_114 = arith.constant 0 : index
    %105 = vector.load %arg4[%c4_112, %c0_113, %c0_114] : memref<9x16x32xf32, #tpu.memory_space<vmem>>, vector<1x16x32xf32>
    %106 = vector.shape_cast %105 : vector<1x16x32xf32> to vector<16x32xf32>
    %cst_115 = arith.constant dense<0.000000e+00> : vector<64x32xf32>
    %107 = tpu.matmul %104, %106, %cst_115 {dimension_numbers = #tpu.dot_dimension_numbers<[1], [0], [0], [1], [0, 0, 1, 1], [], []>} : vector<64x16xf32>, vector<16x32xf32>, vector<64x32xf32> -> vector<64x32xf32>
    %108 = arith.addf %102, %107 : vector<64x32xf32>
    %c1_116 = arith.constant 1 : index
    %c2_117 = arith.constant 2 : index
    %c0_118 = arith.constant 0 : index
    %109 = vector.load %arg12[%c1_116, %c2_117, %c0_118] : memref<10x10x16xf32, #tpu.memory_space<vmem>>, vector<8x8x16xf32>
    %110 = vector.shape_cast %109 : vector<8x8x16xf32> to vector<64x16xf32>
    %c5_119 = arith.constant 5 : index
    %c0_120 = arith.constant 0 : index
    %c0_121 = arith.constant 0 : index
    %111 = vector.load %arg4[%c5_119, %c0_120, %c0_121] : memref<9x16x32xf32, #tpu.memory_space<vmem>>, vector<1x16x32xf32>
    %112 = vector.shape_cast %111 : vector<1x16x32xf32> to vector<16x32xf32>
    %cst_122 = arith.constant dense<0.000000e+00> : vector<64x32xf32>
    %113 = tpu.matmul %110, %112, %cst_122 {dimension_numbers = #tpu.dot_dimension_numbers<[1], [0], [0], [1], [0, 0, 1, 1], [], []>} : vector<64x16xf32>, vector<16x32xf32>, vector<64x32xf32> -> vector<64x32xf32>
    %114 = arith.addf %108, %113 : vector<64x32xf32>
    %c2_123 = arith.constant 2 : index
    %c0_124 = arith.constant 0 : index
    %c0_125 = arith.constant 0 : index
    %115 = vector.load %arg12[%c2_123, %c0_124, %c0_125] : memref<10x10x16xf32, #tpu.memory_space<vmem>>, vector<8x8x16xf32>
    %116 = vector.shape_cast %115 : vector<8x8x16xf32> to vector<64x16xf32>
    %c6_126 = arith.constant 6 : index
    %c0_127 = arith.constant 0 : index
    %c0_128 = arith.constant 0 : index
    %117 = vector.load %arg4[%c6_126, %c0_127, %c0_128] : memref<9x16x32xf32, #tpu.memory_space<vmem>>, vector<1x16x32xf32>
    %118 = vector.shape_cast %117 : vector<1x16x32xf32> to vector<16x32xf32>
    %cst_129 = arith.constant dense<0.000000e+00> : vector<64x32xf32>
    %119 = tpu.matmul %116, %118, %cst_129 {dimension_numbers = #tpu.dot_dimension_numbers<[1], [0], [0], [1], [0, 0, 1, 1], [], []>} : vector<64x16xf32>, vector<16x32xf32>, vector<64x32xf32> -> vector<64x32xf32>
    %120 = arith.addf %114, %119 : vector<64x32xf32>
    %c2_130 = arith.constant 2 : index
    %c1_131 = arith.constant 1 : index
    %c0_132 = arith.constant 0 : index
    %121 = vector.load %arg12[%c2_130, %c1_131, %c0_132] : memref<10x10x16xf32, #tpu.memory_space<vmem>>, vector<8x8x16xf32>
    %122 = vector.shape_cast %121 : vector<8x8x16xf32> to vector<64x16xf32>
    %c7_133 = arith.constant 7 : index
    %c0_134 = arith.constant 0 : index
    %c0_135 = arith.constant 0 : index
    %123 = vector.load %arg4[%c7_133, %c0_134, %c0_135] : memref<9x16x32xf32, #tpu.memory_space<vmem>>, vector<1x16x32xf32>
    %124 = vector.shape_cast %123 : vector<1x16x32xf32> to vector<16x32xf32>
    %cst_136 = arith.constant dense<0.000000e+00> : vector<64x32xf32>
    %125 = tpu.matmul %122, %124, %cst_136 {dimension_numbers = #tpu.dot_dimension_numbers<[1], [0], [0], [1], [0, 0, 1, 1], [], []>} : vector<64x16xf32>, vector<16x32xf32>, vector<64x32xf32> -> vector<64x32xf32>
    %126 = arith.addf %120, %125 : vector<64x32xf32>
    %c2_137 = arith.constant 2 : index
    %c2_138 = arith.constant 2 : index
    %c0_139 = arith.constant 0 : index
    %127 = vector.load %arg12[%c2_137, %c2_138, %c0_139] : memref<10x10x16xf32, #tpu.memory_space<vmem>>, vector<8x8x16xf32>
    %128 = vector.shape_cast %127 : vector<8x8x16xf32> to vector<64x16xf32>
    %c8_140 = arith.constant 8 : index
    %c0_141 = arith.constant 0 : index
    %c0_142 = arith.constant 0 : index
    %129 = vector.load %arg4[%c8_140, %c0_141, %c0_142] : memref<9x16x32xf32, #tpu.memory_space<vmem>>, vector<1x16x32xf32>
    %130 = vector.shape_cast %129 : vector<1x16x32xf32> to vector<16x32xf32>
    %cst_143 = arith.constant dense<0.000000e+00> : vector<64x32xf32>
    %131 = tpu.matmul %128, %130, %cst_143 {dimension_numbers = #tpu.dot_dimension_numbers<[1], [0], [0], [1], [0, 0, 1, 1], [], []>} : vector<64x16xf32>, vector<16x32xf32>, vector<64x32xf32> -> vector<64x32xf32>
    %132 = arith.addf %126, %131 : vector<64x32xf32>
    %c0_144 = arith.constant 0 : index
    %c0_145 = arith.constant 0 : index
    %133 = vector.load %arg5[%c0_144, %c0_145] : memref<1x32xf32, #tpu.memory_space<vmem>>, vector<1x32xf32>
    %134 = vector.broadcast %133 : vector<1x32xf32> to vector<64x32xf32>
    %135 = arith.addf %132, %134 : vector<64x32xf32>
    %cst_146 = arith.constant 0.000000e+00 : f32
    %136 = vector.broadcast %cst_146 : f32 to vector<64x32xf32>
    %137 = arith.maximumf %135, %136 : vector<64x32xf32>
    %138 = vector.shape_cast %137 : vector<64x32xf32> to vector<4x2x8x32xf32>
    %139 = vector.extract_strided_slice %138 {offsets = [0, 0, 0, 0], sizes = [4, 1, 8, 32], strides = [1, 1, 1, 1]} : vector<4x2x8x32xf32> to vector<4x1x8x32xf32>
    %140 = vector.shape_cast %139 : vector<4x1x8x32xf32> to vector<4x8x32xf32>
    %141 = vector.extract_strided_slice %138 {offsets = [0, 1, 0, 0], sizes = [4, 1, 8, 32], strides = [1, 1, 1, 1]} : vector<4x2x8x32xf32> to vector<4x1x8x32xf32>
    %142 = vector.shape_cast %141 : vector<4x1x8x32xf32> to vector<4x8x32xf32>
    %143 = arith.maximumf %140, %142 : vector<4x8x32xf32>
    %c0_147 = arith.constant 0 : index
    %c0_148 = arith.constant 0 : index
    %c0_149 = arith.constant 0 : index
    %144 = vector.load %arg13[%c0_147, %c0_148, %c0_149] : memref<4x8x32xf32, #tpu.memory_space<vmem>>, vector<4x8x32xf32>
    tpu.vector_store %arg13[%c0_147, %c0_148, %c0_149], %143 {strides = array<i32>} : memref<4x8x32xf32, #tpu.memory_space<vmem>>, vector<4x8x32xf32>,
    %c0_150 = arith.constant 0 : index
    %c0_151 = arith.constant 0 : index
    %c0_152 = arith.constant 0 : index
    %145 = tpu.strided_load %arg13[%c0_150, %c0_151, %c0_152] {strides = array<i32: 1, 2, 1>} : memref<4x8x32xf32, #tpu.memory_space<vmem>>, vector<4x4x32xf32>
    %c0_153 = arith.constant 0 : index
    %c1_154 = arith.constant 1 : index
    %c0_155 = arith.constant 0 : index
    %146 = tpu.strided_load %arg13[%c0_153, %c1_154, %c0_155] {strides = array<i32: 1, 2, 1>} : memref<4x8x32xf32, #tpu.memory_space<vmem>>, vector<4x4x32xf32>
    %147 = arith.maximumf %145, %146 : vector<4x4x32xf32>
    %148 = vector.extract_strided_slice %147 {offsets = [0, 0, 0], sizes = [1, 1, 32], strides = [1, 1, 1]} : vector<4x4x32xf32> to vector<1x1x32xf32>
    %149 = vector.shape_cast %148 : vector<1x1x32xf32> to vector<1x32xf32>
    %c0_156 = arith.constant 0 : index
    %c0_157 = arith.constant 0 : index
    %c0_158 = arith.constant 0 : index
    %150 = vector.load %arg6[%c0_156, %c0_157, %c0_158] : memref<16x32x64xf32, #tpu.memory_space<vmem>>, vector<1x32x64xf32>
    %151 = vector.shape_cast %150 : vector<1x32x64xf32> to vector<32x64xf32>
    %cst_159 = arith.constant dense<0.000000e+00> : vector<1x64xf32>
    %152 = tpu.matmul %149, %151, %cst_159 {dimension_numbers = #tpu.dot_dimension_numbers<[1], [0], [0], [1], [0, 0, 1, 1], [], []>} : vector<1x32xf32>, vector<32x64xf32>, vector<1x64xf32> -> vector<1x64xf32>
    %153 = vector.extract_strided_slice %147 {offsets = [0, 1, 0], sizes = [1, 1, 32], strides = [1, 1, 1]} : vector<4x4x32xf32> to vector<1x1x32xf32>
    %154 = vector.shape_cast %153 : vector<1x1x32xf32> to vector<1x32xf32>
    %c1_160 = arith.constant 1 : index
    %c0_161 = arith.constant 0 : index
    %c0_162 = arith.constant 0 : index
    %155 = vector.load %arg6[%c1_160, %c0_161, %c0_162] : memref<16x32x64xf32, #tpu.memory_space<vmem>>, vector<1x32x64xf32>
    %156 = vector.shape_cast %155 : vector<1x32x64xf32> to vector<32x64xf32>
    %cst_163 = arith.constant dense<0.000000e+00> : vector<1x64xf32>
    %157 = tpu.matmul %154, %156, %cst_163 {dimension_numbers = #tpu.dot_dimension_numbers<[1], [0], [0], [1], [0, 0, 1, 1], [], []>} : vector<1x32xf32>, vector<32x64xf32>, vector<1x64xf32> -> vector<1x64xf32>
    %158 = arith.addf %152, %157 : vector<1x64xf32>
    %159 = vector.extract_strided_slice %147 {offsets = [0, 2, 0], sizes = [1, 1, 32], strides = [1, 1, 1]} : vector<4x4x32xf32> to vector<1x1x32xf32>
    %160 = vector.shape_cast %159 : vector<1x1x32xf32> to vector<1x32xf32>
    %c2_164 = arith.constant 2 : index
    %c0_165 = arith.constant 0 : index
    %c0_166 = arith.constant 0 : index
    %161 = vector.load %arg6[%c2_164, %c0_165, %c0_166] : memref<16x32x64xf32, #tpu.memory_space<vmem>>, vector<1x32x64xf32>
    %162 = vector.shape_cast %161 : vector<1x32x64xf32> to vector<32x64xf32>
    %cst_167 = arith.constant dense<0.000000e+00> : vector<1x64xf32>
    %163 = tpu.matmul %160, %162, %cst_167 {dimension_numbers = #tpu.dot_dimension_numbers<[1], [0], [0], [1], [0, 0, 1, 1], [], []>} : vector<1x32xf32>, vector<32x64xf32>, vector<1x64xf32> -> vector<1x64xf32>
    %164 = arith.addf %158, %163 : vector<1x64xf32>
    %165 = vector.extract_strided_slice %147 {offsets = [0, 3, 0], sizes = [1, 1, 32], strides = [1, 1, 1]} : vector<4x4x32xf32> to vector<1x1x32xf32>
    %166 = vector.shape_cast %165 : vector<1x1x32xf32> to vector<1x32xf32>
    %c3_168 = arith.constant 3 : index
    %c0_169 = arith.constant 0 : index
    %c0_170 = arith.constant 0 : index
    %167 = vector.load %arg6[%c3_168, %c0_169, %c0_170] : memref<16x32x64xf32, #tpu.memory_space<vmem>>, vector<1x32x64xf32>
    %168 = vector.shape_cast %167 : vector<1x32x64xf32> to vector<32x64xf32>
    %cst_171 = arith.constant dense<0.000000e+00> : vector<1x64xf32>
    %169 = tpu.matmul %166, %168, %cst_171 {dimension_numbers = #tpu.dot_dimension_numbers<[1], [0], [0], [1], [0, 0, 1, 1], [], []>} : vector<1x32xf32>, vector<32x64xf32>, vector<1x64xf32> -> vector<1x64xf32>
    %170 = arith.addf %164, %169 : vector<1x64xf32>
    %171 = vector.extract_strided_slice %147 {offsets = [1, 0, 0], sizes = [1, 1, 32], strides = [1, 1, 1]} : vector<4x4x32xf32> to vector<1x1x32xf32>
    %172 = vector.shape_cast %171 : vector<1x1x32xf32> to vector<1x32xf32>
    %c4_172 = arith.constant 4 : index
    %c0_173 = arith.constant 0 : index
    %c0_174 = arith.constant 0 : index
    %173 = vector.load %arg6[%c4_172, %c0_173, %c0_174] : memref<16x32x64xf32, #tpu.memory_space<vmem>>, vector<1x32x64xf32>
    %174 = vector.shape_cast %173 : vector<1x32x64xf32> to vector<32x64xf32>
    %cst_175 = arith.constant dense<0.000000e+00> : vector<1x64xf32>
    %175 = tpu.matmul %172, %174, %cst_175 {dimension_numbers = #tpu.dot_dimension_numbers<[1], [0], [0], [1], [0, 0, 1, 1], [], []>} : vector<1x32xf32>, vector<32x64xf32>, vector<1x64xf32> -> vector<1x64xf32>
    %176 = arith.addf %170, %175 : vector<1x64xf32>
    %177 = vector.extract_strided_slice %147 {offsets = [1, 1, 0], sizes = [1, 1, 32], strides = [1, 1, 1]} : vector<4x4x32xf32> to vector<1x1x32xf32>
    %178 = vector.shape_cast %177 : vector<1x1x32xf32> to vector<1x32xf32>
    %c5_176 = arith.constant 5 : index
    %c0_177 = arith.constant 0 : index
    %c0_178 = arith.constant 0 : index
    %179 = vector.load %arg6[%c5_176, %c0_177, %c0_178] : memref<16x32x64xf32, #tpu.memory_space<vmem>>, vector<1x32x64xf32>
    %180 = vector.shape_cast %179 : vector<1x32x64xf32> to vector<32x64xf32>
    %cst_179 = arith.constant dense<0.000000e+00> : vector<1x64xf32>
    %181 = tpu.matmul %178, %180, %cst_179 {dimension_numbers = #tpu.dot_dimension_numbers<[1], [0], [0], [1], [0, 0, 1, 1], [], []>} : vector<1x32xf32>, vector<32x64xf32>, vector<1x64xf32> -> vector<1x64xf32>
    %182 = arith.addf %176, %181 : vector<1x64xf32>
    %183 = vector.extract_strided_slice %147 {offsets = [1, 2, 0], sizes = [1, 1, 32], strides = [1, 1, 1]} : vector<4x4x32xf32> to vector<1x1x32xf32>
    %184 = vector.shape_cast %183 : vector<1x1x32xf32> to vector<1x32xf32>
    %c6_180 = arith.constant 6 : index
    %c0_181 = arith.constant 0 : index
    %c0_182 = arith.constant 0 : index
    %185 = vector.load %arg6[%c6_180, %c0_181, %c0_182] : memref<16x32x64xf32, #tpu.memory_space<vmem>>, vector<1x32x64xf32>
    %186 = vector.shape_cast %185 : vector<1x32x64xf32> to vector<32x64xf32>
    %cst_183 = arith.constant dense<0.000000e+00> : vector<1x64xf32>
    %187 = tpu.matmul %184, %186, %cst_183 {dimension_numbers = #tpu.dot_dimension_numbers<[1], [0], [0], [1], [0, 0, 1, 1], [], []>} : vector<1x32xf32>, vector<32x64xf32>, vector<1x64xf32> -> vector<1x64xf32>
    %188 = arith.addf %182, %187 : vector<1x64xf32>
    %189 = vector.extract_strided_slice %147 {offsets = [1, 3, 0], sizes = [1, 1, 32], strides = [1, 1, 1]} : vector<4x4x32xf32> to vector<1x1x32xf32>
    %190 = vector.shape_cast %189 : vector<1x1x32xf32> to vector<1x32xf32>
    %c7_184 = arith.constant 7 : index
    %c0_185 = arith.constant 0 : index
    %c0_186 = arith.constant 0 : index
    %191 = vector.load %arg6[%c7_184, %c0_185, %c0_186] : memref<16x32x64xf32, #tpu.memory_space<vmem>>, vector<1x32x64xf32>
    %192 = vector.shape_cast %191 : vector<1x32x64xf32> to vector<32x64xf32>
    %cst_187 = arith.constant dense<0.000000e+00> : vector<1x64xf32>
    %193 = tpu.matmul %190, %192, %cst_187 {dimension_numbers = #tpu.dot_dimension_numbers<[1], [0], [0], [1], [0, 0, 1, 1], [], []>} : vector<1x32xf32>, vector<32x64xf32>, vector<1x64xf32> -> vector<1x64xf32>
    %194 = arith.addf %188, %193 : vector<1x64xf32>
    %195 = vector.extract_strided_slice %147 {offsets = [2, 0, 0], sizes = [1, 1, 32], strides = [1, 1, 1]} : vector<4x4x32xf32> to vector<1x1x32xf32>
    %196 = vector.shape_cast %195 : vector<1x1x32xf32> to vector<1x32xf32>
    %c8_188 = arith.constant 8 : index
    %c0_189 = arith.constant 0 : index
    %c0_190 = arith.constant 0 : index
    %197 = vector.load %arg6[%c8_188, %c0_189, %c0_190] : memref<16x32x64xf32, #tpu.memory_space<vmem>>, vector<1x32x64xf32>
    %198 = vector.shape_cast %197 : vector<1x32x64xf32> to vector<32x64xf32>
    %cst_191 = arith.constant dense<0.000000e+00> : vector<1x64xf32>
    %199 = tpu.matmul %196, %198, %cst_191 {dimension_numbers = #tpu.dot_dimension_numbers<[1], [0], [0], [1], [0, 0, 1, 1], [], []>} : vector<1x32xf32>, vector<32x64xf32>, vector<1x64xf32> -> vector<1x64xf32>
    %200 = arith.addf %194, %199 : vector<1x64xf32>
    %201 = vector.extract_strided_slice %147 {offsets = [2, 1, 0], sizes = [1, 1, 32], strides = [1, 1, 1]} : vector<4x4x32xf32> to vector<1x1x32xf32>
    %202 = vector.shape_cast %201 : vector<1x1x32xf32> to vector<1x32xf32>
    %c9 = arith.constant 9 : index
    %c0_192 = arith.constant 0 : index
    %c0_193 = arith.constant 0 : index
    %203 = vector.load %arg6[%c9, %c0_192, %c0_193] : memref<16x32x64xf32, #tpu.memory_space<vmem>>, vector<1x32x64xf32>
    %204 = vector.shape_cast %203 : vector<1x32x64xf32> to vector<32x64xf32>
    %cst_194 = arith.constant dense<0.000000e+00> : vector<1x64xf32>
    %205 = tpu.matmul %202, %204, %cst_194 {dimension_numbers = #tpu.dot_dimension_numbers<[1], [0], [0], [1], [0, 0, 1, 1], [], []>} : vector<1x32xf32>, vector<32x64xf32>, vector<1x64xf32> -> vector<1x64xf32>
    %206 = arith.addf %200, %205 : vector<1x64xf32>
    %207 = vector.extract_strided_slice %147 {offsets = [2, 2, 0], sizes = [1, 1, 32], strides = [1, 1, 1]} : vector<4x4x32xf32> to vector<1x1x32xf32>
    %208 = vector.shape_cast %207 : vector<1x1x32xf32> to vector<1x32xf32>
    %c10 = arith.constant 10 : index
    %c0_195 = arith.constant 0 : index
    %c0_196 = arith.constant 0 : index
    %209 = vector.load %arg6[%c10, %c0_195, %c0_196] : memref<16x32x64xf32, #tpu.memory_space<vmem>>, vector<1x32x64xf32>
    %210 = vector.shape_cast %209 : vector<1x32x64xf32> to vector<32x64xf32>
    %cst_197 = arith.constant dense<0.000000e+00> : vector<1x64xf32>
    %211 = tpu.matmul %208, %210, %cst_197 {dimension_numbers = #tpu.dot_dimension_numbers<[1], [0], [0], [1], [0, 0, 1, 1], [], []>} : vector<1x32xf32>, vector<32x64xf32>, vector<1x64xf32> -> vector<1x64xf32>
    %212 = arith.addf %206, %211 : vector<1x64xf32>
    %213 = vector.extract_strided_slice %147 {offsets = [2, 3, 0], sizes = [1, 1, 32], strides = [1, 1, 1]} : vector<4x4x32xf32> to vector<1x1x32xf32>
    %214 = vector.shape_cast %213 : vector<1x1x32xf32> to vector<1x32xf32>
    %c11 = arith.constant 11 : index
    %c0_198 = arith.constant 0 : index
    %c0_199 = arith.constant 0 : index
    %215 = vector.load %arg6[%c11, %c0_198, %c0_199] : memref<16x32x64xf32, #tpu.memory_space<vmem>>, vector<1x32x64xf32>
    %216 = vector.shape_cast %215 : vector<1x32x64xf32> to vector<32x64xf32>
    %cst_200 = arith.constant dense<0.000000e+00> : vector<1x64xf32>
    %217 = tpu.matmul %214, %216, %cst_200 {dimension_numbers = #tpu.dot_dimension_numbers<[1], [0], [0], [1], [0, 0, 1, 1], [], []>} : vector<1x32xf32>, vector<32x64xf32>, vector<1x64xf32> -> vector<1x64xf32>
    %218 = arith.addf %212, %217 : vector<1x64xf32>
    %219 = vector.extract_strided_slice %147 {offsets = [3, 0, 0], sizes = [1, 1, 32], strides = [1, 1, 1]} : vector<4x4x32xf32> to vector<1x1x32xf32>
    %220 = vector.shape_cast %219 : vector<1x1x32xf32> to vector<1x32xf32>
    %c12 = arith.constant 12 : index
    %c0_201 = arith.constant 0 : index
    %c0_202 = arith.constant 0 : index
    %221 = vector.load %arg6[%c12, %c0_201, %c0_202] : memref<16x32x64xf32, #tpu.memory_space<vmem>>, vector<1x32x64xf32>
    %222 = vector.shape_cast %221 : vector<1x32x64xf32> to vector<32x64xf32>
    %cst_203 = arith.constant dense<0.000000e+00> : vector<1x64xf32>
    %223 = tpu.matmul %220, %222, %cst_203 {dimension_numbers = #tpu.dot_dimension_numbers<[1], [0], [0], [1], [0, 0, 1, 1], [], []>} : vector<1x32xf32>, vector<32x64xf32>, vector<1x64xf32> -> vector<1x64xf32>
    %224 = arith.addf %218, %223 : vector<1x64xf32>
    %225 = vector.extract_strided_slice %147 {offsets = [3, 1, 0], sizes = [1, 1, 32], strides = [1, 1, 1]} : vector<4x4x32xf32> to vector<1x1x32xf32>
    %226 = vector.shape_cast %225 : vector<1x1x32xf32> to vector<1x32xf32>
    %c13 = arith.constant 13 : index
    %c0_204 = arith.constant 0 : index
    %c0_205 = arith.constant 0 : index
    %227 = vector.load %arg6[%c13, %c0_204, %c0_205] : memref<16x32x64xf32, #tpu.memory_space<vmem>>, vector<1x32x64xf32>
    %228 = vector.shape_cast %227 : vector<1x32x64xf32> to vector<32x64xf32>
    %cst_206 = arith.constant dense<0.000000e+00> : vector<1x64xf32>
    %229 = tpu.matmul %226, %228, %cst_206 {dimension_numbers = #tpu.dot_dimension_numbers<[1], [0], [0], [1], [0, 0, 1, 1], [], []>} : vector<1x32xf32>, vector<32x64xf32>, vector<1x64xf32> -> vector<1x64xf32>
    %230 = arith.addf %224, %229 : vector<1x64xf32>
    %231 = vector.extract_strided_slice %147 {offsets = [3, 2, 0], sizes = [1, 1, 32], strides = [1, 1, 1]} : vector<4x4x32xf32> to vector<1x1x32xf32>
    %232 = vector.shape_cast %231 : vector<1x1x32xf32> to vector<1x32xf32>
    %c14 = arith.constant 14 : index
    %c0_207 = arith.constant 0 : index
    %c0_208 = arith.constant 0 : index
    %233 = vector.load %arg6[%c14, %c0_207, %c0_208] : memref<16x32x64xf32, #tpu.memory_space<vmem>>, vector<1x32x64xf32>
    %234 = vector.shape_cast %233 : vector<1x32x64xf32> to vector<32x64xf32>
    %cst_209 = arith.constant dense<0.000000e+00> : vector<1x64xf32>
    %235 = tpu.matmul %232, %234, %cst_209 {dimension_numbers = #tpu.dot_dimension_numbers<[1], [0], [0], [1], [0, 0, 1, 1], [], []>} : vector<1x32xf32>, vector<32x64xf32>, vector<1x64xf32> -> vector<1x64xf32>
    %236 = arith.addf %230, %235 : vector<1x64xf32>
    %237 = vector.extract_strided_slice %147 {offsets = [3, 3, 0], sizes = [1, 1, 32], strides = [1, 1, 1]} : vector<4x4x32xf32> to vector<1x1x32xf32>
    %238 = vector.shape_cast %237 : vector<1x1x32xf32> to vector<1x32xf32>
    %c15 = arith.constant 15 : index
    %c0_210 = arith.constant 0 : index
    %c0_211 = arith.constant 0 : index
    %239 = vector.load %arg6[%c15, %c0_210, %c0_211] : memref<16x32x64xf32, #tpu.memory_space<vmem>>, vector<1x32x64xf32>
    %240 = vector.shape_cast %239 : vector<1x32x64xf32> to vector<32x64xf32>
    %cst_212 = arith.constant dense<0.000000e+00> : vector<1x64xf32>
    %241 = tpu.matmul %238, %240, %cst_212 {dimension_numbers = #tpu.dot_dimension_numbers<[1], [0], [0], [1], [0, 0, 1, 1], [], []>} : vector<1x32xf32>, vector<32x64xf32>, vector<1x64xf32> -> vector<1x64xf32>
    %242 = arith.addf %236, %241 : vector<1x64xf32>
    %c0_213 = arith.constant 0 : index
    %c0_214 = arith.constant 0 : index
    %243 = vector.load %arg7[%c0_213, %c0_214] : memref<1x64xf32, #tpu.memory_space<vmem>>, vector<1x64xf32>
    %244 = arith.addf %242, %243 : vector<1x64xf32>
    %cst_215 = arith.constant 0.000000e+00 : f32
    %245 = vector.broadcast %cst_215 : f32 to vector<1x64xf32>
    %246 = arith.maximumf %244, %245 : vector<1x64xf32>
    %c0_216 = arith.constant 0 : index
    %c0_217 = arith.constant 0 : index
    %247 = vector.load %arg8[%c0_216, %c0_217] : memref<64x128xf32, #tpu.memory_space<vmem>>, vector<64x128xf32>
    %cst_218 = arith.constant dense<0.000000e+00> : vector<1x128xf32>
    %248 = tpu.matmul %246, %247, %cst_218 {dimension_numbers = #tpu.dot_dimension_numbers<[1], [0], [0], [1], [0, 0, 1, 1], [], []>} : vector<1x64xf32>, vector<64x128xf32>, vector<1x128xf32> -> vector<1x128xf32>
    %c0_219 = arith.constant 0 : index
    %c0_220 = arith.constant 0 : index
    %249 = vector.load %arg9[%c0_219, %c0_220] : memref<1x128xf32, #tpu.memory_space<vmem>>, vector<1x128xf32>
    %250 = arith.addf %248, %249 : vector<1x128xf32>
    %c0_221 = arith.constant 0 : index
    %c0_222 = arith.constant 0 : index
    %c0_223 = arith.constant 0 : index
    %251 = vector.load %arg10[%c0_221, %c0_222, %c0_223] : memref<1x1x128xf32, #tpu.memory_space<vmem>>, vector<1x1x128xf32>
    %252 = vector.shape_cast %251 : vector<1x1x128xf32> to vector<1x128xf32>
    %253 = vector.shape_cast %250 : vector<1x128xf32> to vector<1x1x128xf32>
    tpu.vector_store %arg10[%c0_221, %c0_222, %c0_223], %253 {strides = array<i32>} : memref<1x1x128xf32, #tpu.memory_space<vmem>>, vector<1x1x128xf32>,
    return
  }
  func.func @transform_0(%arg0: i32) -> (i32, i32, i32, i32) {
    %c0_i32 = arith.constant 0 : i32
    %c0_i32_0 = arith.constant 0 : i32
    %c0_i32_1 = arith.constant 0 : i32
    %c0_i32_2 = arith.constant 0 : i32
    return %arg0, %c0_i32, %c0_i32_0, %c0_i32_1 : i32, i32, i32, i32
  }
  func.func @transform_1(%arg0: i32) -> (i32, i32, i32) {
    %c0_i32 = arith.constant 0 : i32
    %c0_i32_0 = arith.constant 0 : i32
    %c0_i32_1 = arith.constant 0 : i32
    %c0_i32_2 = arith.constant 0 : i32
    return %c0_i32, %c0_i32_0, %c0_i32_1 : i32, i32, i32
  }
  func.func @transform_2(%arg0: i32) -> (i32, i32) {
    %c0_i32 = arith.constant 0 : i32
    %c0_i32_0 = arith.constant 0 : i32
    %c0_i32_1 = arith.constant 0 : i32
    return %c0_i32, %c0_i32_0 : i32, i32
  }
  func.func @transform_3(%arg0: i32) -> (i32, i32, i32) {
    %c0_i32 = arith.constant 0 : i32
    %c0_i32_0 = arith.constant 0 : i32
    %c0_i32_1 = arith.constant 0 : i32
    %c0_i32_2 = arith.constant 0 : i32
    return %c0_i32, %c0_i32_0, %c0_i32_1 : i32, i32, i32
  }
  func.func @transform_4(%arg0: i32) -> (i32, i32) {
    %c0_i32 = arith.constant 0 : i32
    %c0_i32_0 = arith.constant 0 : i32
    %c0_i32_1 = arith.constant 0 : i32
    return %c0_i32, %c0_i32_0 : i32, i32
  }
  func.func @transform_5(%arg0: i32) -> (i32, i32, i32) {
    %c0_i32 = arith.constant 0 : i32
    %c0_i32_0 = arith.constant 0 : i32
    %c0_i32_1 = arith.constant 0 : i32
    %c0_i32_2 = arith.constant 0 : i32
    return %c0_i32, %c0_i32_0, %c0_i32_1 : i32, i32, i32
  }
  func.func @transform_6(%arg0: i32) -> (i32, i32) {
    %c0_i32 = arith.constant 0 : i32
    %c0_i32_0 = arith.constant 0 : i32
    %c0_i32_1 = arith.constant 0 : i32
    return %c0_i32, %c0_i32_0 : i32, i32
  }
  func.func @transform_7(%arg0: i32) -> (i32, i32) {
    %c0_i32 = arith.constant 0 : i32
    %c0_i32_0 = arith.constant 0 : i32
    %c0_i32_1 = arith.constant 0 : i32
    return %c0_i32, %c0_i32_0 : i32, i32
  }
  func.func @transform_8(%arg0: i32) -> (i32, i32) {
    %c0_i32 = arith.constant 0 : i32
    %c0_i32_0 = arith.constant 0 : i32
    %c0_i32_1 = arith.constant 0 : i32
    return %c0_i32, %c0_i32_0 : i32, i32
  }
  func.func @transform_9(%arg0: i32) -> (i32, i32, i32) {
    %c0_i32 = arith.constant 0 : i32
    %c0_i32_0 = arith.constant 0 : i32
    %c0_i32_1 = arith.constant 0 : i32
    return %arg0, %c0_i32, %c0_i32_0 : i32, i32, i32
  }
}

</mosaic_0001>

<bundles_post_ra>
// kernel: net_forward.1
= control target key start
LH: loop header
LB: loop body
LE: loop exit
PB: predicated region body
PF: predicated region fallthrough
CT: control target
= control target key end

     0   :  { %14 = vsyncpa [#allocation6], 0  ;;  %s6995_s0 = inlined_call_operand.vmem [shape: f32[2,18,18,8], index: 0, kind: input, shape index: {}]   ;;  %s6996_s1 = inlined_call_operand.vmem [shape: f32[9,8,16], index: 1, kind: input, shape index: {}]   ;;  %s6997_s2 = inlined_call_operand.vmem [shape: f32[1,16], index: 2, kind: input, shape index: {}]   ;;  %s6998_s3 = inlined_call_operand.vmem [shape: f32[9,16,32], index: 3, kind: input, shape index: {}]   ;;  %s6999_s4 = inlined_call_operand.vmem [shape: f32[1,32], index: 4, kind: input, shape index: {}]   ;;  %s7000_s5 = inlined_call_operand.vmem [shape: f32[16,32,64], index: 5, kind: input, shape index: {}]   ;;  %s7001_s6 = inlined_call_operand.vmem [shape: f32[1,64], index: 6, kind: input, shape index: {}]   ;;  %s7002_s7 = inlined_call_operand.vmem [shape: f32[64,128], index: 7, kind: input, shape index: {}]   ;;  %s7003_s8 = inlined_call_operand.vmem [shape: f32[1,128], index: 8, kind: input, shape index: {}]   ;;  %s7004_s9 = inlined_call_operand.hbm [shape: f32[2,1,128], index: 9, kind: output, shape index: {}]  }
   0x1   :  { %16 = vsyncpa [#allocation6 + $0x1], 0  ;;  %s5086_s30 = smov 0   ;;  %s5088_s10 = smov 0  }
   0x2   :  { %s5090_s11 = smov 0   ;;  %s5092_s12 = smov 0  }
   0x3 LB: > { %s5107_s13 = sadd.s32 4294967295, %s5033_s12   ;;  %s4267_s14 = sadd.s32 4294967294, %s5033_s12   ;;  %s5033_s12 = sphi %s5092_s12, %s7200_s12   ;;  %s5029_s11 = sphi %s5090_s11, %s7199_s11   ;;  %s5025_s10 = sphi %s5088_s10, %s7198_s10   ;;  %s5021_s30 = sphi %s5086_s30, %s7197_s30  }
   0x4   : > { %s5111_s15 = sadd.s32 1, %s5033_s12   ;;  %s223_s16 = sadd.s32 1, %s5029_s11 }
   0x5   : > { %s220_s17 = ssub.s32 %s5033_s12, %s5111_s15  ;;  %p233_p0 = scmp.ne.s32.totalorder %s5029_s11, %s5025_s10 }
   0x6   : > { %p221_p1 = scmp.eq.s32.totalorder %s220_s17, 0  ;;  %p234_p2 = scmp.eq.s32.totalorder %s5107_s13, 1 }
   0x7   : > { %p239_p3 = scmp.ne.s32.totalorder %s5025_s10, %s5021_s30  ;;  %p240_p4 = scmp.eq.s32.totalorder %s4267_s14, 1 }
   0x8   : > { %s5122_s18 = scalar_select %p221_p1, %s5029_s11, %s223_s16  }
   0x9   : > { %p5124_p5 = por %p234_p2, %p233_p0  ;;  %p5128_p6 = por %p240_p4, %p239_p3 }
   0xa   : > { %p4270_p7 = scmp.ge.s32.totalorder %s5033_s12, 1  ;;  %p290_p8 = scmp.lt.s32.totalorder %s5033_s12, 3 }
   0xc   : > { %p291_p9 = pnand %p4270_p7, %p290_p8 }
   0xe   : > { %294 = sbr.rel (%p291_p9) target bundleno = 1461 (0x5b5), region = 56 }
  0x13   : > { %v4272_v0 = vld [vmem:[%s6996_s1 + $0x8] sm:$0xff]  ;;  %v362_v1 = vld [vmem:[%s6996_s1] sm:$0xff]  ;;  %v4337_v2 = vld [vmem:[%s6996_s1 + $0x10] sm:$0xff]  ;;  %p325_p10 = scmp.lt.s32.totalorder %s5107_s13, 1  ;;  %vm397_vm0 = vcmask 64512   ;;  %vm2827_vm1 = vcmask 130048   ;;  %s4208_s14 = scalar_lea.hbm %s7004_s9, %s5107_s13 }
  0x14   : > { %509 = vmatpush.msra.mxu0 %v4272_v0  ;;  %4927 = vmatpush.msra.mxu3 %v4272_v0  ;;  %v4467_v3 = vld [vmem:[%s6996_s1 + $0x20] sm:$0xff]  ;;  %v4402_v4 = vld [vmem:[%s6996_s1 + $0x18] sm:$0xff]  ;;  %vm2884_vm2 = vcmask 123904   ;;  %vm3677_vm3 = vcmask 261120   ;;  %vm4174_vm4 = vcmask 523264   ;;  %s323_s27 = sand.u32 1, %s5025_s10  }
  0x15   : > { %718 = vmatpush.msra.mxu1 %v362_v1  ;;  %961 = vmatpush.msra.mxu2 %v4337_v2  ;;  %s326_s16 = scalar_select %p325_p10, %s5107_s13, 1 }
  0x16   : > { %1512 = vmatpush.msrb.mxu0 %v4467_v3  ;;  %1237 = vmatpush.msrb.mxu3 %v4402_v4  ;;  %s324_s21 = scalar_lea.vmem [#allocation5], %s323_s27  ;;  %s4200_s24 = scalar_lea.sflag [#allocation6], %s323_s27 }
  0x17   : > { %s4928_s17 = smul.u32 432, %s326_s16  ;;  %s4210_s22 = sshll.u32 %s324_s21, 4  ;;  %s4211_s22 = int_to_ptr.vmem [resolvable:$true] %s4210_s22 }
  0x18   : > { %s4991_s29 = scalar_lea.hbm %s7004_s9, 2 }
  0x19   : > { %s5154_s23 = scalar_lea.vmem %s6995_s0, %s4928_s17 }
  0x1a   : > { %v363_v5 = vld [vmem:[%s5154_s23 + $0x1] sm:$0xff]  ;;  %v394_v6 = vld [vmem:[%s5154_s23 + $0x171] sm:$0xff]  ;;  %v364_v9 = vld [vmem:[%s5154_s23 + $0x9] sm:$0xff] }
  0x1b   : > { %v330_v7 = vld [vmem:[%s5154_s23] sm:$0xff]  ;;  %4273 = vmatmul.msk.f32.vlgmr.msra.gmra.mxu0 %vm397_vm0, %v363_v5  ;;  %4304 = vmatmul.msk.f32.vlgmr.msra.gmra.mxu3 %vm397_vm0, %v394_v6  ;;  %v4370_v10 = vld [vmem:[%s5154_s23 + $0x18] sm:$0xff]  ;;  %v331_v11 = vld [vmem:[%s5154_s23 + $0x8] sm:$0xff] }
  0x1c   : > { %v816_v8 = vld [vmem:[%s5154_s23 + $0x2] sm:$0xff]  ;;  %4305 = vmatmul.msk.f32.vlgmr.msra.gmra.mxu1 %vm397_vm0, %v330_v7  ;;  %v817_v12 = vld [vmem:[%s5154_s23 + $0xa] sm:$0xff]  ;;  %v5173_v13 = vld [vmem:[%s5154_s23 + $0x19] sm:$0xff] }
  0x1d   : > { %4338 = vmatmul.msk.f32.vlgmr.msra.gmra.mxu2 %vm397_vm0, %v816_v8  ;;  %v4371_v14 = vld [vmem:[%s5154_s23 + $0x20] sm:$0xff]  ;;  %v5189_v17 = vld [vmem:[%s5154_s23 + $0x30] sm:$0xff]  ;;  %v5205_v20 = vld [vmem:[%s5154_s23 + $0x38] sm:$0xff] }
  0x1e   : > { %v5177_v15 = vld [vmem:[%s5154_s23 + $0x1a] sm:$0xff]  ;;  %v5192_v18 = vld [vmem:[%s5154_s23 + $0x22] sm:$0xff]  ;;  %v5202_v19 = vld [vmem:[%s5154_s23 + $0x31] sm:$0xff] }
  0x1f   : > { %v5186_v16 = vld [vmem:[%s5154_s23 + $0x21] sm:$0xff]  ;;  %v5208_v21 = vld [vmem:[%s5154_s23 + $0x32] sm:$0xff]  ;;  %v5236_v25 = vld [vmem:[%s5154_s23 + $0x49] sm:$0xff] }
  0x20   : > { %v5219_v22 = vld [vmem:[%s5154_s23 + $0x39] sm:$0xff]  ;;  %v5222_v23 = vld [vmem:[%s5154_s23 + $0x48] sm:$0xff]  ;;  %v5239_v26 = vld [vmem:[%s5154_s23 + $0x50] sm:$0xff] }
  0x21   : > { %v5225_v24 = vld [vmem:[%s5154_s23 + $0x3a] sm:$0xff]  ;;  %v5242_v27 = vld [vmem:[%s5154_s23 + $0x4a] sm:$0xff]  ;;  %v5259_v30 = vld [vmem:[%s5154_s23 + $0x52] sm:$0xff] }
  0x22   : > { %v5253_v28 = vld [vmem:[%s5154_s23 + $0x51] sm:$0xff]  ;;  %v5256_v29 = vld [vmem:[%s5154_s23 + $0x60] sm:$0xff]  ;;  %v5273_v32 = vld [vmem:[%s5154_s23 + $0x68] sm:$0xff] }
  0x23   : > { %4274 = vmatmul.msk.f32.gmra.mxu0 %vm397_vm0, %v364_v9  ;;  %4403 = vmatmul.msk.f32.vlgmr.msrb.gmra.mxu3 %vm397_vm0, %v4370_v10  ;;  %v5270_v31 = vld [vmem:[%s5154_s23 + $0x61] sm:$0xff]  ;;  %v5287_v34 = vld [vmem:[%s5154_s23 + $0x69] sm:$0xff]  ;;  %v5290_v35 = vld [vmem:[%s5154_s23 + $0x78] sm:$0xff] }
  0x24   : > { %4306 = vmatmul.msk.f32.gmra.mxu1 %vm397_vm0, %v331_v11  ;;  %v5276_v33 = vld [vmem:[%s5154_s23 + $0x62] sm:$0xff]  ;;  %v5293_v36 = vld [vmem:[%s5154_s23 + $0x6a] sm:$0xff]  ;;  %v5304_v37 = vld [vmem:[%s5154_s23 + $0x79] sm:$0xff] }
  0x25   : > { %4339 = vmatmul.msk.f32.gmra.mxu2 %vm397_vm0, %v817_v12  ;;  %v5307_v38 = vld [vmem:[%s5154_s23 + $0x80] sm:$0xff]  ;;  %v5324_v41 = vld [vmem:[%s5154_s23 + $0x90] sm:$0xff]  ;;  %v5341_v44 = vld [vmem:[%s5154_s23 + $0x98] sm:$0xff] }
  0x26   : > { %v5310_v39 = vld [vmem:[%s5154_s23 + $0x7a] sm:$0xff]  ;;  %v5327_v42 = vld [vmem:[%s5154_s23 + $0x82] sm:$0xff]  ;;  %v5338_v43 = vld [vmem:[%s5154_s23 + $0x91] sm:$0xff] }
  0x27   : > { %v5321_v40 = vld [vmem:[%s5154_s23 + $0x81] sm:$0xff]  ;;  %v5344_v45 = vld [vmem:[%s5154_s23 + $0x92] sm:$0xff]  ;;  %v5372_v49 = vld [vmem:[%s5154_s23 + $0xa9] sm:$0xff] }
  0x28   : > { %v5355_v46 = vld [vmem:[%s5154_s23 + $0x99] sm:$0xff]  ;;  %v5358_v47 = vld [vmem:[%s5154_s23 + $0xa8] sm:$0xff]  ;;  %v5375_v50 = vld [vmem:[%s5154_s23 + $0xb0] sm:$0xff] }
  0x29   : > { %v5361_v48 = vld [vmem:[%s5154_s23 + $0x9a] sm:$0xff]  ;;  %v5378_v51 = vld [vmem:[%s5154_s23 + $0xaa] sm:$0xff]  ;;  %v5395_v54 = vld [vmem:[%s5154_s23 + $0xb2] sm:$0xff] }
  0x2a   : > { %v5389_v52 = vld [vmem:[%s5154_s23 + $0xb1] sm:$0xff]  ;;  %v5392_v53 = vld [vmem:[%s5154_s23 + $0xc0] sm:$0xff]  ;;  %v5409_v57 = vld [vmem:[%s5154_s23 + $0xc8] sm:$0xff] }
  0x2b   : > { %4275 = vmatmul.msk.f32.gmra.mxu0 %vm397_vm0, %v5173_v13  ;;  %4404 = vmatmul.msk.f32.gmra.mxu3 %vm397_vm0, %v4371_v14  ;;  %v5406_v56 = vld [vmem:[%s5154_s23 + $0xc1] sm:$0xff]  ;;  %v5425_v63 = vld [vmem:[%s5154_s23 + $0xc9] sm:$0xff]  ;;  %v5428_v0 = vld [vmem:[%s5154_s23 + $0xd8] sm:$0xff] }
  0x2c   : > { %4307 = vmatmul.msk.f32.gmra.mxu1 %vm397_vm0, %v4370_v10  ;;  %v5412_v59 = vld [vmem:[%s5154_s23 + $0xc2] sm:$0xff]  ;;  %v5431_v2 = vld [vmem:[%s5154_s23 + $0xca] sm:$0xff]  ;;  %v5444_v9 = vld [vmem:[%s5154_s23 + $0xd9] sm:$0xff] }
  0x2d   : > { %4340 = vmatmul.msk.f32.gmra.mxu2 %vm397_vm0, %v5177_v15  ;;  %7060 = vst [vmem:[#allocation9_spill] sm:$0xff] %v5431_v2  ;;  %v5447_v10 = vld [vmem:[%s5154_s23 + $0xe0] sm:$0xff] }
  0x2e   : > { %7062 = vst [vmem:[#allocation11_spill] sm:$0xff] %v5444_v9  ;;  %v5450_v12 = vld [vmem:[%s5154_s23 + $0xda] sm:$0xff] }
  0x2f   : > { %7063 = vst [vmem:[#allocation12_spill] sm:$0xff] %v5447_v10 }
  0x30   : > { %7064 = vst [vmem:[#allocation13_spill] sm:$0xff] %v5450_v12 }
  0x33   : > { %4276 = vmatmul.msk.f32.gmra.mxu0 %vm397_vm0, %v5186_v16  ;;  %4405 = vmatmul.msk.f32.gmra.mxu3 %vm397_vm0, %v5189_v17 }
  0x34   : > { %4308 = vmatmul.msk.f32.gmra.mxu1 %vm397_vm0, %v4371_v14 }
  0x35   : > { %4341 = vmatmul.msk.f32.gmra.mxu2 %vm397_vm0, %v5192_v18 }
  0x3b   : > { %4277 = vmatmul.msk.f32.gmra.mxu0 %vm397_vm0, %v5202_v19  ;;  %4406 = vmatmul.msk.f32.gmra.mxu3 %vm397_vm0, %v5205_v20 }
  0x3c   : > { %4309 = vmatmul.msk.f32.gmra.mxu1 %vm397_vm0, %v5189_v17 }
  0x3d   : > { %4342 = vmatmul.msk.f32.gmra.mxu2 %vm397_vm0, %v5208_v21 }
  0x43   : > { %4278 = vmatmul.msk.f32.gmra.mxu0 %vm397_vm0, %v5219_v22  ;;  %4407 = vmatmul.msk.f32.gmra.mxu3 %vm397_vm0, %v5222_v23 }
  0x44   : > { %4310 = vmatmul.msk.f32.gmra.mxu1 %vm397_vm0, %v5205_v20 }
  0x45   : > { %4343 = vmatmul.msk.f32.gmra.mxu2 %vm397_vm0, %v5225_v24 }
  0x4b   : > { %4279 = vmatmul.msk.f32.gmra.mxu0 %vm397_vm0, %v5236_v25  ;;  %4408 = vmatmul.msk.f32.gmra.mxu3 %vm397_vm0, %v5239_v26 }
  0x4c   : > { %4311 = vmatmul.msk.f32.gmra.mxu1 %vm397_vm0, %v5222_v23 }
  0x4d   : > { %4344 = vmatmul.msk.f32.gmra.mxu2 %vm397_vm0, %v5242_v27 }
  0x53   : > { %4280 = vmatmul.msk.f32.gmra.mxu0 %vm397_vm0, %v5253_v28  ;;  %4409 = vmatmul.msk.f32.gmra.mxu3 %vm397_vm0, %v5256_v29 }
  0x54   : > { %4312 = vmatmul.msk.f32.gmra.mxu1 %vm397_vm0, %v5239_v26 }
  0x55   : > { %4345 = vmatmul.msk.f32.gmra.mxu2 %vm397_vm0, %v5259_v30 }
  0x5b   : > { %4281 = vmatmul.msk.f32.gmra.mxu0 %vm397_vm0, %v5270_v31  ;;  %4410 = vmatmul.msk.f32.gmra.mxu3 %vm397_vm0, %v5273_v32 }
  0x5c   : > { %4313 = vmatmul.msk.f32.gmra.mxu1 %vm397_vm0, %v5256_v29 }
  0x5d   : > { %4346 = vmatmul.msk.f32.gmra.mxu2 %vm397_vm0, %v5276_v33 }
  0x63   : > { %4282 = vmatmul.msk.f32.gmra.mxu0 %vm397_vm0, %v5287_v34  ;;  %4411 = vmatmul.msk.f32.gmra.mxu3 %vm397_vm0, %v5290_v35 }
  0x64   : > { %4314 = vmatmul.msk.f32.gmra.mxu1 %vm397_vm0, %v5273_v32 }
  0x65   : > { %4347 = vmatmul.msk.f32.gmra.mxu2 %vm397_vm0, %v5293_v36 }
  0x6b   : > { %4283 = vmatmul.msk.f32.gmra.mxu0 %vm397_vm0, %v5304_v37  ;;  %4412 = vmatmul.msk.f32.gmra.mxu3 %vm397_vm0, %v5307_v38 }
  0x6c   : > { %4315 = vmatmul.msk.f32.gmra.mxu1 %vm397_vm0, %v5290_v35 }
  0x6d   : > { %4348 = vmatmul.msk.f32.gmra.mxu2 %vm397_vm0, %v5310_v39 }
  0x73   : > { %4284 = vmatmul.msk.f32.gmra.mxu0 %vm397_vm0, %v5321_v40  ;;  %4413 = vmatmul.msk.f32.gmra.mxu3 %vm397_vm0, %v5324_v41 }
  0x74   : > { %4316 = vmatmul.msk.f32.gmra.mxu1 %vm397_vm0, %v5307_v38 }
  0x75   : > { %4349 = vmatmul.msk.f32.gmra.mxu2 %vm397_vm0, %v5327_v42 }
  0x7b   : > { %4285 = vmatmul.msk.f32.gmra.mxu0 %vm397_vm0, %v5338_v43  ;;  %4414 = vmatmul.msk.f32.gmra.mxu3 %vm397_vm0, %v5341_v44 }
  0x7c   : > { %4317 = vmatmul.msk.f32.gmra.mxu1 %vm397_vm0, %v5324_v41 }
  0x7d   : > { %4350 = vmatmul.msk.f32.gmra.mxu2 %vm397_vm0, %v5344_v45 }
  0x83   : > { %4286 = vmatmul.msk.f32.gmra.mxu0 %vm397_vm0, %v5355_v46  ;;  %4415 = vmatmul.msk.f32.gmra.mxu3 %vm397_vm0, %v5358_v47 }
  0x84   : > { %4318 = vmatmul.msk.f32.gmra.mxu1 %vm397_vm0, %v5341_v44 }
  0x85   : > { %4351 = vmatmul.msk.f32.gmra.mxu2 %vm397_vm0, %v5361_v48 }
  0x8b   : > { %4287 = vmatmul.msk.f32.gmra.mxu0 %vm397_vm0, %v5372_v49  ;;  %4416 = vmatmul.msk.f32.gmra.mxu3 %vm397_vm0, %v5375_v50 }
  0x8c   : > { %4319 = vmatmul.msk.f32.gmra.mxu1 %vm397_vm0, %v5358_v47 }
  0x8d   : > { %4352 = vmatmul.msk.f32.gmra.mxu2 %vm397_vm0, %v5378_v51 }
  0x93   : > { %4288 = vmatmul.msk.f32.gmra.mxu0 %vm397_vm0, %v5389_v52  ;;  %4417 = vmatmul.msk.f32.gmra.mxu3 %vm397_vm0, %v5392_v53 }
  0x94   : > { %4320 = vmatmul.msk.f32.gmra.mxu1 %vm397_vm0, %v5375_v50 }
  0x95   : > { %4353 = vmatmul.msk.f32.gmra.mxu2 %vm397_vm0, %v5395_v54 }
  0x98   : > { %v511_v55 = vpop.f32.mrf.mxu0 }
  0x99   : > { %v720_v58 = vpop.f32.mrf.mxu1 }
  0x9a   : > { %v721_v3 = vadd.f32 %v720_v58, %v511_v55 }
  0x9b   : > { %4289 = vmatmul.msk.f32.gmra.mxu0 %vm397_vm0, %v5406_v56  ;;  %4418 = vmatmul.msk.f32.gmra.mxu3 %vm397_vm0, %v5409_v57 }
  0x9c   : > { %4321 = vmatmul.msk.f32.gmra.mxu1 %vm397_vm0, %v5392_v53 }
  0x9d   : > { %4354 = vmatmul.msk.f32.gmra.mxu2 %vm397_vm0, %v5412_v59 }
  0x9e   : > { %v5422_v60 = vpop.f32.mrf.mxu3 }
  0x9f   : > { %7059 = vst [vmem:[#allocation8_spill] sm:$0xff] %v5422_v60 }
  0xa0   : > { %v963_v61 = vpop.f32.mrf.mxu2  ;;  %v514_v62 = vpop.f32.mrf.mxu0 }
  0xa1   : > { %v723_v1 = vpop.f32.mrf.mxu1  ;;  %v1059_v4 = vadd.f32 %v963_v61, %v721_v3 }
  0xa2   : > { %v724_v14 = vadd.f32 %v723_v1, %v514_v62  ;;  %v5463_v62 = vld [vmem:[%s5154_s23 + $0xe1] sm:$0xff]  ;;  %v5466_v1 = vld [vmem:[%s5154_s23 + $0xf0] sm:$0xff] }
  0xa3   : > { %4290 = vmatmul.msk.f32.gmra.mxu0 %vm397_vm0, %v5425_v63  ;;  %4419 = vmatmul.msk.f32.gmra.mxu3 %vm397_vm0, %v5428_v0  ;;  %7066 = vst [vmem:[#allocation15_spill] sm:$0xff] %v5463_v62 }
  0xa4   : > { %4322 = vmatmul.msk.f32.gmra.mxu1 %vm397_vm0, %v5409_v57  ;;  %7067 = vst [vmem:[#allocation16_spill] sm:$0xff] %v5466_v1 }
  0xa5   : > { %4355 = vmatmul.msk.f32.gmra.mxu2 %vm397_vm0, %v5431_v2 }
  0xa6   : > { %v1239_v5 = vpop.f32.mrf.mxu3 }
  0xa7   : > { %v5441_v7 = vadd.f32 %v1239_v5, %v1059_v4 }
  0xa8   : > { %v966_v6 = vpop.f32.mrf.mxu2  ;;  %v517_v8 = vpop.f32.mrf.mxu0 }
  0xa9   : > { %7061 = vst [vmem:[#allocation10_spill] sm:$0xff] %v5441_v7  ;;  %v726_v11 = vpop.f32.mrf.mxu1  ;;  %v1060_v55 = vadd.f32 %v966_v6, %v724_v14  ;;  %v5469_v7 = vld [vmem:[%s5154_s23 + $0xe2] sm:$0xff] }
  0xaa   : > { %7068 = vst [vmem:[#allocation17_spill] sm:$0xff] %v5469_v7  ;;  %v727_v60 = vadd.f32 %v726_v11, %v517_v8  ;;  %v5482_v8 = vld [vmem:[%s5154_s23 + $0xf1] sm:$0xff] }
  0xab   : > { %4291 = vmatmul.msk.f32.gmra.mxu0 %vm397_vm0, %v5444_v9  ;;  %4420 = vmatmul.msk.f32.gmra.mxu3 %vm397_vm0, %v5447_v10  ;;  %7070 = vst [vmem:[#allocation19_spill] sm:$0xff] %v5482_v8  ;;  %v5485_v11 = vld [vmem:[%s5154_s23 + $0xf8] sm:$0xff] }
  0xac   : > { %4323 = vmatmul.msk.f32.gmra.mxu1 %vm397_vm0, %v5428_v0  ;;  %7071 = vst [vmem:[#allocation20_spill] sm:$0xff] %v5485_v11 }
  0xad   : > { %4356 = vmatmul.msk.f32.gmra.mxu2 %vm397_vm0, %v5450_v12 }
  0xae   : > { %v1242_v58 = vpop.f32.mrf.mxu3 }
  0xaf   : > { %v5460_v3 = vadd.f32 %v1242_v58, %v1060_v55 }
  0xb0   : > { %v969_v61 = vpop.f32.mrf.mxu2  ;;  %v520_v4 = vpop.f32.mrf.mxu0 }
  0xb1   : > { %7065 = vst [vmem:[#allocation14_spill] sm:$0xff] %v5460_v3  ;;  %v729_v5 = vpop.f32.mrf.mxu1  ;;  %v1061_v6 = vadd.f32 %v969_v61, %v727_v60 }
  0xb3   : > { %4292 = vmatmul.msk.f32.gmra.mxu0 %vm397_vm0, %v5463_v62  ;;  %4421 = vmatmul.msk.f32.gmra.mxu3 %vm397_vm0, %v5466_v1  ;;  %v5488_v62 = vld [vmem:[%s5154_s23 + $0xf2] sm:$0xff] }
  0xb4   : > { %4324 = vmatmul.msk.f32.gmra.mxu1 %vm397_vm0, %v5447_v10  ;;  %7072 = vst [vmem:[#allocation21_spill] sm:$0xff] %v5488_v62  ;;  %v730_v10 = vadd.f32 %v729_v5, %v520_v4  ;;  %v5501_v4 = vld [vmem:[%s5154_s23 + $0xf9] sm:$0xff]  ;;  %v5504_v5 = vld [vmem:[%s5154_s23 + $0x108] sm:$0xff] }
  0xb5   : > { %4357 = vmatmul.msk.f32.gmra.mxu2 %vm397_vm0, %v5469_v7  ;;  %7074 = vst [vmem:[#allocation23_spill] sm:$0xff] %v5501_v4 }
  0xb6   : > { %v1245_v14 = vpop.f32.mrf.mxu3  ;;  %7075 = vst [vmem:[#allocation24_spill] sm:$0xff] %v5504_v5 }
  0xb7   : > { %v5479_v58 = vadd.f32 %v1245_v14, %v1061_v6 }
  0xb8   : > { %v972_v55 = vpop.f32.mrf.mxu2  ;;  %v523_v3 = vpop.f32.mrf.mxu0 }
  0xb9   : > { %7069 = vst [vmem:[#allocation18_spill] sm:$0xff] %v5479_v58  ;;  %v732_v12 = vpop.f32.mrf.mxu1  ;;  %v1062_v60 = vadd.f32 %v972_v55, %v730_v10 }
  0xbb   : > { %4293 = vmatmul.msk.f32.gmra.mxu0 %vm397_vm0, %v5482_v8  ;;  %4422 = vmatmul.msk.f32.gmra.mxu3 %vm397_vm0, %v5485_v11  ;;  %v5507_v8 = vld [vmem:[%s5154_s23 + $0xfa] sm:$0xff] }
  0xbc   : > { %4325 = vmatmul.msk.f32.gmra.mxu1 %vm397_vm0, %v5466_v1  ;;  %7076 = vst [vmem:[#allocation25_spill] sm:$0xff] %v5507_v8  ;;  %v733_v1 = vadd.f32 %v732_v12, %v523_v3  ;;  %v5520_v12 = vld [vmem:[%s5154_s23 + $0x109] sm:$0xff] }
  0xbd   : > { %4358 = vmatmul.msk.f32.gmra.mxu2 %vm397_vm0, %v5488_v62  ;;  %7078 = vst [vmem:[#allocation27_spill] sm:$0xff] %v5520_v12  ;;  %v5523_v3 = vld [vmem:[%s5154_s23 + $0x110] sm:$0xff] }
  0xbe   : > { %v1248_v61 = vpop.f32.mrf.mxu3  ;;  %7079 = vst [vmem:[#allocation28_spill] sm:$0xff] %v5523_v3 }
  0xbf   : > { %v5498_v14 = vadd.f32 %v1248_v61, %v1062_v60 }
  0xc0   : > { %v975_v6 = vpop.f32.mrf.mxu2  ;;  %v526_v58 = vpop.f32.mrf.mxu0 }
  0xc1   : > { %7073 = vst [vmem:[#allocation22_spill] sm:$0xff] %v5498_v14  ;;  %v735_v7 = vpop.f32.mrf.mxu1  ;;  %v1063_v10 = vadd.f32 %v975_v6, %v733_v1 }
  0xc3   : > { %4294 = vmatmul.msk.f32.gmra.mxu0 %vm397_vm0, %v5501_v4  ;;  %4423 = vmatmul.msk.f32.gmra.mxu3 %vm397_vm0, %v5504_v5  ;;  %v5526_v4 = vld [vmem:[%s5154_s23 + $0x10a] sm:$0xff] }
  0xc4   : > { %4326 = vmatmul.msk.f32.gmra.mxu1 %vm397_vm0, %v5485_v11  ;;  %7080 = vst [vmem:[#allocation29_spill] sm:$0xff] %v5526_v4  ;;  %v736_v11 = vadd.f32 %v735_v7, %v526_v58  ;;  %v5539_v7 = vld [vmem:[%s5154_s23 + $0x111] sm:$0xff]  ;;  %v5542_v58 = vld [vmem:[%s5154_s23 + $0x120] sm:$0xff] }
  0xc5   : > { %4359 = vmatmul.msk.f32.gmra.mxu2 %vm397_vm0, %v5507_v8  ;;  %7082 = vst [vmem:[#allocation31_spill] sm:$0xff] %v5539_v7 }
  0xc6   : > { %v1251_v55 = vpop.f32.mrf.mxu3  ;;  %7083 = vst [vmem:[#allocation32_spill] sm:$0xff] %v5542_v58 }
  0xc7   : > { %v5517_v61 = vadd.f32 %v1251_v55, %v1063_v10 }
  0xc8   : > { %v978_v60 = vpop.f32.mrf.mxu2  ;;  %v529_v14 = vpop.f32.mrf.mxu0 }
  0xc9   : > { %7077 = vst [vmem:[#allocation26_spill] sm:$0xff] %v5517_v61  ;;  %v738_v62 = vpop.f32.mrf.mxu1  ;;  %v1064_v1 = vadd.f32 %v978_v60, %v736_v11 }
  0xcb   : > { %4295 = vmatmul.msk.f32.gmra.mxu0 %vm397_vm0, %v5520_v12  ;;  %4424 = vmatmul.msk.f32.gmra.mxu3 %vm397_vm0, %v5523_v3  ;;  %v5545_v12 = vld [vmem:[%s5154_s23 + $0x112] sm:$0xff] }
  0xcc   : > { %4327 = vmatmul.msk.f32.gmra.mxu1 %vm397_vm0, %v5504_v5  ;;  %7084 = vst [vmem:[#allocation33_spill] sm:$0xff] %v5545_v12  ;;  %v739_v5 = vadd.f32 %v738_v62, %v529_v14  ;;  %v5558_v62 = vld [vmem:[%s5154_s23 + $0x121] sm:$0xff] }
  0xcd   : > { %4360 = vmatmul.msk.f32.gmra.mxu2 %vm397_vm0, %v5526_v4  ;;  %7086 = vst [vmem:[#allocation35_spill] sm:$0xff] %v5558_v62  ;;  %v5561_v14 = vld [vmem:[%s5154_s23 + $0x128] sm:$0xff] }
  0xce   : > { %v1254_v6 = vpop.f32.mrf.mxu3  ;;  %7087 = vst [vmem:[#allocation36_spill] sm:$0xff] %v5561_v14 }
  0xcf   : > { %v5536_v55 = vadd.f32 %v1254_v6, %v1064_v1 }
  0xd0   : > { %v981_v10 = vpop.f32.mrf.mxu2  ;;  %v532_v61 = vpop.f32.mrf.mxu0 }
  0xd1   : > { %7081 = vst [vmem:[#allocation30_spill] sm:$0xff] %v5536_v55  ;;  %v741_v8 = vpop.f32.mrf.mxu1  ;;  %v1065_v11 = vadd.f32 %v981_v10, %v739_v5 }
  0xd3   : > { %4296 = vmatmul.msk.f32.gmra.mxu0 %vm397_vm0, %v5539_v7  ;;  %4425 = vmatmul.msk.f32.gmra.mxu3 %vm397_vm0, %v5542_v58  ;;  %v5564_v7 = vld [vmem:[%s5154_s23 + $0x122] sm:$0xff] }
  0xd4   : > { %4328 = vmatmul.msk.f32.gmra.mxu1 %vm397_vm0, %v5523_v3  ;;  %7088 = vst [vmem:[#allocation37_spill] sm:$0xff] %v5564_v7  ;;  %v742_v3 = vadd.f32 %v741_v8, %v532_v61  ;;  %v5577_v8 = vld [vmem:[%s5154_s23 + $0x129] sm:$0xff]  ;;  %v5580_v61 = vld [vmem:[%s5154_s23 + $0x138] sm:$0xff] }
  0xd5   : > { %4361 = vmatmul.msk.f32.gmra.mxu2 %vm397_vm0, %v5545_v12  ;;  %7090 = vst [vmem:[#allocation39_spill] sm:$0xff] %v5577_v8 }
  0xd6   : > { %v1257_v60 = vpop.f32.mrf.mxu3  ;;  %7091 = vst [vmem:[#allocation40_spill] sm:$0xff] %v5580_v61 }
  0xd7   : > { %v5555_v6 = vadd.f32 %v1257_v60, %v1065_v11 }
  0xd8   : > { %v984_v1 = vpop.f32.mrf.mxu2  ;;  %v535_v55 = vpop.f32.mrf.mxu0 }
  0xd9   : > { %7085 = vst [vmem:[#allocation34_spill] sm:$0xff] %v5555_v6  ;;  %v744_v4 = vpop.f32.mrf.mxu1  ;;  %v1066_v5 = vadd.f32 %v984_v1, %v742_v3 }
  0xdb   : > { %4297 = vmatmul.msk.f32.gmra.mxu0 %vm397_vm0, %v5558_v62  ;;  %4426 = vmatmul.msk.f32.gmra.mxu3 %vm397_vm0, %v5561_v14  ;;  %v5583_v62 = vld [vmem:[%s5154_s23 + $0x12a] sm:$0xff] }
  0xdc   : > { %4329 = vmatmul.msk.f32.gmra.mxu1 %vm397_vm0, %v5542_v58  ;;  %7092 = vst [vmem:[#allocation41_spill] sm:$0xff] %v5583_v62  ;;  %v745_v58 = vadd.f32 %v744_v4, %v535_v55  ;;  %v5599_v4 = vld [vmem:[%s5154_s23 + $0x140] sm:$0xff] }
  0xdd   : > { %4362 = vmatmul.msk.f32.gmra.mxu2 %vm397_vm0, %v5564_v7  ;;  %v5596_v7 = vld [vmem:[%s5154_s23 + $0x139] sm:$0xff] }
  0xde   : > { %v1260_v10 = vpop.f32.mrf.mxu3  ;;  %7094 = vst [vmem:[#allocation43_spill] sm:$0xff] %v5596_v7 }
  0xdf   : > { %v5574_v60 = vadd.f32 %v1260_v10, %v1066_v5 }
  0xe0   : > { %v987_v11 = vpop.f32.mrf.mxu2  ;;  %v538_v6 = vpop.f32.mrf.mxu0 }
  0xe1   : > { %7089 = vst [vmem:[#allocation38_spill] sm:$0xff] %v5574_v60  ;;  %v747_v12 = vpop.f32.mrf.mxu1  ;;  %v1067_v3 = vadd.f32 %v987_v11, %v745_v58  ;;  %v4662_v58 = vld [vmem:[%s6996_s1 + $0x38] sm:$0xff] }
  0xe2   : > { %v748_v2 = vadd.f32 %v747_v12, %v538_v6  ;;  %v4532_v12 = vld [vmem:[%s6996_s1 + $0x28] sm:$0xff]  ;;  %2338 = vmatpush.msra.mxu3 %v4662_v58 }
  0xe3   : > { %4298 = vmatmul.msk.f32.gmra.mxu0 %vm397_vm0, %v5577_v8  ;;  %4427 = vmatmul.msk.f32.gmra.mxu3 %vm397_vm0, %v5580_v61  ;;  %v5602_v8 = vld [vmem:[%s5154_s23 + $0x13a] sm:$0xff] }
  0xe4   : > { %4330 = vmatmul.msk.f32.gmra.mxu1 %vm397_vm0, %v5561_v14  ;;  %7095 = vst [vmem:[#allocation44_spill] sm:$0xff] %v5602_v8  ;;  %v4597_v14 = vld [vmem:[%s6996_s1 + $0x30] sm:$0xff] }
  0xe5   : > { %4363 = vmatmul.msk.f32.gmra.mxu2 %vm397_vm0, %v5583_v62  ;;  %1787 = vmatpush.msrb.mxu1 %v4532_v12  ;;  %v5624_v62 = vld [vmem:[%s5154_s23 + $0x141] sm:$0xff]  ;;  %v5646_v12 = vld [vmem:[%s5154_s23 + $0x151] sm:$0xff] }
  0xe6   : > { %v1263_v1 = vpop.f32.mrf.mxu3  ;;  %2063 = vmatpush.msrb.mxu2 %v4597_v14  ;;  %7097 = vst [vmem:[#allocation46_spill] sm:$0xff] %v5624_v62 }
  0xe7   : > { %v5593_v10 = vadd.f32 %v1263_v1, %v1067_v3  ;;  %7101 = vst [vmem:[#allocation50_spill] sm:$0xff] %v5646_v12 }
  0xe8   : > { %v990_v5 = vpop.f32.mrf.mxu2  ;;  %v541_v60 = vpop.f32.mrf.mxu0 }
  0xe9   : > { %7093 = vst [vmem:[#allocation42_spill] sm:$0xff] %v5593_v10  ;;  %v750_v55 = vpop.f32.mrf.mxu1  ;;  %v1068_v6 = vadd.f32 %v990_v5, %v748_v2  ;;  %v4727_v2 = vld [vmem:[%s6996_s1 + $0x40] sm:$0xff] }
  0xea   : > { %v751_v9 = vadd.f32 %v750_v55, %v541_v60  ;;  %2613 = vmatpush.msra.mxu0 %v4727_v2 }
  0xeb   : > { %4299 = vmatmul.msk.f32.gmra.mxu0 %vm397_vm0, %v5596_v7  ;;  %4428 = vmatmul.msk.f32.gmra.mxu3 %vm397_vm0, %v5599_v4 }
  0xec   : > { %4331 = vmatmul.msk.f32.gmra.mxu1 %vm397_vm0, %v5580_v61  ;;  %v5630_v61 = vld [vmem:[%s5154_s23 + $0x142] sm:$0xff] }
  0xed   : > { %4364 = vmatmul.msk.f32.gmra.mxu2 %vm397_vm0, %v5602_v8  ;;  %v5627_v8 = vld [vmem:[%s5154_s23 + $0x150] sm:$0xff]  ;;  %7099 = vst [vmem:[#allocation48_spill] sm:$0xff] %v5630_v61 }
  0xee   : > { %v1266_v11 = vpop.f32.mrf.mxu3  ;;  %7098 = vst [vmem:[#allocation47_spill] sm:$0xff] %v5627_v8 }
  0xef   : > { %v5621_v1 = vadd.f32 %v1266_v11, %v1068_v6  ;;  %v5649_v6 = vld [vmem:[%s5154_s23 + $0x158] sm:$0xff] }
  0xf0   : > { %v993_v3 = vpop.f32.mrf.mxu2  ;;  %v544_v10 = vpop.f32.mrf.mxu0 }
  0xf1   : > { %7096 = vst [vmem:[#allocation45_spill] sm:$0xff] %v5621_v1  ;;  %v753_v7 = vpop.f32.mrf.mxu1  ;;  %v1069_v14 = vadd.f32 %v993_v3, %v751_v9  ;;  %v5652_v1 = vld [vmem:[%s5154_s23 + $0x152] sm:$0xff] }
  0xf2   : > { %7102 = vst [vmem:[#allocation51_spill] sm:$0xff] %v5652_v1 }
  0xf3   : > { %4300 = vmatmul.msk.f32.gmra.mxu0 %vm397_vm0, %v5624_v62  ;;  %4429 = vmatmul.msk.f32.gmra.mxu3 %vm397_vm0, %v5627_v8 }
  0xf4   : > { %4332 = vmatmul.msk.f32.gmra.mxu1 %vm397_vm0, %v5599_v4 }
  0xf5   : > { %4365 = vmatmul.msk.f32.gmra.mxu2 %vm397_vm0, %v5630_v61  ;;  %v754_v61 = vadd.f32 %v753_v7, %v544_v10  ;;  %v5665_v7 = vld [vmem:[%s5154_s23 + $0x159] sm:$0xff]  ;;  %v5668_v10 = vld [vmem:[%s5154_s23 + $0x168] sm:$0xff] }
  0xf6   : > { %v1269_v5 = vpop.f32.mrf.mxu3  ;;  %7104 = vst [vmem:[#allocation53_spill] sm:$0xff] %v5665_v7 }
  0xf7   : > { %v5643_v55 = vadd.f32 %v1269_v5, %v1069_v14 }
  0xf8   : > { %v996_v60 = vpop.f32.mrf.mxu2  ;;  %v547_v58 = vpop.f32.mrf.mxu0 }
  0xf9   : > { %7100 = vst [vmem:[#allocation49_spill] sm:$0xff] %v5643_v55  ;;  %v756_v11 = vpop.f32.mrf.mxu1  ;;  %v1070_v9 = vadd.f32 %v996_v60, %v754_v61 }
  0xfb   : > { %4301 = vmatmul.msk.f32.gmra.mxu0 %vm397_vm0, %v5646_v12  ;;  %4430 = vmatmul.msk.f32.gmra.mxu3 %vm397_vm0, %v5649_v6  ;;  %v5671_v12 = vld [vmem:[%s5154_s23 + $0x15a] sm:$0xff] }
  0xfc   : > { %4333 = vmatmul.msk.f32.gmra.mxu1 %vm397_vm0, %v5627_v8  ;;  %7105 = vst [vmem:[#allocation54_spill] sm:$0xff] %v5671_v12  ;;  %v757_v8 = vadd.f32 %v756_v11, %v547_v58  ;;  %v5684_v58 = vld [vmem:[%s5154_s23 + $0x169] sm:$0xff] }
  0xfd   : > { %4366 = vmatmul.msk.f32.gmra.mxu2 %vm397_vm0, %v5652_v1  ;;  %7107 = vst [vmem:[#allocation56_spill] sm:$0xff] %v5684_v58  ;;  %v5687_v11 = vld [vmem:[%s5154_s23 + $0x170] sm:$0xff] }
  0xfe   : > { %v1272_v3 = vpop.f32.mrf.mxu3 }
  0xff   : > { %v5662_v14 = vadd.f32 %v1272_v3, %v1070_v9 }
 0x100   : > { %v999_v2 = vpop.f32.mrf.mxu2  ;;  %v550_v5 = vpop.f32.mrf.mxu0 }
 0x101   : > { %7103 = vst [vmem:[#allocation52_spill] sm:$0xff] %v5662_v14  ;;  %v759_v55 = vpop.f32.mrf.mxu1  ;;  %v1071_v61 = vadd.f32 %v999_v2, %v757_v8 }
 0x102   : > { %v760_v62 = vadd.f32 %v759_v55, %v550_v5  ;;  %v5703_v55 = vld [vmem:[%s5154_s23 + $0x180] sm:$0xff] }
 0x103   : > { %4302 = vmatmul.msk.f32.gmra.mxu0 %vm397_vm0, %v5665_v7  ;;  %4431 = vmatmul.msk.f32.gmra.mxu3 %vm397_vm0, %v5668_v10  ;;  %v5690_v7 = vld [vmem:[%s5154_s23 + $0x16a] sm:$0xff] }
 0x104   : > { %4334 = vmatmul.msk.f32.gmra.mxu1 %vm397_vm0, %v5649_v6  ;;  %7108 = vst [vmem:[#allocation57_spill] sm:$0xff] %v5690_v7 }
 0x105   : > { %4367 = vmatmul.msk.f32.gmra.mxu2 %vm397_vm0, %v5671_v12  ;;  %v5706_v12 = vld [vmem:[%s5154_s23 + $0x172] sm:$0xff] }
 0x106   : > { %v1275_v60 = vpop.f32.mrf.mxu3 }
 0x107   : > { %v5681_v3 = vadd.f32 %v1275_v60, %v1071_v61 }
 0x108   : > { %v1002_v9 = vpop.f32.mrf.mxu2  ;;  %v553_v14 = vpop.f32.mrf.mxu0 }
 0x109   : > { %7106 = vst [vmem:[#allocation55_spill] sm:$0xff] %v5681_v3  ;;  %v762_v1 = vpop.f32.mrf.mxu1  ;;  %v1072_v8 = vadd.f32 %v1002_v9, %v760_v62 }
 0x10b   : > { %4303 = vmatmul.msk.f32.gmra.mxu0 %vm397_vm0, %v5684_v58  ;;  %4432 = vmatmul.msk.f32.gmra.mxu3 %vm397_vm0, %v5687_v11  ;;  %v763_v58 = vadd.f32 %v762_v1, %v553_v14 }
 0x10c   : > { %4335 = vmatmul.msk.f32.gmra.mxu1 %vm397_vm0, %v5668_v10 }
 0x10d   : > { %4368 = vmatmul.msk.f32.gmra.mxu2 %vm397_vm0, %v5690_v7  ;;  %v5719_v7 = vld [vmem:[%s5154_s23 + $0x188] sm:$0xff] }
 0x10e   : > { %v1278_v2 = vpop.f32.mrf.mxu3 }
 0x10f   : > { %v5700_v60 = vadd.f32 %v1278_v2, %v1072_v8 }
 0x110   : > { %v1005_v61 = vpop.f32.mrf.mxu2  ;;  %v556_v3 = vpop.f32.mrf.mxu0 }
 0x111   : > { %7109 = vst [vmem:[#allocation58_spill] sm:$0xff] %v5700_v60  ;;  %v765_v5 = vpop.f32.mrf.mxu1  ;;  %v1073_v62 = vadd.f32 %v1005_v61, %v763_v58 }
 0x112   : > { %v766_v14 = vadd.f32 %v765_v5, %v556_v3 }
 0x113   : > { %4433 = vmatmul.msk.f32.gmra.mxu3 %vm397_vm0, %v5703_v55  ;;  %4468 = vmatmul.msk.f32.vlgmr.msrb.gmra.mxu0 %vm397_vm0, %v5173_v13 }
 0x114   : > { %4336 = vmatmul.msk.f32.gmra.mxu1 %vm397_vm0, %v5687_v11 }
 0x115   : > { %4369 = vmatmul.msk.f32.gmra.mxu2 %vm397_vm0, %v5706_v12 }
 0x116   : > { %v1281_v9 = vpop.f32.mrf.mxu3 }
 0x117   : > { %v5716_v2 = vadd.f32 %v1281_v9, %v1073_v62 }
 0x118   : > { %v1008_v8 = vpop.f32.mrf.mxu2  ;;  %v559_v60 = vpop.f32.mrf.mxu0 }
 0x119   : > { %7110 = vst [vmem:[#allocation59_spill] sm:$0xff] %v5716_v2  ;;  %v768_v1 = vpop.f32.mrf.mxu1  ;;  %v1074_v13 = vadd.f32 %v1008_v8, %v766_v14 }
 0x11a   : > { %v769_v3 = vadd.f32 %v768_v1, %v559_v60 }
 0x11b   : > { %4434 = vmatmul.msk.f32.gmra.mxu3 %vm397_vm0, %v5719_v7  ;;  %4469 = vmatmul.msk.f32.gmra.mxu0 %vm397_vm0, %v5186_v16 }
 0x11c   : > { %4533 = vmatmul.msk.f32.vlgmr.msrb.gmra.mxu1 %vm397_vm0, %v5177_v15 }
 0x11d   : > { %4598 = vmatmul.msk.f32.vlgmr.msrb.gmra.mxu2 %vm397_vm0, %v5189_v17 }
 0x11e   : > { %v1284_v58 = vpop.f32.mrf.mxu3 }
 0x11f   : > { %v5729_v62 = vadd.f32 %v1284_v58, %v1074_v13 }
 0x120   : > { %v1011_v61 = vpop.f32.mrf.mxu2  ;;  %v562_v9 = vpop.f32.mrf.mxu0 }
 0x121   : > { %v771_v2 = vpop.f32.mrf.mxu1  ;;  %v1075_v15 = vadd.f32 %v1011_v61, %v769_v3 }
 0x122   : > { %v772_v60 = vadd.f32 %v771_v2, %v562_v9 }
 0x123   : > { %4470 = vmatmul.msk.f32.gmra.mxu0 %vm397_vm0, %v5202_v19  ;;  %4663 = vmatmul.msk.f32.vlgmr.msra.gmra.mxu3 %vm397_vm0, %v5202_v19 }
 0x124   : > { %4534 = vmatmul.msk.f32.gmra.mxu1 %vm397_vm0, %v5192_v18 }
 0x125   : > { %4599 = vmatmul.msk.f32.gmra.mxu2 %vm397_vm0, %v5205_v20 }
 0x126   : > { %v1287_v16 = vpop.f32.mrf.mxu3 }
 0x127   : > { %v5739_v5 = vadd.f32 %v1287_v16, %v1075_v15 }
 0x128   : > { %v1014_v17 = vpop.f32.mrf.mxu2  ;;  %v565_v8 = vpop.f32.mrf.mxu0 }
 0x129   : > { %v774_v14 = vpop.f32.mrf.mxu1  ;;  %v1076_v18 = vadd.f32 %v1014_v17, %v772_v60 }
 0x12a   : > { %v775_v2 = vadd.f32 %v774_v14, %v565_v8 }
 0x12b   : > { %4471 = vmatmul.msk.f32.gmra.mxu0 %vm397_vm0, %v5219_v22  ;;  %4664 = vmatmul.msk.f32.gmra.mxu3 %vm397_vm0, %v5219_v22 }
 0x12c   : > { %4535 = vmatmul.msk.f32.gmra.mxu1 %vm397_vm0, %v5208_v21 }
 0x12d   : > { %4600 = vmatmul.msk.f32.gmra.mxu2 %vm397_vm0, %v5222_v23 }
 0x12e   : > { %v1290_v19 = vpop.f32.mrf.mxu3 }
 0x12f   : > { %v5749_v1 = vadd.f32 %v1290_v19, %v1076_v18 }
 0x130   : > { %v1017_v20 = vpop.f32.mrf.mxu2  ;;  %v568_v13 = vpop.f32.mrf.mxu0 }
 0x131   : > { %v777_v58 = vpop.f32.mrf.mxu1  ;;  %v1077_v21 = vadd.f32 %v1017_v20, %v775_v2 }
 0x132   : > { %v778_v15 = vadd.f32 %v777_v58, %v568_v13 }
 0x133   : > { %4472 = vmatmul.msk.f32.gmra.mxu0 %vm397_vm0, %v5236_v25  ;;  %4665 = vmatmul.msk.f32.gmra.mxu3 %vm397_vm0, %v5236_v25 }
 0x134   : > { %4536 = vmatmul.msk.f32.gmra.mxu1 %vm397_vm0, %v5225_v24 }
 0x135   : > { %4601 = vmatmul.msk.f32.gmra.mxu2 %vm397_vm0, %v5239_v26 }
 0x136   : > { %v1293_v22 = vpop.f32.mrf.mxu3 }
 0x137   : > { %v5759_v61 = vadd.f32 %v1293_v22, %v1077_v21 }
 0x138   : > { %v1020_v23 = vpop.f32.mrf.mxu2  ;;  %v571_v9 = vpop.f32.mrf.mxu0 }
 0x139   : > { %v780_v3 = vpop.f32.mrf.mxu1  ;;  %v1078_v24 = vadd.f32 %v1020_v23, %v778_v15 }
 0x13a   : > { %v781_v14 = vadd.f32 %v780_v3, %v571_v9 }
 0x13b   : > { %4473 = vmatmul.msk.f32.gmra.mxu0 %vm397_vm0, %v5253_v28  ;;  %4666 = vmatmul.msk.f32.gmra.mxu3 %vm397_vm0, %v5253_v28 }
 0x13c   : > { %4537 = vmatmul.msk.f32.gmra.mxu1 %vm397_vm0, %v5242_v27 }
 0x13d   : > { %4602 = vmatmul.msk.f32.gmra.mxu2 %vm397_vm0, %v5256_v29 }
 0x13e   : > { %v1296_v25 = vpop.f32.mrf.mxu3 }
 0x13f   : > { %v5769_v16 = vadd.f32 %v1296_v25, %v1078_v24 }
 0x140   : > { %v1023_v26 = vpop.f32.mrf.mxu2  ;;  %v574_v17 = vpop.f32.mrf.mxu0 }
 0x141   : > { %v783_v8 = vpop.f32.mrf.mxu1  ;;  %v1079_v27 = vadd.f32 %v1023_v26, %v781_v14 }
 0x142   : > { %v784_v20 = vadd.f32 %v783_v8, %v574_v17 }
 0x143   : > { %4474 = vmatmul.msk.f32.gmra.mxu0 %vm397_vm0, %v5270_v31  ;;  %4667 = vmatmul.msk.f32.gmra.mxu3 %vm397_vm0, %v5270_v31 }
 0x144   : > { %4538 = vmatmul.msk.f32.gmra.mxu1 %vm397_vm0, %v5259_v30 }
 0x145   : > { %4603 = vmatmul.msk.f32.gmra.mxu2 %vm397_vm0, %v5273_v32 }
 0x146   : > { %v1299_v28 = vpop.f32.mrf.mxu3 }
 0x147   : > { %v5779_v60 = vadd.f32 %v1299_v28, %v1079_v27 }
 0x148   : > { %v1026_v29 = vpop.f32.mrf.mxu2  ;;  %v577_v18 = vpop.f32.mrf.mxu0 }
 0x149   : > { %v786_v19 = vpop.f32.mrf.mxu1  ;;  %v1080_v30 = vadd.f32 %v1026_v29, %v784_v20 }
 0x14a   : > { %v787_v21 = vadd.f32 %v786_v19, %v577_v18 }
 0x14b   : > { %4475 = vmatmul.msk.f32.gmra.mxu0 %vm397_vm0, %v5287_v34  ;;  %4668 = vmatmul.msk.f32.gmra.mxu3 %vm397_vm0, %v5287_v34 }
 0x14c   : > { %4539 = vmatmul.msk.f32.gmra.mxu1 %vm397_vm0, %v5276_v33 }
 0x14d   : > { %4604 = vmatmul.msk.f32.gmra.mxu2 %vm397_vm0, %v5290_v35 }
 0x14e   : > { %v1302_v31 = vpop.f32.mrf.mxu3 }
 0x14f   : > { %v5789_v13 = vadd.f32 %v1302_v31, %v1080_v30 }
 0x150   : > { %v1029_v32 = vpop.f32.mrf.mxu2  ;;  %v580_v58 = vpop.f32.mrf.mxu0 }
 0x151   : > { %v789_v2 = vpop.f32.mrf.mxu1  ;;  %v1081_v33 = vadd.f32 %v1029_v32, %v787_v21 }
 0x152   : > { %v790_v3 = vadd.f32 %v789_v2, %v580_v58 }
 0x153   : > { %4476 = vmatmul.msk.f32.gmra.mxu0 %vm397_vm0, %v5304_v37  ;;  %4669 = vmatmul.msk.f32.gmra.mxu3 %vm397_vm0, %v5304_v37 }
 0x154   : > { %4540 = vmatmul.msk.f32.gmra.mxu1 %vm397_vm0, %v5293_v36 }
 0x155   : > { %4605 = vmatmul.msk.f32.gmra.mxu2 %vm397_vm0, %v5307_v38 }
 0x156   : > { %v1305_v34 = vpop.f32.mrf.mxu3 }
 0x157   : > { %v5799_v22 = vadd.f32 %v1305_v34, %v1081_v33 }
 0x158   : > { %v1032_v35 = vpop.f32.mrf.mxu2  ;;  %v583_v23 = vpop.f32.mrf.mxu0 }
 0x159   : > { %v792_v9 = vpop.f32.mrf.mxu1  ;;  %v1082_v36 = vadd.f32 %v1032_v35, %v790_v3 }
 0x15a   : > { %v793_v26 = vadd.f32 %v792_v9, %v583_v23 }
 0x15b   : > { %4477 = vmatmul.msk.f32.gmra.mxu0 %vm397_vm0, %v5321_v40  ;;  %4670 = vmatmul.msk.f32.gmra.mxu3 %vm397_vm0, %v5321_v40 }
 0x15c   : > { %4541 = vmatmul.msk.f32.gmra.mxu1 %vm397_vm0, %v5310_v39 }
 0x15d   : > { %4606 = vmatmul.msk.f32.gmra.mxu2 %vm397_vm0, %v5324_v41 }
 0x15e   : > { %v1308_v37 = vpop.f32.mrf.mxu3 }
 0x15f   : > { %v5809_v15 = vadd.f32 %v1308_v37, %v1082_v36 }
 0x160   : > { %v1035_v38 = vpop.f32.mrf.mxu2  ;;  %v586_v24 = vpop.f32.mrf.mxu0 }
 0x161   : > { %v795_v25 = vpop.f32.mrf.mxu1  ;;  %v1083_v39 = vadd.f32 %v1035_v38, %v793_v26 }
 0x162   : > { %v796_v27 = vadd.f32 %v795_v25, %v586_v24  ;;  %v7116_v24 = vld [vmem:[#allocation11_spill] sm:$0xff] }
 0x163   : > { %4478 = vmatmul.msk.f32.gmra.mxu0 %vm397_vm0, %v5338_v43  ;;  %4671 = vmatmul.msk.f32.gmra.mxu3 %vm397_vm0, %v5338_v43 }
 0x164   : > { %4542 = vmatmul.msk.f32.gmra.mxu1 %vm397_vm0, %v5327_v42 }
 0x165   : > { %4607 = vmatmul.msk.f32.gmra.mxu2 %vm397_vm0, %v5341_v44 }
 0x166   : > { %v1311_v40 = vpop.f32.mrf.mxu3 }
 0x167   : > { %v5819_v17 = vadd.f32 %v1311_v40, %v1083_v39 }
 0x168   : > { %v1038_v41 = vpop.f32.mrf.mxu2  ;;  %v589_v8 = vpop.f32.mrf.mxu0 }
 0x169   : > { %v798_v14 = vpop.f32.mrf.mxu1  ;;  %v1084_v42 = vadd.f32 %v1038_v41, %v796_v27  ;;  %v7121_v27 = vld [vmem:[#allocation15_spill] sm:$0xff] }
 0x16a   : > { %v799_v19 = vadd.f32 %v798_v14, %v589_v8  ;;  %v7120_v8 = vld [vmem:[#allocation8_spill] sm:$0xff] }
 0x16b   : > { %4479 = vmatmul.msk.f32.gmra.mxu0 %vm397_vm0, %v5355_v46  ;;  %4672 = vmatmul.msk.f32.gmra.mxu3 %vm397_vm0, %v5355_v46 }
 0x16c   : > { %4543 = vmatmul.msk.f32.gmra.mxu1 %vm397_vm0, %v5344_v45 }
 0x16d   : > { %4608 = vmatmul.msk.f32.gmra.mxu2 %vm397_vm0, %v5358_v47 }
 0x16e   : > { %v1314_v43 = vpop.f32.mrf.mxu3 }
 0x16f   : > { %v5829_v28 = vadd.f32 %v1314_v43, %v1084_v42  ;;  %v7122_v42 = vld [vmem:[#allocation10_spill] sm:$0xff] }
 0x170   : > { %v1041_v44 = vpop.f32.mrf.mxu2  ;;  %v592_v29 = vpop.f32.mrf.mxu0 }
 0x171   : > { %7111 = vst [vmem:[#allocation60_spill] sm:$0xff] %v5829_v28  ;;  %v801_v18 = vpop.f32.mrf.mxu1  ;;  %v1085_v45 = vadd.f32 %v1041_v44, %v799_v19  ;;  %v7123_v44 = vld [vmem:[#allocation13_spill] sm:$0xff] }
 0x172   : > { %v802_v32 = vadd.f32 %v801_v18, %v592_v29  ;;  %v7124_v29 = vld [vmem:[#allocation16_spill] sm:$0xff]  ;;  %v7174_v28 = vld [vmem:[#allocation49_spill] sm:$0xff] }
 0x173   : > { %4480 = vmatmul.msk.f32.gmra.mxu0 %vm397_vm0, %v5372_v49  ;;  %4673 = vmatmul.msk.f32.gmra.mxu3 %vm397_vm0, %v5372_v49 }
 0x174   : > { %4544 = vmatmul.msk.f32.gmra.mxu1 %vm397_vm0, %v5361_v48 }
 0x175   : > { %4609 = vmatmul.msk.f32.gmra.mxu2 %vm397_vm0, %v5375_v50 }
 0x176   : > { %v1317_v46 = vpop.f32.mrf.mxu3 }
 0x177   : > { %v5839_v20 = vadd.f32 %v1317_v46, %v1085_v45 }
 0x178   : > { %v1044_v47 = vpop.f32.mrf.mxu2  ;;  %v595_v30 = vpop.f32.mrf.mxu0 }
 0x179   : > { %7112 = vst [vmem:[#allocation61_spill] sm:$0xff] %v5839_v20  ;;  %v804_v31 = vpop.f32.mrf.mxu1  ;;  %v1086_v48 = vadd.f32 %v1044_v47, %v802_v32 }
 0x17a   : > { %v805_v33 = vadd.f32 %v804_v31, %v595_v30 }
 0x17b   : > { %4481 = vmatmul.msk.f32.gmra.mxu0 %vm397_vm0, %v5389_v52  ;;  %4674 = vmatmul.msk.f32.gmra.mxu3 %vm397_vm0, %v5389_v52 }
 0x17c   : > { %4545 = vmatmul.msk.f32.gmra.mxu1 %vm397_vm0, %v5378_v51 }
 0x17d   : > { %4610 = vmatmul.msk.f32.gmra.mxu2 %vm397_vm0, %v5392_v53 }
 0x17e   : > { %v1320_v49 = vpop.f32.mrf.mxu3 }
 0x17f   : > { %v5849_v58 = vadd.f32 %v1320_v49, %v1086_v48  ;;  %v7126_v48 = vld [vmem:[#allocation19_spill] sm:$0xff]  ;;  %v7127_v49 = vld [vmem:[#allocation14_spill] sm:$0xff] }
 0x180   : > { %v1047_v50 = vpop.f32.mrf.mxu2  ;;  %v598_v2 = vpop.f32.mrf.mxu0 }
 0x181   : > { %7113 = vst [vmem:[#allocation62_spill] sm:$0xff] %v5849_v58  ;;  %v807_v21 = vpop.f32.mrf.mxu1  ;;  %v1087_v51 = vadd.f32 %v1047_v50, %v805_v33 }
 0x182   : > { %v808_v9 = vadd.f32 %v807_v21, %v598_v2  ;;  %v7128_v2 = vld [vmem:[#allocation17_spill] sm:$0xff]  ;;  %v7129_v21 = vld [vmem:[#allocation20_spill] sm:$0xff] }
 0x183   : > { %4482 = vmatmul.msk.f32.gmra.mxu0 %vm397_vm0, %v5406_v56  ;;  %4675 = vmatmul.msk.f32.gmra.mxu3 %vm397_vm0, %v5406_v56 }
 0x184   : > { %4546 = vmatmul.msk.f32.gmra.mxu1 %vm397_vm0, %v5395_v54 }
 0x185   : > { %4611 = vmatmul.msk.f32.gmra.mxu2 %vm397_vm0, %v5409_v57 }
 0x186   : > { %v1323_v52 = vpop.f32.mrf.mxu3 }
 0x187   : > { %v5859_v34 = vadd.f32 %v1323_v52, %v1087_v51 }
 0x188   : > { %v1050_v53 = vpop.f32.mrf.mxu2  ;;  %v601_v35 = vpop.f32.mrf.mxu0 }
 0x189   : > { %7114 = vst [vmem:[#allocation63_spill] sm:$0xff] %v5859_v34  ;;  %v810_v23 = vpop.f32.mrf.mxu1  ;;  %v1088_v54 = vadd.f32 %v1050_v53, %v808_v9 }
 0x18a   : > { %v811_v38 = vadd.f32 %v810_v23, %v601_v35 }
 0x18b   : > { %4483 = vmatmul.msk.f32.gmra.mxu0 %vm397_vm0, %v5425_v63  ;;  %4676 = vmatmul.msk.f32.gmra.mxu3 %vm397_vm0, %v5425_v63  ;;  %v7117_v63 = vld [vmem:[#allocation9_spill] sm:$0xff] }
 0x18c   : > { %4547 = vmatmul.msk.f32.gmra.mxu1 %vm397_vm0, %v5412_v59  ;;  %v7118_v59 = vld [vmem:[#allocation12_spill] sm:$0xff] }
 0x18d   : > { %4612 = vmatmul.msk.f32.gmra.mxu2 %vm397_vm0, %v5428_v0 }
 0x18e   : > { %v1326_v56 = vpop.f32.mrf.mxu3 }
 0x18f   : > { %v5869_v3 = vadd.f32 %v1326_v56, %v1088_v54  ;;  %v7130_v54 = vld [vmem:[#allocation23_spill] sm:$0xff]  ;;  %v7131_v56 = vld [vmem:[#allocation18_spill] sm:$0xff] }
 0x190   : > { %v1053_v57 = vpop.f32.mrf.mxu2  ;;  %v1514_v36 = vpop.f32.mrf.mxu0 }
 0x191   : > { %7115 = vst [vmem:[#allocation64_spill] sm:$0xff] %v5869_v3  ;;  %v813_v37 = vpop.f32.mrf.mxu1  ;;  %v1089_v0 = vadd.f32 %v1053_v57, %v811_v38  ;;  %v1610_v43 = vadd.f32 %v1514_v36, %v7122_v42  ;;  %v7132_v36 = vld [vmem:[#allocation21_spill] sm:$0xff] }
 0x192   : > { %v814_v14 = vadd.f32 %v813_v37, %v7120_v8  ;;  %v7133_v37 = vld [vmem:[#allocation24_spill] sm:$0xff] }
 0x193   : > { %4484 = vmatmul.msk.f32.gmra.mxu0 %vm397_vm0, %v7116_v24  ;;  %4677 = vmatmul.msk.f32.gmra.mxu3 %vm397_vm0, %v7116_v24 }
 0x194   : > { %4548 = vmatmul.msk.f32.gmra.mxu1 %vm397_vm0, %v7117_v63 }
 0x195   : > { %4613 = vmatmul.msk.f32.gmra.mxu2 %vm397_vm0, %v7118_v59 }
 0x196   : > { %v1329_v25 = vpop.f32.mrf.mxu3 }
 0x197   : > { %v5879_v39 = vadd.f32 %v1329_v25, %v1089_v0 }
 0x198   : > { %v1056_v26 = vpop.f32.mrf.mxu2  ;;  %v1517_v40 = vpop.f32.mrf.mxu0 }
 0x199   : > { %7119 = vst [vmem:[#allocation11_spill] sm:$0xff] %v5879_v39  ;;  %v1789_v41 = vpop.f32.mrf.mxu1  ;;  %v1090_v18 = vadd.f32 %v1056_v26, %v814_v14  ;;  %v1611_v50 = vadd.f32 %v1517_v40, %v7127_v49  ;;  %v7134_v40 = vld [vmem:[#allocation27_spill] sm:$0xff]  ;;  %v7136_v14 = vld [vmem:[#allocation25_spill] sm:$0xff] }
 0x19a   : > { %v1885_v19 = vadd.f32 %v1789_v41, %v1610_v43  ;;  %v7135_v41 = vld [vmem:[#allocation22_spill] sm:$0xff]  ;;  %v4717_v39 = vld [vmem:[%s5154_s23 + $0x13a] sm:$0xff] }
 0x19b   : > { %4485 = vmatmul.msk.f32.gmra.mxu0 %vm397_vm0, %v7121_v27  ;;  %4678 = vmatmul.msk.f32.gmra.mxu3 %vm397_vm0, %v7121_v27  ;;  %v7137_v27 = vld [vmem:[#allocation28_spill] sm:$0xff] }
 0x19c   : > { %4549 = vmatmul.msk.f32.gmra.mxu1 %vm397_vm0, %v7123_v44 }
 0x19d   : > { %4614 = vmatmul.msk.f32.gmra.mxu2 %vm397_vm0, %v7124_v29 }
 0x19e   : > { %v1332_v45 = vpop.f32.mrf.mxu3 }
 0x19f   : > { %v5891_v46 = vadd.f32 %v1332_v45, %v1090_v18 }
 0x1a0   : > { %v2065_v47 = vpop.f32.mrf.mxu2  ;;  %v1520_v31 = vpop.f32.mrf.mxu0 }
 0x1a1   : > { %7125 = vst [vmem:[#allocation9_spill] sm:$0xff] %v5891_v46  ;;  %v2161_v30 = vadd.f32 %v2065_v47, %v1885_v19  ;;  %v1792_v32 = vpop.f32.mrf.mxu1  ;;  %v1612_v57 = vadd.f32 %v1520_v31, %v7131_v56  ;;  %v7138_v47 = vld [vmem:[#allocation31_spill] sm:$0xff]  ;;  %v7145_v56 = vld [vmem:[#allocation36_spill] sm:$0xff]  ;;  %v4714_v46 = vld [vmem:[%s5154_s23 + $0x112] sm:$0xff] }
 0x1a2   : > { %v1886_v33 = vadd.f32 %v1792_v32, %v1611_v50  ;;  %v7140_v32 = vld [vmem:[#allocation29_spill] sm:$0xff] }
 0x1a3   : > { %4486 = vmatmul.msk.f32.gmra.mxu0 %vm397_vm0, %v7126_v48  ;;  %4679 = vmatmul.msk.f32.gmra.mxu3 %vm397_vm0, %v7126_v48  ;;  %v7141_v48 = vld [vmem:[#allocation32_spill] sm:$0xff] }
 0x1a4   : > { %4550 = vmatmul.msk.f32.gmra.mxu1 %vm397_vm0, %v7128_v2 }
 0x1a5   : > { %4615 = vmatmul.msk.f32.gmra.mxu2 %vm397_vm0, %v7129_v21 }
 0x1a6   : > { %v2340_v51 = vpop.f32.mrf.mxu3 }
 0x1a7   : > { %v5902_v53 = vadd.f32 %v2340_v51, %v2161_v30  ;;  %v7139_v30 = vld [vmem:[#allocation26_spill] sm:$0xff] }
 0x1a8   : > { %v2068_v52 = vpop.f32.mrf.mxu2  ;;  %v1523_v23 = vpop.f32.mrf.mxu0 }
 0x1a9   : > { %v2162_v35 = vadd.f32 %v2068_v52, %v1886_v33  ;;  %v1795_v9 = vpop.f32.mrf.mxu1  ;;  %v1613_v8 = vadd.f32 %v1523_v23, %v7135_v41  ;;  %v7143_v23 = vld [vmem:[#allocation30_spill] sm:$0xff]  ;;  %v7148_v41 = vld [vmem:[#allocation37_spill] sm:$0xff] }
 0x1aa   : > { %v1887_v38 = vadd.f32 %v1795_v9, %v1612_v57 }
 0x1ab   : > { %4487 = vmatmul.msk.f32.gmra.mxu0 %vm397_vm0, %v7130_v54  ;;  %4680 = vmatmul.msk.f32.gmra.mxu3 %vm397_vm0, %v7130_v54  ;;  %v7144_v54 = vld [vmem:[#allocation33_spill] sm:$0xff] }
 0x1ac   : > { %4551 = vmatmul.msk.f32.gmra.mxu1 %vm397_vm0, %v7132_v36 }
 0x1ad   : > { %4616 = vmatmul.msk.f32.gmra.mxu2 %vm397_vm0, %v7133_v37 }
 0x1ae   : > { %v2343_v24 = vpop.f32.mrf.mxu3 }
 0x1af   : > { %v5913_v59 = vadd.f32 %v2343_v24, %v2162_v35  ;;  %v7142_v35 = vld [vmem:[#allocation35_spill] sm:$0xff] }
 0x1b0   : > { %v2071_v63 = vpop.f32.mrf.mxu2  ;;  %v1526_v25 = vpop.f32.mrf.mxu0 }
 0x1b1   : > { %v2163_v0 = vadd.f32 %v2071_v63, %v1887_v38  ;;  %v1798_v26 = vpop.f32.mrf.mxu1  ;;  %v1614_v31 = vadd.f32 %v1526_v25, %v7139_v30  ;;  %v7146_v25 = vld [vmem:[#allocation39_spill] sm:$0xff] }
 0x1b2   : > { %v1888_v42 = vadd.f32 %v1798_v26, %v1613_v8  ;;  %v7147_v26 = vld [vmem:[#allocation34_spill] sm:$0xff]  ;;  %v7149_v8 = vld [vmem:[#allocation40_spill] sm:$0xff] }
 0x1b3   : > { %4488 = vmatmul.msk.f32.gmra.mxu0 %vm397_vm0, %v7134_v40  ;;  %4681 = vmatmul.msk.f32.gmra.mxu3 %vm397_vm0, %v7134_v40 }
 0x1b4   : > { %4552 = vmatmul.msk.f32.gmra.mxu1 %vm397_vm0, %v7136_v14 }
 0x1b5   : > { %4617 = vmatmul.msk.f32.gmra.mxu2 %vm397_vm0, %v7137_v27 }
 0x1b6   : > { %v2346_v43 = vpop.f32.mrf.mxu3 }
 0x1b7   : > { %v5924_v29 = vadd.f32 %v2346_v43, %v2163_v0 }
 0x1b8   : > { %v2074_v44 = vpop.f32.mrf.mxu2  ;;  %v1529_v19 = vpop.f32.mrf.mxu0 }
 0x1b9   : > { %v2164_v18 = vadd.f32 %v2074_v44, %v1888_v42  ;;  %v1801_v45 = vpop.f32.mrf.mxu1  ;;  %v1615_v9 = vadd.f32 %v1529_v19, %v7143_v23 }
 0x1ba   : > { %v1889_v49 = vadd.f32 %v1801_v45, %v1614_v31  ;;  %v7150_v45 = vld [vmem:[#allocation43_spill] sm:$0xff]  ;;  %v7152_v31 = vld [vmem:[#allocation41_spill] sm:$0xff] }
 0x1bb   : > { %4489 = vmatmul.msk.f32.gmra.mxu0 %vm397_vm0, %v7138_v47  ;;  %4682 = vmatmul.msk.f32.gmra.mxu3 %vm397_vm0, %v7138_v47  ;;  %v7151_v47 = vld [vmem:[#allocation38_spill] sm:$0xff] }
 0x1bc   : > { %4553 = vmatmul.msk.f32.gmra.mxu1 %vm397_vm0, %v7140_v32 }
 0x1bd   : > { %4618 = vmatmul.msk.f32.gmra.mxu2 %vm397_vm0, %v7141_v48 }
 0x1be   : > { %v2349_v50 = vpop.f32.mrf.mxu3 }
 0x1bf   : > { %v5935_v21 = vadd.f32 %v2349_v50, %v2164_v18 }
 0x1c0   : > { %v2077_v2 = vpop.f32.mrf.mxu2  ;;  %v1532_v51 = vpop.f32.mrf.mxu0 }
 0x1c1   : > { %v2165_v33 = vadd.f32 %v2077_v2, %v1889_v49  ;;  %v1804_v52 = vpop.f32.mrf.mxu1  ;;  %v1616_v40 = vadd.f32 %v1532_v51, %v7147_v26  ;;  %v7153_v51 = vld [vmem:[#allocation46_spill] sm:$0xff] }
 0x1c2   : > { %v1890_v57 = vadd.f32 %v1804_v52, %v1615_v9  ;;  %v7154_v52 = vld [vmem:[#allocation44_spill] sm:$0xff] }
 0x1c3   : > { %4490 = vmatmul.msk.f32.gmra.mxu0 %vm397_vm0, %v7142_v35  ;;  %4683 = vmatmul.msk.f32.gmra.mxu3 %vm397_vm0, %v7142_v35  ;;  %v7155_v35 = vld [vmem:[#allocation47_spill] sm:$0xff] }
 0x1c4   : > { %4554 = vmatmul.msk.f32.gmra.mxu1 %vm397_vm0, %v7144_v54  ;;  %v7156_v54 = vld [vmem:[#allocation50_spill] sm:$0xff] }
 0x1c5   : > { %4619 = vmatmul.msk.f32.gmra.mxu2 %vm397_vm0, %v7145_v56  ;;  %v7157_v56 = vld [vmem:[#allocation48_spill] sm:$0xff] }
 0x1c6   : > { %v2352_v36 = vpop.f32.mrf.mxu3 }
 0x1c7   : > { %v5946_v38 = vadd.f32 %v2352_v36, %v2165_v33  ;;  %v7158_v36 = vld [vmem:[#allocation53_spill] sm:$0xff] }
 0x1c8   : > { %v2080_v37 = vpop.f32.mrf.mxu2  ;;  %v1535_v63 = vpop.f32.mrf.mxu0 }
 0x1c9   : > { %v2166_v24 = vadd.f32 %v2080_v37, %v1890_v57  ;;  %v1807_v0 = vpop.f32.mrf.mxu1  ;;  %v1617_v30 = vadd.f32 %v1535_v63, %v7151_v47  ;;  %v7159_v37 = vld [vmem:[#allocation51_spill] sm:$0xff]  ;;  %v7160_v63 = vld [vmem:[#allocation56_spill] sm:$0xff] }
 0x1ca   : > { %v1891_v14 = vadd.f32 %v1807_v0, %v1616_v40  ;;  %v4465_v40 = vld [vmem:[%s5154_s23 + $0x181] sm:$0xff] }
 0x1cb   : > { %4491 = vmatmul.msk.f32.gmra.mxu0 %vm397_vm0, %v7146_v25  ;;  %4684 = vmatmul.msk.f32.gmra.mxu3 %vm397_vm0, %v7146_v25  ;;  %v7162_v25 = vld [vmem:[#allocation57_spill] sm:$0xff] }
 0x1cc   : > { %4555 = vmatmul.msk.f32.gmra.mxu1 %vm397_vm0, %v7148_v41  ;;  %v6036_v41 = vld [vmem:[%s5154_s23 + $0x182] sm:$0xff] }
 0x1cd   : > { %4620 = vmatmul.msk.f32.gmra.mxu2 %vm397_vm0, %v7149_v8  ;;  %v4595_v8 = vld [vmem:[%s5154_s23 + $0x198] sm:$0xff] }
 0x1ce   : > { %v2355_v27 = vpop.f32.mrf.mxu3 }
 0x1cf   : > { %v5957_v43 = vadd.f32 %v2355_v27, %v2166_v24  ;;  %v6049_v27 = vld [vmem:[%s5154_s23 + $0x18a] sm:$0xff] }
 0x1d0   : > { %v2083_v42 = vpop.f32.mrf.mxu2  ;;  %v5959_v18 = vpop.f32.mrf.mxu0 }
 0x1d1   : > { %v2167_v44 = vadd.f32 %v2083_v42, %v1891_v14  ;;  %v1810_v19 = vpop.f32.mrf.mxu1  ;;  %v4695_v14 = vld [vmem:[%s5154_s23 + $0x32] sm:$0xff]  ;;  %v4596_v42 = vld [vmem:[%s5154_s23 + $0x1a0] sm:$0xff] }
 0x1d2   : > { %v1892_v32 = vadd.f32 %v1810_v19, %v1617_v30  ;;  %v4661_v19 = vld [vmem:[%s5154_s23 + $0x1a1] sm:$0xff]  ;;  %v4697_v30 = vld [vmem:[%s5154_s23 + $0x4a] sm:$0xff] }
 0x1d3   : > { %4492 = vmatmul.msk.f32.gmra.mxu0 %vm397_vm0, %v7150_v45  ;;  %4685 = vmatmul.msk.f32.gmra.mxu3 %vm397_vm0, %v7150_v45  ;;  %v4696_v45 = vld [vmem:[%s5154_s23 + $0x3a] sm:$0xff] }
 0x1d4   : > { %4556 = vmatmul.msk.f32.gmra.mxu1 %vm397_vm0, %v7152_v31 }
 0x1d5   : > { %4621 = vmatmul.msk.f32.gmra.mxu2 %vm397_vm0, %v5599_v4 }
 0x1d6   : > { %v2358_v48 = vpop.f32.mrf.mxu3 }
 0x1d7   : > { %v5970_v50 = vadd.f32 %v2358_v48, %v2167_v44  ;;  %v2922_v48 = vld [vmem:[%s6998_s3 + $0x8] sm:$0xff] }
 0x1d8   : > { %v2086_v49 = vpop.f32.mrf.mxu2  ;;  %v5972_v33 = vpop.f32.mrf.mxu0  ;;  %3037 = vmatpush.msra.mxu2 %v2922_v48 }
 0x1d9   : > { %v2168_v2 = vadd.f32 %v2086_v49, %v1892_v32  ;;  %v4698_v32 = vld [vmem:[%s5154_s23 + $0x52] sm:$0xff]  ;;  %v4779_v49 = vld [vmem:[%s6998_s3 + $0x28] sm:$0xff] }
 0x1da   : > { %3113 = vmatpush.msrb.mxu3 %v4779_v49  ;;  %v4710_v49 = vld [vmem:[%s5154_s23 + $0xe2] sm:$0xff] }
 0x1db   : > { %4493 = vmatmul.msk.f32.gmra.mxu0 %vm397_vm0, %v7153_v51  ;;  %4686 = vmatmul.msk.f32.gmra.mxu3 %vm397_vm0, %v7153_v51  ;;  %v4699_v51 = vld [vmem:[%s5154_s23 + $0x62] sm:$0xff] }
 0x1dc   : > { %4557 = vmatmul.msk.f32.gmra.mxu1 %vm397_vm0, %v7154_v52  ;;  %v4761_v52 = vld [vmem:[%s6998_s3 + $0x18] sm:$0xff] }
 0x1dd   : > { %4622 = vmatmul.msk.f32.gmra.mxu2 %vm397_vm0, %v7155_v35  ;;  %2972 = vmatpush.msra.mxu1 %v4761_v52  ;;  %v4711_v52 = vld [vmem:[%s5154_s23 + $0xf2] sm:$0xff] }
 0x1de   : > { %v2361_v4 = vpop.f32.mrf.mxu3 }
 0x1df   : > { %v5982_v23 = vadd.f32 %v2361_v4, %v2168_v2  ;;  %v4700_v4 = vld [vmem:[%s5154_s23 + $0x6a] sm:$0xff] }
 0x1e0   : > { %v5984_v9 = vpop.f32.mrf.mxu0 }
 0x1e3   : > { %4494 = vmatmul.msk.f32.gmra.mxu0 %vm397_vm0, %v7156_v54  ;;  %4687 = vmatmul.msk.f32.gmra.mxu3 %vm397_vm0, %v7156_v54 }
 0x1e4   : > { %4558 = vmatmul.msk.f32.gmra.mxu1 %vm397_vm0, %v7157_v56  ;;  %v4701_v56 = vld [vmem:[%s5154_s23 + $0x7a] sm:$0xff] }
 0x1e5   : > { %4623 = vmatmul.msk.f32.gmra.mxu2 %vm397_vm0, %v5649_v6  ;;  %v7161_v6 = vld [vmem:[#allocation54_spill] sm:$0xff] }
 0x1e8   : > { %v5994_v57 = vpop.f32.mrf.mxu0 }
 0x1eb   : > { %4495 = vmatmul.msk.f32.gmra.mxu0 %vm397_vm0, %v7158_v36  ;;  %4688 = vmatmul.msk.f32.gmra.mxu3 %vm397_vm0, %v7158_v36 }
 0x1ec   : > { %4559 = vmatmul.msk.f32.gmra.mxu1 %vm397_vm0, %v7159_v37  ;;  %v4702_v37 = vld [vmem:[%s5154_s23 + $0x82] sm:$0xff] }
 0x1ed   : > { %4624 = vmatmul.msk.f32.gmra.mxu2 %vm397_vm0, %v5668_v10  ;;  %v4464_v10 = vld [vmem:[%s5154_s23 + $0x171] sm:$0xff] }
 0x1f0   : > { %v6004_v24 = vpop.f32.mrf.mxu0 }
 0x1f3   : > { %4496 = vmatmul.msk.f32.gmra.mxu0 %vm397_vm0, %v7160_v63  ;;  %4689 = vmatmul.msk.f32.gmra.mxu3 %vm397_vm0, %v7160_v63 }
 0x1f4   : > { %4560 = vmatmul.msk.f32.gmra.mxu1 %vm397_vm0, %v7161_v6  ;;  %v4703_v6 = vld [vmem:[%s5154_s23 + $0x92] sm:$0xff] }
 0x1f5   : > { %4625 = vmatmul.msk.f32.gmra.mxu2 %vm397_vm0, %v5687_v11 }
 0x1f8   : > { %v6014_v0 = vpop.f32.mrf.mxu0 }
 0x1fb   : > { %4497 = vmatmul.msk.f32.gmra.mxu0 %vm397_vm0, %v4464_v10  ;;  %4690 = vmatmul.msk.f32.gmra.mxu3 %vm397_vm0, %v4464_v10 }
 0x1fc   : > { %4561 = vmatmul.msk.f32.gmra.mxu1 %vm397_vm0, %v7162_v25  ;;  %v4704_v25 = vld [vmem:[%s5154_s23 + $0x9a] sm:$0xff] }
 0x1fd   : > { %4626 = vmatmul.msk.f32.gmra.mxu2 %vm397_vm0, %v5703_v55  ;;  %v4466_v55 = vld [vmem:[%s5154_s23 + $0x189] sm:$0xff] }
 0x200   : > { %v6023_v26 = vpop.f32.mrf.mxu0 }
 0x203   : > { %4498 = vmatmul.msk.f32.gmra.mxu0 %vm397_vm0, %v4465_v40  ;;  %4691 = vmatmul.msk.f32.gmra.mxu3 %vm397_vm0, %v4465_v40 }
 0x204   : > { %4562 = vmatmul.msk.f32.gmra.mxu1 %vm397_vm0, %v5706_v12 }
 0x205   : > { %4627 = vmatmul.msk.f32.gmra.mxu2 %vm397_vm0, %v5719_v7  ;;  %v4660_v7 = vld [vmem:[%s5154_s23 + $0x199] sm:$0xff] }
 0x208   : > { %v6032_v11 = vpop.f32.mrf.mxu0 }
 0x20b   : > { %4499 = vmatmul.msk.f32.gmra.mxu0 %vm397_vm0, %v4466_v55  ;;  %4692 = vmatmul.msk.f32.gmra.mxu3 %vm397_vm0, %v4466_v55  ;;  %v4705_v55 = vld [vmem:[%s5154_s23 + $0xaa] sm:$0xff] }
 0x20c   : > { %4563 = vmatmul.msk.f32.gmra.mxu1 %vm397_vm0, %v6036_v41 }
 0x20d   : > { %4628 = vmatmul.msk.f32.gmra.mxu2 %vm397_vm0, %v4595_v8 }
 0x210   : > { %v6044_v12 = vpop.f32.mrf.mxu0 }
 0x213   : > { %4693 = vmatmul.msk.f32.gmra.mxu3 %vm397_vm0, %v4660_v7  ;;  %4728 = vmatmul.msk.f32.vlgmr.msra.gmra.mxu0 %vm397_vm0, %v4695_v14  ;;  %v4706_v7 = vld [vmem:[%s5154_s23 + $0xb2] sm:$0xff] }
 0x214   : > { %4564 = vmatmul.msk.f32.gmra.mxu1 %vm397_vm0, %v6049_v27 }
 0x215   : > { %4629 = vmatmul.msk.f32.gmra.mxu2 %vm397_vm0, %v4596_v42  ;;  %v4707_v42 = vld [vmem:[%s5154_s23 + $0xc2] sm:$0xff] }
 0x218   : > { %v6057_v44 = vpop.f32.mrf.mxu0 }
 0x21b   : > { %4694 = vmatmul.msk.f32.gmra.mxu3 %vm397_vm0, %v4661_v19  ;;  %4729 = vmatmul.msk.f32.gmra.mxu0 %vm397_vm0, %v4696_v45  ;;  %v4708_v45 = vld [vmem:[%s5154_s23 + $0xca] sm:$0xff] }
 0x220   : > { %v6063_v47 = vpop.f32.mrf.mxu0 }
 0x223   : > { %4730 = vmatmul.msk.f32.gmra.mxu0 %vm397_vm0, %v4697_v30 }
 0x228   : > { %v6067_v31 = vpop.f32.mrf.mxu0 }
 0x22b   : > { %4731 = vmatmul.msk.f32.gmra.mxu0 %vm397_vm0, %v4698_v32  ;;  %v4709_v32 = vld [vmem:[%s5154_s23 + $0xda] sm:$0xff] }
 0x230   : > { %v6077_v2 = vpop.f32.mrf.mxu0 }
 0x233   : > { %4732 = vmatmul.msk.f32.gmra.mxu0 %vm397_vm0, %v4699_v51 }
 0x238   : > { %v6084_v35 = vpop.f32.mrf.mxu0 }
 0x23b   : > { %4733 = vmatmul.msk.f32.gmra.mxu0 %vm397_vm0, %v4700_v4  ;;  %v5035_v4 = vmov 0.0  }
 0x23c   : > { %2883 = vst.msk [vmem:[#allocation3] sm:$0xff] %vm2827_vm1, %v5035_v4 }
 0x23d   : > { %2885 = vst.msk [vmem:[#allocation3 + $0x8] sm:$0x3] %vm2884_vm2, %v5035_v4 }
 0x23e   : > { %2886 = vst.msk [vmem:[#allocation3 + $0x10] sm:$0xff] %vm2827_vm1, %v5035_v4 }
 0x23f   : > { %2887 = vst.msk [vmem:[#allocation3 + $0x18] sm:$0x3] %vm2884_vm2, %v5035_v4 }
 0x240   : > { %v6088_v54 = vpop.f32.mrf.mxu0  ;;  %2888 = vst.msk [vmem:[#allocation3 + $0x20] sm:$0xff] %vm2827_vm1, %v5035_v4 }
 0x241   : > { %2889 = vst.msk [vmem:[#allocation3 + $0x28] sm:$0x3] %vm2884_vm2, %v5035_v4 }
 0x242   : > { %2890 = vst.msk [vmem:[#allocation3 + $0x30] sm:$0xff] %vm2827_vm1, %v5035_v4 }
 0x243   : > { %4734 = vmatmul.msk.f32.gmra.mxu0 %vm397_vm0, %v4701_v56  ;;  %2891 = vst.msk [vmem:[#allocation3 + $0x38] sm:$0x3] %vm2884_vm2, %v5035_v4 }
 0x244   : > { %2892 = vst.msk [vmem:[#allocation3 + $0x40] sm:$0xff] %vm2827_vm1, %v5035_v4 }
 0x245   : > { %2893 = vst.msk [vmem:[#allocation3 + $0x48] sm:$0x3] %vm2884_vm2, %v5035_v4 }
 0x246   : > { %2894 = vst.msk [vmem:[#allocation3 + $0x50] sm:$0xff] %vm2827_vm1, %v5035_v4 }
 0x247   : > { %2895 = vst.msk [vmem:[#allocation3 + $0x58] sm:$0x3] %vm2884_vm2, %v5035_v4 }
 0x248   : > { %v6092_v36 = vpop.f32.mrf.mxu0  ;;  %2896 = vst.msk [vmem:[#allocation3 + $0x60] sm:$0xff] %vm2827_vm1, %v5035_v4 }
 0x249   : > { %2897 = vst.msk [vmem:[#allocation3 + $0x68] sm:$0x3] %vm2884_vm2, %v5035_v4 }
 0x24a   : > { %2898 = vst.msk [vmem:[#allocation3 + $0x70] sm:$0xff] %vm2827_vm1, %v5035_v4 }
 0x24b   : > { %4735 = vmatmul.msk.f32.gmra.mxu0 %vm397_vm0, %v4702_v37  ;;  %v4712_v37 = vld [vmem:[%s5154_s23 + $0xfa] sm:$0xff]  ;;  %2899 = vst.msk [vmem:[#allocation3 + $0x78] sm:$0x3] %vm2884_vm2, %v5035_v4 }
 0x24c   : > { %2900 = vst.msk [vmem:[#allocation3 + $0x80] sm:$0xff] %vm2827_vm1, %v5035_v4 }
 0x24d   : > { %2901 = vst.msk [vmem:[#allocation3 + $0x88] sm:$0x3] %vm2884_vm2, %v5035_v4 }
 0x24e   : > { %2902 = vst.msk [vmem:[#allocation3 + $0x90] sm:$0xff] %vm2827_vm1, %v5035_v4 }
 0x24f   : > { %2903 = vst.msk [vmem:[#allocation3 + $0x98] sm:$0x3] %vm2884_vm2, %v5035_v4 }
 0x250   : > { %v6096_v63 = vpop.f32.mrf.mxu0 }
 0x253   : > { %4736 = vmatmul.msk.f32.gmra.mxu0 %vm397_vm0, %v4703_v6  ;;  %v6137_v6 = vpop.f32.mrf.mxu1 }
 0x258   : > { %v6100_v10 = vpop.f32.mrf.mxu0 }
 0x259   : > { %7163 = vst [vmem:[#allocation12_spill] sm:$0xff] %v6100_v10 }
 0x25b   : > { %4737 = vmatmul.msk.f32.gmra.mxu0 %vm397_vm0, %v4704_v25  ;;  %v4760_v25 = vld [vmem:[%s6998_s3 + $0x10] sm:$0xff] }
 0x25c   : > { %2973 = vmatpush.msra.mxu1 %v4760_v25 }
 0x260   : > { %v6104_v40 = vpop.f32.mrf.mxu0 }
 0x261   : > { %7164 = vst [vmem:[#allocation8_spill] sm:$0xff] %v6104_v40 }
 0x263   : > { %4738 = vmatmul.msk.f32.gmra.mxu0 %vm397_vm0, %v4705_v55  ;;  %v2921_v55 = vld [vmem:[%s6998_s3] sm:$0xff] }
 0x264   : > { %3038 = vmatpush.msra.mxu2 %v2921_v55 }
 0x268   : > { %v6108_v8 = vpop.f32.mrf.mxu0 }
 0x269   : > { %7165 = vst [vmem:[#allocation15_spill] sm:$0xff] %v6108_v8  ;;  %v4718_v8 = vld [vmem:[%s5154_s23 + $0x142] sm:$0xff] }
 0x26b   : > { %4739 = vmatmul.msk.f32.gmra.mxu0 %vm397_vm0, %v4706_v7  ;;  %v4778_v7 = vld [vmem:[%s6998_s3 + $0x20] sm:$0xff] }
 0x26c   : > { %3114 = vmatpush.msrb.mxu3 %v4778_v7 }
 0x270   : > { %v6112_v14 = vpop.f32.mrf.mxu0 }
 0x271   : > { %7166 = vst [vmem:[#allocation10_spill] sm:$0xff] %v6112_v14 }
 0x273   : > { %4740 = vmatmul.msk.f32.gmra.mxu0 %vm397_vm0, %v4707_v42  ;;  %v2913_v42 = vld [vmem:[#allocation3] sm:$0xff] }
 0x278   : > { %v6116_v19 = vpop.f32.mrf.mxu0 }
 0x279   : > { %7167 = vst [vmem:[#allocation13_spill] sm:$0xff] %v6116_v19 }
 0x27b   : > { %4741 = vmatmul.msk.f32.gmra.mxu0 %vm397_vm0, %v4708_v45  ;;  %v6151_v45 = vpop.f32.mrf.mxu2  ;;  %4770 = vmatmul.msk.f32.vlgmr.msra.gmra.mxu2 %vm2827_vm1, %v2913_v42  ;;  %v6177_v42 = vpop.f32.mrf.mxu1 }
 0x280   : > { %v6120_v30 = vpop.f32.mrf.mxu0 }
 0x281   : > { %7168 = vst [vmem:[#allocation16_spill] sm:$0xff] %v6120_v30  ;;  %v4715_v30 = vld [vmem:[%s5154_s23 + $0x122] sm:$0xff] }
 0x283   : > { %4742 = vmatmul.msk.f32.gmra.mxu0 %vm397_vm0, %v4709_v32  ;;  %v2923_v32 = vld [vmem:[#allocation3 + $0x1] sm:$0xff] }
 0x284   : > { %4762 = vmatmul.msk.f32.vlgmr.msra.gmra.mxu1 %vm2827_vm1, %v2923_v32 }
 0x288   : > { %v6124_v48 = vpop.f32.mrf.mxu0 }
 0x289   : > { %7169 = vst [vmem:[#allocation19_spill] sm:$0xff] %v6124_v48  ;;  %v6158_v48 = vld [vmem:[%s6997_s2] ss:$0 sm:$0xff] }
 0x28b   : > { %4743 = vmatmul.msk.f32.gmra.mxu0 %vm397_vm0, %v4710_v49  ;;  %v3064_v49 = vld [vmem:[#allocation3 + $0x2] sm:$0xff] }
 0x290   : > { %v2615_v51 = vpop.f32.mrf.mxu0 }
 0x293   : > { %4744 = vmatmul.msk.f32.gmra.mxu0 %vm397_vm0, %v4711_v52  ;;  %v2711_v52 = vadd.f32 %v2615_v51, %v5902_v53  ;;  %v4713_v51 = vld [vmem:[%s5154_s23 + $0x10a] sm:$0xff] }
 0x295   : > { %v2747_v25 = vadd.f32 %v6158_v48, %v2711_v52 }
 0x297   : > { %v2779_v32 = vmax.f32 %v2747_v25, 0.0 }
 0x298   : > { %v2618_v56 = vpop.f32.mrf.mxu0 }
 0x29b   : > { %4745 = vmatmul.msk.f32.gmra.mxu0 %vm397_vm0, %v4712_v37  ;;  %v6163_v37 = vpop.f32.mrf.mxu3  ;;  %4780 = vmatmul.msk.f32.vlgmr.msrb.gmra.mxu3 %vm2827_vm1, %v3064_v49  ;;  %v2712_v49 = vadd.f32 %v2618_v56, %v5913_v59 }
 0x29d   : > { %v2748_v19 = vadd.f32 %v6158_v48, %v2712_v49 }
 0x29f   : > { %v2780_v25 = vmax.f32 %v2748_v19, 0.0 }
 0x2a0   : > { %v2621_v53 = vpop.f32.mrf.mxu0 }
 0x2a1   : > { %v2713_v55 = vadd.f32 %v2621_v53, %v5924_v29  ;;  %v6182_v29 = vpop.f32.mrf.mxu2 }
 0x2a3   : > { %v2749_v7 = vadd.f32 %v6158_v48, %v2713_v55  ;;  %4746 = vmatmul.msk.f32.gmra.mxu0 %vm397_vm0, %v4713_v51  ;;  %v6186_v51 = vpop.f32.mrf.mxu3 }
 0x2a5   : > { %v2781_v52 = vmax.f32 %v2749_v7, 0.0 }
 0x2a7   : > { %v2811_v53 = vmax.f32 %v2779_v32, %v2781_v52  ;;  %v6194_v32 = vpop.f32.mrf.mxu1 }
 0x2a8   : > { %v2624_v55 = vpop.f32.mrf.mxu0 }
 0x2a9   : > { %2828 = vst.msk [vmem:[#allocation2] sm:$0xff] %vm2827_vm1, %v2811_v53  ;;  %v2714_v59 = vadd.f32 %v2624_v55, %v5935_v21  ;;  %v6196_v52 = vpop.f32.mrf.mxu2  ;;  %v4716_v55 = vld [vmem:[%s5154_s23 + $0x12a] sm:$0xff] }
 0x2ab   : > { %v2750_v56 = vadd.f32 %v6158_v48, %v2714_v59  ;;  %4747 = vmatmul.msk.f32.gmra.mxu0 %vm397_vm0, %v4714_v46  ;;  %v6200_v49 = vpop.f32.mrf.mxu3 }
 0x2ad   : > { %v2782_v7 = vmax.f32 %v2750_v56, 0.0 }
 0x2af   : > { %v2812_v4 = vmax.f32 %v2780_v25, %v2782_v7  ;;  %v6203_v21 = vpop.f32.mrf.mxu1 }
 0x2b0   : > { %v2627_v3 = vpop.f32.mrf.mxu0 }
 0x2b1   : > { %2829 = vst.msk [vmem:[#allocation2 + $0x8] sm:$0xff] %vm2827_vm1, %v2812_v4  ;;  %v6206_v56 = vpop.f32.mrf.mxu2  ;;  %v2715_v7 = vadd.f32 %v2627_v3, %v5946_v38 }
 0x2b3   : > { %4748 = vmatmul.msk.f32.gmra.mxu0 %vm397_vm0, %v4715_v30  ;;  %v6210_v25 = vpop.f32.mrf.mxu3  ;;  %v2751_v30 = vadd.f32 %v6158_v48, %v2715_v7 }
 0x2b5   : > { %v2783_v38 = vmax.f32 %v2751_v30, 0.0 }
 0x2b7   : > { %v6216_v34 = vpop.f32.mrf.mxu1 }
 0x2b8   : > { %v2844_v53 = vld [vmem:[#allocation2] ss:$2 sm:$0xff]  ;;  %v2860_v46 = vld [vmem:[#allocation2 + $0x1] ss:$2 sm:$0xff]  ;;  %v2630_v19 = vpop.f32.mrf.mxu0 }
 0x2b9   : > { %v2875_v59 = vmax.f32 %v2844_v53, %v2860_v46  ;;  %v6228_v3 = vpop.f32.mrf.mxu2 }
 0x2bb   : > { %4749 = vmatmul.msk.f32.gmra.mxu0 %vm397_vm0, %v4716_v55  ;;  %2905 = vst.msk [vmem:[#allocation3 + $0x11] sm:$0xff] %vm2827_vm1, %v2875_v59 }
 0x2bf   : > { %v6243_v30 = vpop.f32.mrf.mxu1 }
 0x2c0   : > { %v2633_v4 = vpop.f32.mrf.mxu0 }
 0x2c1   : > { %v2717_v14 = vadd.f32 %v2633_v4, %v5970_v50  ;;  %v2716_v50 = vadd.f32 %v2630_v19, %v5957_v43  ;;  %v6235_v4 = vpop.f32.mrf.mxu3 }
 0x2c2   : > { %v6218_v53 = vld [vmem:[#allocation3 + $0x11] sm:$0xff] }
 0x2c3   : > { %7170 = vst [vmem:[#allocation14_spill] sm:$0xff] %v6218_v53  ;;  %v6220_v46 = vld [vmem:[#allocation3 + $0x10] sm:$0xff]  ;;  %v2753_v59 = vadd.f32 %v6158_v48, %v2717_v14  ;;  %4750 = vmatmul.msk.f32.gmra.mxu0 %vm397_vm0, %v4717_v39  ;;  %4763 = vmatmul.msk.f32.gmra.mxu1 %vm2827_vm1, %v6218_v53  ;;  %v2752_v53 = vadd.f32 %v6158_v48, %v2716_v50 }
 0x2c4   : > { %7171 = vst [vmem:[#allocation17_spill] sm:$0xff] %v6220_v46  ;;  %v6222_v55 = vld [vmem:[#allocation3 + $0x12] sm:$0xff]  ;;  %4771 = vmatmul.msk.f32.gmra.mxu2 %vm2827_vm1, %v6220_v46 }
 0x2c5   : > { %7172 = vst [vmem:[#allocation20_spill] sm:$0xff] %v6222_v55  ;;  %4781 = vmatmul.msk.f32.gmra.mxu3 %vm2827_vm1, %v6222_v55  ;;  %v2785_v7 = vmax.f32 %v2753_v59, 0.0  ;;  %v2784_v43 = vmax.f32 %v2752_v53, 0.0  ;;  %v6245_v59 = vpop.f32.mrf.mxu2  ;;  %v4719_v50 = vld [vmem:[%s5154_s23 + $0x152] sm:$0xff] }
 0x2c7   : > { %v2813_v14 = vmax.f32 %v2783_v38, %v2785_v7 }
 0x2c8   : > { %v2636_v39 = vpop.f32.mrf.mxu0 }
 0x2c9   : > { %2830 = vst.msk [vmem:[#allocation2 + $0x10] sm:$0xff] %vm2827_vm1, %v2813_v14  ;;  %v2718_v58 = vadd.f32 %v2636_v39, %v5982_v23  ;;  %v6247_v7 = vpop.f32.mrf.mxu3  ;;  %v7173_v23 = vld [vmem:[#allocation42_spill] sm:$0xff] }
 0x2cb   : > { %v2754_v46 = vadd.f32 %v6158_v48, %v2718_v58  ;;  %4751 = vmatmul.msk.f32.gmra.mxu0 %vm397_vm0, %v4718_v8  ;;  %v1618_v58 = vadd.f32 %v5959_v18, %v7173_v23  ;;  %v6254_v8 = vpop.f32.mrf.mxu1 }
 0x2cd   : > { %v2786_v19 = vmax.f32 %v2754_v46, 0.0  ;;  %v1893_v53 = vadd.f32 %v6137_v6, %v1618_v58  ;;  %v6257_v14 = vpop.f32.mrf.mxu2  ;;  %v7175_v6 = vld [vmem:[#allocation45_spill] sm:$0xff] }
 0x2ce   : > { %v1619_v58 = vadd.f32 %v5972_v33, %v7175_v6 }
 0x2cf   : > { %v2814_v38 = vmax.f32 %v2784_v43, %v2786_v19  ;;  %v4720_v19 = vld [vmem:[%s5154_s23 + $0x15a] sm:$0xff]  ;;  %v2169_v10 = vadd.f32 %v6151_v45, %v1893_v53 }
 0x2d0   : > { %v2639_v55 = vpop.f32.mrf.mxu0  ;;  %v1894_v53 = vadd.f32 %v6177_v42, %v1619_v58 }
 0x2d1   : > { %2831 = vst.msk [vmem:[#allocation2 + $0x18] sm:$0xff] %vm2827_vm1, %v2814_v38  ;;  %v1620_v38 = vadd.f32 %v5984_v9, %v7174_v28  ;;  %v6263_v40 = vpop.f32.mrf.mxu3  ;;  %v2444_v18 = vadd.f32 %v6163_v37, %v2169_v10  ;;  %v4721_v10 = vld [vmem:[%s5154_s23 + $0x16a] sm:$0xff] }
 0x2d2   : > { %v2170_v37 = vadd.f32 %v6182_v29, %v1894_v53 }
 0x2d3   : > { %4752 = vmatmul.msk.f32.gmra.mxu0 %vm397_vm0, %v4719_v50  ;;  %v1895_v23 = vadd.f32 %v6194_v32, %v1620_v38  ;;  %v2719_v45 = vadd.f32 %v2639_v55, %v2444_v18  ;;  %v6274_v9 = vpop.f32.mrf.mxu1  ;;  %v7176_v32 = vld [vmem:[#allocation52_spill] sm:$0xff] }
 0x2d5   : > { %v2171_v20 = vadd.f32 %v6196_v52, %v1895_v23  ;;  %v6281_v33 = vpop.f32.mrf.mxu2 }
 0x2d7   : > { %v2446_v28 = vadd.f32 %v6200_v49, %v2171_v20  ;;  %v2445_v20 = vadd.f32 %v6186_v51, %v2170_v37 }
 0x2d8   : > { %v2846_v46 = vld [vmem:[#allocation2 + $0x10] ss:$2 sm:$0xff]  ;;  %v2862_v39 = vld [vmem:[#allocation2 + $0x11] ss:$2 sm:$0xff]  ;;  %v2642_v43 = vpop.f32.mrf.mxu0 }
 0x2d9   : > { %v2876_v50 = vmax.f32 %v2846_v46, %v2862_v39  ;;  %v1621_v39 = vadd.f32 %v5994_v57, %v7176_v32  ;;  %v6295_v57 = vpop.f32.mrf.mxu3  ;;  %v2720_v18 = vadd.f32 %v2642_v43, %v2445_v20 }
 0x2db   : > { %2906 = vst.msk [vmem:[#allocation3 + $0x21] sm:$0xff] %vm2827_vm1, %v2876_v50  ;;  %4753 = vmatmul.msk.f32.gmra.mxu0 %vm397_vm0, %v4720_v19  ;;  %v2755_v19 = vadd.f32 %v6158_v48, %v2719_v45  ;;  %v1896_v49 = vadd.f32 %v6203_v21, %v1621_v39  ;;  %v4722_v45 = vld [vmem:[%s5154_s23 + $0x172] sm:$0xff]  ;;  %v2756_v53 = vadd.f32 %v6158_v48, %v2720_v18 }
 0x2dd   : > { %v2172_v50 = vadd.f32 %v6206_v56, %v1896_v49  ;;  %v2787_v51 = vmax.f32 %v2755_v19, 0.0  ;;  %v6310_v56 = vpop.f32.mrf.mxu2  ;;  %v2788_v43 = vmax.f32 %v2756_v53, 0.0 }
 0x2df   : > { %v2447_v23 = vadd.f32 %v6210_v25, %v2172_v50 }
 0x2e0   : > { %v2645_v46 = vpop.f32.mrf.mxu0 }
 0x2e1   : > { %v2721_v38 = vadd.f32 %v2645_v46, %v2446_v28  ;;  %v6306_v46 = vpop.f32.mrf.mxu1  ;;  %v6312_v32 = vpop.f32.mrf.mxu3 }
 0x2e2   : > { %v6283_v52 = vld [vmem:[#allocation3 + $0x21] sm:$0xff] }
 0x2e3   : > { %v6285_v55 = vld [vmem:[#allocation3 + $0x20] sm:$0xff]  ;;  %v2757_v29 = vadd.f32 %v6158_v48, %v2721_v38  ;;  %4754 = vmatmul.msk.f32.gmra.mxu0 %vm397_vm0, %v4721_v10  ;;  %4764 = vmatmul.msk.f32.gmra.mxu1 %vm2827_vm1, %v6283_v52 }
 0x2e4   : > { %v6287_v42 = vld [vmem:[#allocation3 + $0x22] sm:$0xff]  ;;  %4772 = vmatmul.msk.f32.gmra.mxu2 %vm2827_vm1, %v6285_v55  ;;  %v7177_v38 = vld [vmem:[#allocation55_spill] sm:$0xff] }
 0x2e5   : > { %4782 = vmatmul.msk.f32.gmra.mxu3 %vm2827_vm1, %v6287_v42  ;;  %v2789_v21 = vmax.f32 %v2757_v29, 0.0  ;;  %v1622_v20 = vadd.f32 %v6004_v24, %v7177_v38  ;;  %v6321_v49 = vpop.f32.mrf.mxu2  ;;  %v1625_v38 = vadd.f32 %v6032_v11, %v5729_v62 }
 0x2e7   : > { %v2815_v6 = vmax.f32 %v2787_v51, %v2789_v21  ;;  %v1897_v29 = vadd.f32 %v6216_v34, %v1622_v20  ;;  %v7179_v34 = vld [vmem:[#allocation58_spill] sm:$0xff] }
 0x2e8   : > { %v2648_v58 = vpop.f32.mrf.mxu0  ;;  %v1623_v53 = vadd.f32 %v6014_v0, %v7179_v34 }
 0x2e9   : > { %2832 = vst.msk [vmem:[#allocation2 + $0x20] sm:$0xff] %vm2827_vm1, %v2815_v6  ;;  %v2722_v28 = vadd.f32 %v2648_v58, %v2447_v23  ;;  %v6317_v19 = vpop.f32.mrf.mxu1  ;;  %v6324_v50 = vpop.f32.mrf.mxu3  ;;  %v2173_v23 = vadd.f32 %v6228_v3, %v1897_v29  ;;  %v7178_v6 = vld [vmem:[#allocation59_spill] sm:$0xff] }
 0x2eb   : > { %v2758_v10 = vadd.f32 %v6158_v48, %v2722_v28  ;;  %4755 = vmatmul.msk.f32.gmra.mxu0 %vm397_vm0, %v4722_v45  ;;  %v2448_v45 = vadd.f32 %v6235_v4, %v2173_v23 }
 0x2ed   : > { %v2790_v37 = vmax.f32 %v2758_v10, 0.0 }
 0x2ef   : > { %v2816_v25 = vmax.f32 %v2788_v43, %v2790_v37  ;;  %v1898_v43 = vadd.f32 %v6243_v30, %v1623_v53  ;;  %v2119_v37 = vpop.f32.mrf.mxu2  ;;  %v1900_v30 = vadd.f32 %v6274_v9, %v1625_v38 }
 0x2f0   : > { %v2651_v39 = vpop.f32.mrf.mxu0 }
 0x2f1   : > { %2833 = vst.msk [vmem:[#allocation2 + $0x28] sm:$0xff] %vm2827_vm1, %v2816_v25  ;;  %v2723_v10 = vadd.f32 %v2651_v39, %v2448_v45  ;;  %v1843_v3 = vpop.f32.mrf.mxu1  ;;  %v4725_v25 = vld [vmem:[%s5154_s23 + $0x19a] sm:$0xff]  ;;  %v2394_v0 = vpop.f32.mrf.mxu3  ;;  %v2176_v62 = vadd.f32 %v6281_v33, %v1900_v30 }
 0x2f3   : > { %4756 = vmatmul.msk.f32.gmra.mxu0 %vm397_vm0, %v6036_v41  ;;  %v1624_v41 = vadd.f32 %v6023_v26, %v7178_v6  ;;  %v2451_v9 = vadd.f32 %v6295_v57, %v2176_v62 }
 0x2f5   : > { %v1899_v24 = vadd.f32 %v6254_v8, %v1624_v41  ;;  %v2174_v8 = vadd.f32 %v6245_v59, %v1898_v43  ;;  %v4726_v41 = vld [vmem:[%s5154_s23 + $0x1a2] sm:$0xff]  ;;  %s4212_s23 = sshll.u32 %s4208_s14, 4  ;;  %s4213_s23 = int_to_ptr.hbm [resolvable:$true] %s4212_s23 }
 0x2f6   : > { %s4985_s25 = sshra.s32 %s4213_s23, 4  ;;  %s4986_s25 = int_to_ptr.hbm [resolvable:$true] %s4985_s25 }
 0x2f7   : > { %v2175_v28 = vadd.f32 %v6257_v14, %v1899_v24  ;;  %v2122_v24 = vpop.f32.mrf.mxu2  ;;  %s4987_s26 = scalar_lea.hbm %s4986_s25, 1  ;;  %p4992_p0 = scmp.lt.s32.totalorder %s4986_s25, %s7004_s9 }
 0x2f8   : > { %v2848_v51 = vld [vmem:[#allocation2 + $0x20] ss:$2 sm:$0xff]  ;;  %v2864_v18 = vld [vmem:[#allocation2 + $0x21] ss:$2 sm:$0xff]  ;;  %v2654_v21 = vpop.f32.mrf.mxu0  ;;  %p4988_p11 = scmp.ne.s32.totalorder %s4986_s25, %s4987_s26  ;;  %p4993_p1 = scmp.lt.s32.totalorder %s4991_s29, %s4987_s26 }
 0x2f9   : > { %v2877_v58 = vmax.f32 %v2848_v51, %v2864_v18  ;;  %v2450_v26 = vadd.f32 %v6263_v40, %v2175_v28  ;;  %v2449_v40 = vadd.f32 %v6247_v7, %v2174_v8  ;;  %v1846_v23 = vpop.f32.mrf.mxu1  ;;  %v2397_v33 = vpop.f32.mrf.mxu3 }
 0x2fa   : > { %p4989_p12 = pnand %p4988_p11, %p5124_p5  ;;  %p4994_p2 = por %p4993_p1, %p4992_p0 }
 0x2fb   : > { %2907 = vst.msk [vmem:[#allocation3 + $0x31] sm:$0xff] %vm2827_vm1, %v2877_v58  ;;  %4757 = vmatmul.msk.f32.gmra.mxu0 %vm397_vm0, %v6049_v27  ;;  %v2759_v27 = vadd.f32 %v6158_v48, %v2723_v10  ;;  %v2724_v51 = vadd.f32 %v2654_v21, %v2449_v40  ;;  %v1628_v40 = vadd.f32 %v6063_v47, %v5759_v61 }
 0x2fc   : > { %p4990_p13 = pneg %p4989_p12 }
 0x2fd   : > { %v2791_v11 = vmax.f32 %v2759_v27, 0.0  ;;  %v2760_v58 = vadd.f32 %v6158_v48, %v2724_v51  ;;  %v1903_v62 = vadd.f32 %v1843_v3, %v1628_v40 }
 0x2fe   : > { %p4995_p3 = pnand %p4994_p2, %p4990_p13 }
 0x2ff   : > { %v2792_v53 = vmax.f32 %v2760_v58, 0.0  ;;  %v2125_v43 = vpop.f32.mrf.mxu2 }
 0x300   : > { %v2657_v4 = vpop.f32.mrf.mxu0 }
 0x301   : > { %v2725_v20 = vadd.f32 %v2657_v4, %v2450_v26  ;;  %v1849_v57 = vpop.f32.mrf.mxu1  ;;  %v1626_v26 = vadd.f32 %v6044_v12, %v5739_v5  ;;  %v6370_v4 = vpop.f32.mrf.mxu3  ;;  %v1627_v5 = vadd.f32 %v6057_v44, %v5749_v1  ;;  %v2179_v12 = vadd.f32 %v2119_v37, %v1903_v62 }
 0x302   : > { %v6344_v29 = vld [vmem:[#allocation3 + $0x31] sm:$0xff] }
 0x303   : > { %v6346_v14 = vld [vmem:[#allocation3 + $0x30] sm:$0xff]  ;;  %v2761_v59 = vadd.f32 %v6158_v48, %v2725_v20  ;;  %4758 = vmatmul.msk.f32.gmra.mxu0 %vm397_vm0, %v4725_v25  ;;  %4765 = vmatmul.msk.f32.gmra.mxu1 %vm2827_vm1, %v6344_v29  ;;  %v1901_v25 = vadd.f32 %v6306_v46, %v1626_v26 }
 0x304   : > { %v6348_v39 = vld [vmem:[#allocation3 + $0x32] sm:$0xff]  ;;  %4773 = vmatmul.msk.f32.gmra.mxu2 %vm2827_vm1, %v6346_v14 }
 0x305   : > { %4783 = vmatmul.msk.f32.gmra.mxu3 %vm2827_vm1, %v6348_v39  ;;  %v2793_v7 = vmax.f32 %v2761_v59, 0.0  ;;  %v2177_v20 = vadd.f32 %v6310_v56, %v1901_v25  ;;  %v1902_v56 = vadd.f32 %v6317_v19, %v1627_v5 }
 0x307   : > { %v2817_v18 = vmax.f32 %v2791_v11, %v2793_v7  ;;  %v2452_v59 = vadd.f32 %v6312_v32, %v2177_v20  ;;  %v6382_v51 = vpop.f32.mrf.mxu2  ;;  %v2454_v7 = vadd.f32 %v2394_v0, %v2179_v12  ;;  %v2178_v47 = vadd.f32 %v6321_v49, %v1902_v56 }
 0x308   : > { %v2660_v6 = vpop.f32.mrf.mxu0  ;;  %v1629_v32 = vadd.f32 %v6067_v31, %v5769_v16  ;;  %v1630_v20 = vadd.f32 %v6077_v2, %v5779_v60  ;;  %v1632_v12 = vadd.f32 %v6088_v54, %v5799_v22  ;;  %v4809_v60 = vld [vmem:[%s6998_s3 + $0x58] sm:$0xff]  ;;  %v1631_v54 = vadd.f32 %v6084_v35, %v5789_v13 }
 0x309   : > { %2834 = vst.msk [vmem:[#allocation2 + $0x30] sm:$0xff] %vm2827_vm1, %v2817_v18  ;;  %v2726_v45 = vadd.f32 %v2660_v6, %v2451_v9  ;;  %v6378_v11 = vpop.f32.mrf.mxu1  ;;  %v6385_v9 = vpop.f32.mrf.mxu3  ;;  %v2453_v19 = vadd.f32 %v6324_v50, %v2178_v47  ;;  %v4799_v47 = vld [vmem:[%s6998_s3 + $0x48] sm:$0xff]  ;;  %v4789_v2 = vld [vmem:[%s6998_s3 + $0x38] sm:$0xff]  ;;  %3365 = vmatpush.msra.mxu3 %v4809_v60 }
 0x30a   : > { %v1904_v37 = vadd.f32 %v1846_v23, %v1629_v32  ;;  %v1905_v40 = vadd.f32 %v1849_v57, %v1630_v20  ;;  %3281 = vmatpush.msrb.mxu2 %v4799_v47  ;;  %3197 = vmatpush.msrb.mxu1 %v4789_v2  ;;  %v1906_v32 = vadd.f32 %v6378_v11, %v1631_v54 }
 0x30b   : > { %v2762_v34 = vadd.f32 %v6158_v48, %v2726_v45  ;;  %4759 = vmatmul.msk.f32.gmra.mxu0 %vm397_vm0, %v4726_v41 }
 0x30c   : > { %v2180_v16 = vadd.f32 %v2122_v24, %v1904_v37  ;;  %v2181_v5 = vadd.f32 %v2125_v43, %v1905_v40  ;;  %v1633_v37 = vadd.f32 %v6092_v36, %v5809_v15 }
 0x30d   : > { %v2794_v21 = vmax.f32 %v2762_v34, 0.0 }
 0x30e   : > { %v2455_v45 = vadd.f32 %v2397_v33, %v2180_v16 }
 0x30f   : > { %v2818_v28 = vmax.f32 %v2792_v53, %v2794_v21  ;;  %v2131_v50 = vpop.f32.mrf.mxu2 }
 0x310   : > { %v2663_v10 = vpop.f32.mrf.mxu0 }
 0x311   : > { %2835 = vst.msk [vmem:[#allocation2 + $0x38] sm:$0xff] %vm2827_vm1, %v2818_v28  ;;  %v2727_v46 = vadd.f32 %v2663_v10, %v2452_v59  ;;  %v1855_v58 = vpop.f32.mrf.mxu1  ;;  %v2406_v28 = vpop.f32.mrf.mxu3 }
 0x313   : > { %v2763_v3 = vadd.f32 %v6158_v48, %v2727_v46 }
 0x315   : > { %v2795_v31 = vmax.f32 %v2763_v3, 0.0 }
 0x318   : > { %v2850_v8 = vld [vmem:[#allocation2 + $0x30] ss:$2 sm:$0xff]  ;;  %v2866_v38 = vld [vmem:[#allocation2 + $0x31] ss:$2 sm:$0xff]  ;;  %v2666_v27 = vpop.f32.mrf.mxu0 }
 0x319   : > { %v2878_v30 = vmax.f32 %v2850_v8, %v2866_v38  ;;  %v2728_v49 = vadd.f32 %v2666_v27, %v2453_v19  ;;  %v1858_v24 = vpop.f32.mrf.mxu1  ;;  %v2134_v27 = vpop.f32.mrf.mxu2  ;;  %v2182_v19 = vadd.f32 %v6382_v51, %v1906_v32 }
 0x31a   : > { %v2409_v33 = vpop.f32.mrf.mxu3 }
 0x31b   : > { %2908 = vst.msk [vmem:[#allocation3 + $0x41] sm:$0xff] %vm2827_vm1, %v2878_v30  ;;  %v2764_v53 = vadd.f32 %v6158_v48, %v2728_v49  ;;  %v2457_v35 = vadd.f32 %v6385_v9, %v2182_v19 }
 0x31d   : > { %v2796_v26 = vmax.f32 %v2764_v53, 0.0 }
 0x320   : > { %v2669_v61 = vpop.f32.mrf.mxu0 }
 0x321   : > { %v2729_v18 = vadd.f32 %v2669_v61, %v2454_v7  ;;  %v1861_v56 = vpop.f32.mrf.mxu1  ;;  %v2456_v7 = vadd.f32 %v6370_v4, %v2181_v5  ;;  %v1907_v61 = vadd.f32 %v1855_v58, %v1632_v12  ;;  %v2137_v22 = vpop.f32.mrf.mxu2 }
 0x322   : > { %v6391_v6 = vld [vmem:[#allocation3 + $0x41] sm:$0xff]  ;;  %v2412_v4 = vpop.f32.mrf.mxu3 }
 0x323   : > { %v6393_v1 = vld [vmem:[#allocation3 + $0x40] sm:$0xff]  ;;  %v2765_v0 = vadd.f32 %v6158_v48, %v2729_v18  ;;  %4766 = vmatmul.msk.f32.gmra.mxu1 %vm2827_vm1, %v6391_v6  ;;  %v2183_v57 = vadd.f32 %v2131_v50, %v1907_v61 }
 0x324   : > { %v6395_v44 = vld [vmem:[#allocation3 + $0x42] sm:$0xff]  ;;  %4774 = vmatmul.msk.f32.gmra.mxu2 %vm2827_vm1, %v6393_v1 }
 0x325   : > { %4784 = vmatmul.msk.f32.gmra.mxu3 %vm2827_vm1, %v6395_v44  ;;  %v2797_v41 = vmax.f32 %v2765_v0, 0.0  ;;  %v2458_v3 = vadd.f32 %v2406_v28, %v2183_v57  ;;  %v4798_v57 = vld [vmem:[%s6998_s3 + $0x40] sm:$0xff] }
 0x326   : > { %3282 = vmatpush.msrb.mxu2 %v4798_v57 }
 0x327   : > { %v2819_v34 = vmax.f32 %v2795_v31, %v2797_v41  ;;  %v1908_v41 = vadd.f32 %v1858_v24, %v1633_v37 }
 0x328   : > { %v2672_v23 = vpop.f32.mrf.mxu0 }
 0x329   : > { %2836 = vst.msk [vmem:[#allocation2 + $0x40] sm:$0xff] %vm2827_vm1, %v2819_v34  ;;  %v2730_v21 = vadd.f32 %v2672_v23, %v2455_v45  ;;  %v1864_v15 = vpop.f32.mrf.mxu1  ;;  %v2184_v36 = vadd.f32 %v2134_v27, %v1908_v41  ;;  %v2140_v34 = vpop.f32.mrf.mxu2 }
 0x32a   : > { %v2415_v23 = vpop.f32.mrf.mxu3 }
 0x32b   : > { %v2766_v10 = vadd.f32 %v6158_v48, %v2730_v21  ;;  %v2459_v50 = vadd.f32 %v2409_v33, %v2184_v36  ;;  %v1634_v33 = vadd.f32 %v6096_v63, %v5819_v17  ;;  %v4808_v17 = vld [vmem:[%s6998_s3 + $0x50] sm:$0xff] }
 0x32c   : > { %v4788_v63 = vld [vmem:[%s6998_s3 + $0x30] sm:$0xff]  ;;  %3366 = vmatpush.msra.mxu3 %v4808_v17 }
 0x32d   : > { %v2798_v25 = vmax.f32 %v2766_v10, 0.0  ;;  %v1909_v40 = vadd.f32 %v1861_v56, %v1634_v33  ;;  %3198 = vmatpush.msrb.mxu1 %v4788_v63 }
 0x32f   : > { %v2820_v8 = vmax.f32 %v2796_v26, %v2798_v25  ;;  %v2185_v12 = vadd.f32 %v2137_v22, %v1909_v40  ;;  %v7182_v22 = vld [vmem:[#allocation60_spill] sm:$0xff] }
 0x330   : > { %v2675_v38 = vpop.f32.mrf.mxu0 }
 0x331   : > { %2837 = vst.msk [vmem:[#allocation2 + $0x48] sm:$0xff] %vm2827_vm1, %v2820_v8  ;;  %v2731_v43 = vadd.f32 %v2675_v38, %v2456_v7  ;;  %v1867_v8 = vpop.f32.mrf.mxu1  ;;  %v2143_v38 = vpop.f32.mrf.mxu2  ;;  %v7181_v7 = vld [vmem:[#allocation8_spill] sm:$0xff]  ;;  %v2460_v2 = vadd.f32 %v2412_v4, %v2185_v12 }
 0x332   : > { %v2418_v20 = vpop.f32.mrf.mxu3 }
 0x333   : > { %v2767_v0 = vadd.f32 %v6158_v48, %v2731_v43  ;;  %v7183_v43 = vld [vmem:[#allocation12_spill] sm:$0xff] }
 0x334   : > { %v1635_v4 = vadd.f32 %v7183_v43, %v7182_v22  ;;  %v7189_v22 = vld [vmem:[#allocation16_spill] sm:$0xff] }
 0x335   : > { %v2799_v51 = vmax.f32 %v2767_v0, 0.0 }
 0x338   : > { %v2852_v30 = vld [vmem:[#allocation2 + $0x40] ss:$2 sm:$0xff]  ;;  %v2868_v59 = vld [vmem:[#allocation2 + $0x41] ss:$2 sm:$0xff]  ;;  %v2678_v62 = vpop.f32.mrf.mxu0 }
 0x339   : > { %v2879_v46 = vmax.f32 %v2852_v30, %v2868_v59  ;;  %v2732_v58 = vadd.f32 %v2678_v62, %v2457_v35  ;;  %v1870_v30 = vpop.f32.mrf.mxu1  ;;  %v2146_v60 = vpop.f32.mrf.mxu2  ;;  %v7185_v35 = vld [vmem:[#allocation15_spill] sm:$0xff] }
 0x33a   : > { %v2421_v56 = vpop.f32.mrf.mxu3 }
 0x33b   : > { %2909 = vst.msk [vmem:[#allocation3 + $0x51] sm:$0xff] %vm2827_vm1, %v2879_v46  ;;  %v2768_v21 = vadd.f32 %v6158_v48, %v2732_v58  ;;  %v7180_v46 = vld [vmem:[#allocation61_spill] sm:$0xff] }
 0x33c   : > { %v1636_v61 = vadd.f32 %v7181_v7, %v7180_v46  ;;  %v7187_v7 = vld [vmem:[#allocation10_spill] sm:$0xff] }
 0x33d   : > { %v2800_v26 = vmax.f32 %v2768_v21, 0.0 }
 0x33e   : > { %v1911_v54 = vadd.f32 %v1867_v8, %v1636_v61 }
 0x340   : > { %v2681_v18 = vpop.f32.mrf.mxu0  ;;  %v2187_v32 = vadd.f32 %v2143_v38, %v1911_v54 }
 0x341   : > { %v2733_v16 = vadd.f32 %v2681_v18, %v2458_v3  ;;  %v1910_v18 = vadd.f32 %v1864_v15, %v1635_v4 }
 0x342   : > { %v6431_v31 = vld [vmem:[#allocation3 + $0x51] sm:$0xff]  ;;  %v2462_v19 = vadd.f32 %v2418_v20, %v2187_v32 }
 0x343   : > { %v6433_v49 = vld [vmem:[#allocation3 + $0x50] sm:$0xff]  ;;  %v2769_v11 = vadd.f32 %v6158_v48, %v2733_v16  ;;  %4767 = vmatmul.msk.f32.gmra.mxu1 %vm2827_vm1, %v6431_v31  ;;  %v2186_v0 = vadd.f32 %v2140_v34, %v1910_v18  ;;  %v2149_v34 = vpop.f32.mrf.mxu2 }
 0x344   : > { %v6435_v13 = vld [vmem:[#allocation3 + $0x52] sm:$0xff]  ;;  %4775 = vmatmul.msk.f32.gmra.mxu2 %vm2827_vm1, %v6433_v49 }
 0x345   : > { %4785 = vmatmul.msk.f32.gmra.mxu3 %vm2827_vm1, %v6435_v13  ;;  %v2801_v45 = vmax.f32 %v2769_v11, 0.0  ;;  %v7184_v16 = vld [vmem:[#allocation62_spill] sm:$0xff] }
 0x346   : > { %v1637_v41 = vadd.f32 %v7185_v35, %v7184_v16  ;;  %v7190_v16 = vld [vmem:[#allocation64_spill] sm:$0xff]  ;;  %v7191_v35 = vld [vmem:[#allocation13_spill] sm:$0xff] }
 0x347   : > { %v2821_v9 = vmax.f32 %v2799_v51, %v2801_v45  ;;  %v1873_v51 = vpop.f32.mrf.mxu1 }
 0x348   : > { %v2684_v53 = vpop.f32.mrf.mxu0 }
 0x349   : > { %2838 = vst.msk [vmem:[#allocation2 + $0x50] sm:$0xff] %vm2827_vm1, %v2821_v9  ;;  %v2734_v28 = vadd.f32 %v2684_v53, %v2459_v50  ;;  %v2461_v9 = vadd.f32 %v2415_v23, %v2186_v0  ;;  %v1912_v53 = vadd.f32 %v1870_v30, %v1637_v41  ;;  %v4819_v0 = vld [vmem:[%s6998_s3 + $0x68] sm:$0xff]  ;;  %v1639_v41 = vadd.f32 %v7191_v35, %v7190_v16 }
 0x34a   : > { %3450 = vmatpush.msra.mxu1 %v4819_v0 }
 0x34b   : > { %v2770_v10 = vadd.f32 %v6158_v48, %v2734_v28  ;;  %v2188_v21 = vadd.f32 %v2146_v60, %v1912_v53 }
 0x34d   : > { %v2802_v25 = vmax.f32 %v2770_v10, 0.0  ;;  %v2463_v8 = vadd.f32 %v2421_v56, %v2188_v21  ;;  %v7188_v56 = vld [vmem:[#allocation11_spill] sm:$0xff]  ;;  %v7192_v21 = vld [vmem:[#allocation9_spill] sm:$0xff] }
 0x34e   : > { %v1640_v43 = vadd.f32 %v7189_v22, %v7188_v56 }
 0x34f   : > { %v2822_v24 = vmax.f32 %v2800_v26, %v2802_v25  ;;  %v2424_v25 = vpop.f32.mrf.mxu3  ;;  %v1876_v33 = vpop.f32.mrf.mxu1 }
 0x350   : > { %v2687_v27 = vpop.f32.mrf.mxu0 }
 0x351   : > { %2839 = vst.msk [vmem:[#allocation2 + $0x58] sm:$0xff] %vm2827_vm1, %v2822_v24  ;;  %v2735_v3 = vadd.f32 %v2687_v27, %v2460_v2 }
 0x353   : > { %v2771_v11 = vadd.f32 %v6158_v48, %v2735_v3 }
 0x355   : > { %v2803_v28 = vmax.f32 %v2771_v11, 0.0 }
 0x357   : > { %v2427_v12 = vpop.f32.mrf.mxu3 }
 0x358   : > { %v2854_v59 = vld [vmem:[#allocation2 + $0x50] ss:$2 sm:$0xff]  ;;  %v2870_v62 = vld [vmem:[#allocation2 + $0x51] ss:$2 sm:$0xff]  ;;  %v2690_v5 = vpop.f32.mrf.mxu0 }
 0x359   : > { %v2880_v47 = vmax.f32 %v2854_v59, %v2870_v62  ;;  %v2736_v10 = vadd.f32 %v2690_v5, %v2461_v9  ;;  %v2152_v59 = vpop.f32.mrf.mxu2  ;;  %v7186_v5 = vld [vmem:[#allocation63_spill] sm:$0xff] }
 0x35a   : > { %v1638_v61 = vadd.f32 %v7187_v7, %v7186_v5 }
 0x35b   : > { %2910 = vst.msk [vmem:[#allocation3 + $0x61] sm:$0xff] %vm2827_vm1, %v2880_v47  ;;  %v2772_v38 = vadd.f32 %v6158_v48, %v2736_v10  ;;  %v1879_v47 = vpop.f32.mrf.mxu1 }
 0x35c   : > { %v1913_v60 = vadd.f32 %v1873_v51, %v1638_v61  ;;  %v1915_v18 = vadd.f32 %v1879_v47, %v1640_v43  ;;  %v1914_v51 = vadd.f32 %v1876_v33, %v1639_v41 }
 0x35d   : > { %v2804_v40 = vmax.f32 %v2772_v38, 0.0 }
 0x35e   : > { %v2189_v63 = vadd.f32 %v2149_v34, %v1913_v60  ;;  %v2190_v34 = vadd.f32 %v2152_v59, %v1914_v51 }
 0x35f   : > { %v2430_v32 = vpop.f32.mrf.mxu3 }
 0x360   : > { %v2693_v37 = vpop.f32.mrf.mxu0  ;;  %v2464_v3 = vadd.f32 %v2424_v25, %v2189_v63  ;;  %v4838_v63 = vld [vmem:[%s6998_s3 + $0x80] sm:$0xff] }
 0x361   : > { %v2737_v36 = vadd.f32 %v2693_v37, %v2462_v19  ;;  %v2155_v2 = vpop.f32.mrf.mxu2  ;;  %v4829_v19 = vld [vmem:[%s6998_s3 + $0x78] sm:$0xff]  ;;  %v4839_v37 = vld [vmem:[%s6998_s3 + $0x88] sm:$0xff] }
 0x362   : > { %v6468_v58 = vld [vmem:[#allocation3 + $0x61] sm:$0xff]  ;;  %3534 = vmatpush.msra.mxu2 %v4829_v19  ;;  %3618 = vmatpush.msrb.mxu3 %v4839_v37  ;;  %v2191_v11 = vadd.f32 %v2155_v2, %v1915_v18  ;;  %v7194_v2 = vld [vmem:[#allocation17_spill] sm:$0xff] }
 0x363   : > { %v6470_v45 = vld [vmem:[#allocation3 + $0x60] sm:$0xff]  ;;  %v2773_v15 = vadd.f32 %v6158_v48, %v2737_v36  ;;  %4768 = vmatmul.msk.f32.gmra.mxu1 %vm2827_vm1, %v6468_v58  ;;  %v1882_v53 = vpop.f32.mrf.mxu1 }
 0x364   : > { %v6472_v50 = vld [vmem:[#allocation3 + $0x62] sm:$0xff]  ;;  %4776 = vmatmul.msk.f32.gmra.mxu2 %vm2827_vm1, %v6470_v45  ;;  %v2466_v9 = vadd.f32 %v2430_v32, %v2191_v11  ;;  %3619 = vmatpush.msrb.mxu3 %v4838_v63  ;;  %v4857_v63 = vld [vmem:[%s7000_s5 + $0x58] sm:$0xff] }
 0x365   : > { %4786 = vmatmul.msk.f32.gmra.mxu3 %vm2827_vm1, %v6472_v50  ;;  %v2805_v26 = vmax.f32 %v2773_v15, 0.0 }
 0x367   : > { %v2823_v23 = vmax.f32 %v2803_v28, %v2805_v26  ;;  %v7193_v28 = vld [vmem:[#allocation19_spill] sm:$0xff] }
 0x368   : > { %v2696_v24 = vpop.f32.mrf.mxu0  ;;  %v1641_v10 = vadd.f32 %v7193_v28, %v7192_v21 }
 0x369   : > { %2840 = vst.msk [vmem:[#allocation2 + $0x60] sm:$0xff] %vm2827_vm1, %v2823_v23  ;;  %v2738_v27 = vadd.f32 %v2696_v24, %v2463_v8  ;;  %v2158_v8 = vpop.f32.mrf.mxu2 }
 0x36b   : > { %v2774_v20 = vadd.f32 %v6158_v48, %v2738_v27  ;;  %v2465_v27 = vadd.f32 %v2427_v12, %v2190_v34  ;;  %v2975_v18 = vpop.f32.mrf.mxu1 }
 0x36d   : > { %v2806_v30 = vmax.f32 %v2774_v20, 0.0  ;;  %v1916_v20 = vadd.f32 %v1882_v53, %v1641_v10 }
 0x36f   : > { %v2824_v62 = vmax.f32 %v2804_v40, %v2806_v30  ;;  %v2433_v40 = vpop.f32.mrf.mxu3  ;;  %v2192_v30 = vadd.f32 %v2158_v8, %v1916_v20 }
 0x370   : > { %v2699_v46 = vpop.f32.mrf.mxu0 }
 0x371   : > { %2841 = vst.msk [vmem:[#allocation2 + $0x68] sm:$0xff] %vm2827_vm1, %v2824_v62  ;;  %v2739_v36 = vadd.f32 %v2699_v46, %v2464_v3  ;;  %v2467_v5 = vadd.f32 %v2433_v40, %v2192_v30  ;;  %v3040_v19 = vpop.f32.mrf.mxu2 }
 0x373   : > { %v2775_v26 = vadd.f32 %v6158_v48, %v2739_v36  ;;  %v6575_v0 = vpop.f32.mrf.mxu1 }
 0x375   : > { %v2807_v59 = vmax.f32 %v2775_v26, 0.0 }
 0x377   : > { %v6567_v37 = vpop.f32.mrf.mxu3 }
 0x378   : > { %v2856_v54 = vld [vmem:[#allocation2 + $0x60] ss:$2 sm:$0xff]  ;;  %v2872_v57 = vld [vmem:[#allocation2 + $0x61] ss:$2 sm:$0xff]  ;;  %v2702_v17 = vpop.f32.mrf.mxu0 }
 0x379   : > { %v2881_v4 = vmax.f32 %v2856_v54, %v2872_v57  ;;  %v2740_v62 = vadd.f32 %v2702_v17, %v2465_v27  ;;  %v7195_v54 = vld [vmem:[#allocation14_spill] sm:$0xff]  ;;  %v7196_v57 = vld [vmem:[#allocation20_spill] sm:$0xff]  ;;  %v6577_v16 = vpop.f32.mrf.mxu2 }
 0x37a   : > { %v4828_v17 = vld [vmem:[%s6998_s3 + $0x70] sm:$0xff] }
 0x37b   : > { %2911 = vst.msk [vmem:[#allocation3 + $0x71] sm:$0xff] %vm2827_vm1, %v2881_v4  ;;  %v2776_v61 = vadd.f32 %v6158_v48, %v2740_v62  ;;  %3535 = vmatpush.msra.mxu2 %v4828_v17  ;;  %v2981_v51 = vpop.f32.mrf.mxu1  ;;  %v4851_v17 = vld [vmem:[%s7000_s5 + $0x38] sm:$0xff] }
 0x37d   : > { %v2808_v56 = vmax.f32 %v2776_v61, 0.0 }
 0x37f   : > { %v6579_v35 = vpop.f32.mrf.mxu3 }
 0x380   : > { %v2705_v15 = vpop.f32.mrf.mxu0 }
 0x381   : > { %v2741_v25 = vadd.f32 %v2705_v15, %v2466_v9  ;;  %v3046_v9 = vpop.f32.mrf.mxu2 }
 0x382   : > { %v6504_v23 = vld [vmem:[#allocation3 + $0x71] sm:$0xff]  ;;  %v3047_v62 = vadd.f32 %v3046_v9, %v2981_v51 }
 0x383   : > { %v6506_v24 = vld [vmem:[#allocation3 + $0x70] sm:$0xff]  ;;  %v2777_v33 = vadd.f32 %v6158_v48, %v2741_v25  ;;  %4769 = vmatmul.msk.f32.gmra.mxu1 %vm2827_vm1, %v6504_v23  ;;  %v6590_v15 = vpop.f32.mrf.mxu1 }
 0x384   : > { %v6508_v38 = vld [vmem:[#allocation3 + $0x72] sm:$0xff]  ;;  %4777 = vmatmul.msk.f32.gmra.mxu2 %vm2827_vm1, %v6506_v24 }
 0x385   : > { %4787 = vmatmul.msk.f32.gmra.mxu3 %vm2827_vm1, %v6508_v38  ;;  %v2809_v46 = vmax.f32 %v2777_v33, 0.0  ;;  %v4856_v51 = vld [vmem:[%s7000_s5 + $0x50] sm:$0xff] }
 0x387   : > { %v2825_v7 = vmax.f32 %v2807_v59, %v2809_v46  ;;  %v3122_v53 = vpop.f32.mrf.mxu3 }
 0x388   : > { %v2708_v12 = vpop.f32.mrf.mxu0 }
 0x389   : > { %2842 = vst.msk [vmem:[#allocation2 + $0x70] sm:$0xff] %vm2827_vm1, %v2825_v7  ;;  %v2742_v47 = vadd.f32 %v2708_v12, %v2467_v5  ;;  %v6592_v34 = vpop.f32.mrf.mxu2  ;;  %v3704_v7 = vld [vmem:[%s7000_s5 + $0x18] sm:$0xff]  ;;  %v3142_v12 = vadd.f32 %v3122_v53, %v3047_v62  ;;  %v4861_v62 = vld [vmem:[%s7000_s5 + $0x70] sm:$0xff] }
 0x38b   : > { %v2778_v60 = vadd.f32 %v6158_v48, %v2742_v47  ;;  %4790 = vmatmul.msk.f32.vlgmr.msrb.gmra.mxu1 %vm2827_vm1, %v7194_v2  ;;  %v4818_v48 = vld [vmem:[%s6998_s3 + $0x60] sm:$0xff] }
 0x38c   : > { %4800 = vmatmul.msk.f32.vlgmr.msrb.gmra.mxu2 %vm2827_vm1, %v7195_v54  ;;  %3451 = vmatpush.msra.mxu1 %v4818_v48 }
 0x38d   : > { %4810 = vmatmul.msk.f32.vlgmr.msra.gmra.mxu3 %vm2827_vm1, %v7196_v57  ;;  %v2810_v22 = vmax.f32 %v2778_v60, 0.0  ;;  %3748 = vmatpush.msrb.mxu2 %v3704_v7 }
 0x38e   : > { %3726 = vmatpush.msrb.mxu1 %v4851_v17  ;;  %3776 = vmatpush.msra.mxu3 %v4857_v63  ;;  %v3050_v17 = vadd.f32 %v6592_v34, %v6590_v15  ;;  %v4864_v15 = vld [vmem:[%s7000_s5 + $0x80] sm:$0xff]  ;;  %v4870_v34 = vld [vmem:[%s7000_s5 + $0xa8] sm:$0xff] }
 0x38f   : > { %v2826_v43 = vmax.f32 %v2808_v56, %v2810_v22  ;;  %v6594_v21 = vpop.f32.mrf.mxu3 }
 0x390   : > { %3777 = vmatpush.msra.mxu3 %v4856_v51 }
 0x391   : > { %2843 = vst.msk [vmem:[#allocation2 + $0x78] sm:$0xff] %vm2827_vm1, %v2826_v43 }
 0x393   : > { %4791 = vmatmul.msk.f32.gmra.mxu1 %vm2827_vm1, %v6285_v55 }
 0x394   : > { %4801 = vmatmul.msk.f32.gmra.mxu2 %vm2827_vm1, %v6283_v52 }
 0x395   : > { %4811 = vmatmul.msk.f32.gmra.mxu3 %vm2827_vm1, %v6287_v42 }
 0x398   : > { %v2858_v4 = vld [vmem:[#allocation2 + $0x70] ss:$2 sm:$0xff]  ;;  %v2874_v32 = vld [vmem:[#allocation2 + $0x71] ss:$2 sm:$0xff] }
 0x399   : > { %v2882_v3 = vmax.f32 %v2858_v4, %v2874_v32  ;;  %v3703_v4 = vld [vmem:[%s7000_s5 + $0x10] sm:$0xff] }
 0x39a   : > { %3749 = vmatpush.msrb.mxu2 %v3703_v4  ;;  %v4865_v4 = vld [vmem:[%s7000_s5 + $0x88] sm:$0xff] }
 0x39b   : > { %2912 = vst.msk [vmem:[#allocation3 + $0x81] sm:$0xff] %vm2827_vm1, %v2882_v3  ;;  %4792 = vmatmul.msk.f32.gmra.mxu1 %vm2827_vm1, %v6346_v14 }
 0x39c   : > { %4802 = vmatmul.msk.f32.gmra.mxu2 %vm2827_vm1, %v6344_v29 }
 0x39d   : > { %4812 = vmatmul.msk.f32.gmra.mxu3 %vm2827_vm1, %v6348_v39 }
 0x3a2   : > { %v3155_v41 = vld [vmem:[#allocation3 + $0x80] sm:$0xff] }
 0x3a3   : > { %4793 = vmatmul.msk.f32.gmra.mxu1 %vm2827_vm1, %v6393_v1  ;;  %v3239_v11 = vld [vmem:[#allocation3 + $0x81] sm:$0xff] }
 0x3a4   : > { %4803 = vmatmul.msk.f32.gmra.mxu2 %vm2827_vm1, %v6391_v6  ;;  %v3323_v36 = vld [vmem:[#allocation3 + $0x82] sm:$0xff] }
 0x3a5   : > { %4813 = vmatmul.msk.f32.gmra.mxu3 %vm2827_vm1, %v6395_v44 }
 0x3ab   : > { %4794 = vmatmul.msk.f32.gmra.mxu1 %vm2827_vm1, %v6433_v49 }
 0x3ac   : > { %4804 = vmatmul.msk.f32.gmra.mxu2 %vm2827_vm1, %v6431_v31 }
 0x3ad   : > { %4814 = vmatmul.msk.f32.gmra.mxu3 %vm2827_vm1, %v6435_v13 }
 0x3b3   : > { %4795 = vmatmul.msk.f32.gmra.mxu1 %vm2827_vm1, %v6470_v45 }
 0x3b4   : > { %4805 = vmatmul.msk.f32.gmra.mxu2 %vm2827_vm1, %v6468_v58 }
 0x3b5   : > { %4815 = vmatmul.msk.f32.gmra.mxu3 %vm2827_vm1, %v6472_v50 }
 0x3bb   : > { %4796 = vmatmul.msk.f32.gmra.mxu1 %vm2827_vm1, %v6506_v24 }
 0x3bc   : > { %4806 = vmatmul.msk.f32.gmra.mxu2 %vm2827_vm1, %v6504_v23 }
 0x3bd   : > { %4816 = vmatmul.msk.f32.gmra.mxu3 %vm2827_vm1, %v6508_v38 }
 0x3c3   : > { %4797 = vmatmul.msk.f32.gmra.mxu1 %vm2827_vm1, %v3155_v41 }
 0x3c4   : > { %4807 = vmatmul.msk.f32.gmra.mxu2 %vm2827_vm1, %v3239_v11 }
 0x3c5   : > { %4817 = vmatmul.msk.f32.gmra.mxu3 %vm2827_vm1, %v3323_v36 }
 0x3cb   : > { %4820 = vmatmul.msk.f32.vlgmr.msra.gmra.mxu1 %vm2827_vm1, %v6285_v55  ;;  %v6602_v55 = vpop.f32.mrf.mxu1 }
 0x3cc   : > { %4830 = vmatmul.msk.f32.vlgmr.msra.gmra.mxu2 %vm2827_vm1, %v6283_v52  ;;  %v6604_v52 = vpop.f32.mrf.mxu2 }
 0x3cd   : > { %4840 = vmatmul.msk.f32.vlgmr.msrb.gmra.mxu3 %vm2827_vm1, %v6287_v42  ;;  %v6606_v42 = vpop.f32.mrf.mxu3  ;;  %v3053_v56 = vadd.f32 %v6604_v52, %v6602_v55 }
 0x3cf   : > { %v3144_v32 = vadd.f32 %v6606_v42, %v3053_v56 }
 0x3d3   : > { %4821 = vmatmul.msk.f32.gmra.mxu1 %vm2827_vm1, %v6346_v14  ;;  %v6614_v14 = vpop.f32.mrf.mxu1 }
 0x3d4   : > { %4831 = vmatmul.msk.f32.gmra.mxu2 %vm2827_vm1, %v6344_v29  ;;  %v6616_v29 = vpop.f32.mrf.mxu2 }
 0x3d5   : > { %4841 = vmatmul.msk.f32.gmra.mxu3 %vm2827_vm1, %v6348_v39  ;;  %v6618_v39 = vpop.f32.mrf.mxu3 }
 0x3db   : > { %4822 = vmatmul.msk.f32.gmra.mxu1 %vm2827_vm1, %v6393_v1 }
 0x3dc   : > { %4832 = vmatmul.msk.f32.gmra.mxu2 %vm2827_vm1, %v6391_v6 }
 0x3dd   : > { %4842 = vmatmul.msk.f32.gmra.mxu3 %vm2827_vm1, %v6395_v44 }
 0x3e0   : > { %v2993_v1 = vpop.f32.mrf.mxu1 }
 0x3e3   : > { %4823 = vmatmul.msk.f32.gmra.mxu1 %vm2827_vm1, %v6433_v49  ;;  %v3408_v49 = vld [vmem:[#allocation3 + $0x90] sm:$0xff] }
 0x3e4   : > { %4833 = vmatmul.msk.f32.gmra.mxu2 %vm2827_vm1, %v6431_v31 }
 0x3e5   : > { %4843 = vmatmul.msk.f32.gmra.mxu3 %vm2827_vm1, %v6435_v13  ;;  %v3492_v13 = vld [vmem:[#allocation3 + $0x91] sm:$0xff] }
 0x3e7   : > { %v3058_v6 = vpop.f32.mrf.mxu2 }
 0x3e8   : > { %v3059_v28 = vadd.f32 %v3058_v6, %v2993_v1  ;;  %v3134_v10 = vpop.f32.mrf.mxu3 }
 0x3ea   : > { %v6626_v44 = vadd.f32 %v3134_v10, %v3059_v28 }
 0x3eb   : > { %4824 = vmatmul.msk.f32.gmra.mxu1 %vm2827_vm1, %v6470_v45 }
 0x3ec   : > { %4834 = vmatmul.msk.f32.gmra.mxu2 %vm2827_vm1, %v6468_v58  ;;  %v3576_v58 = vld [vmem:[#allocation3 + $0x92] sm:$0xff] }
 0x3ed   : > { %4844 = vmatmul.msk.f32.gmra.mxu3 %vm2827_vm1, %v6472_v50  ;;  %v3041_v50 = vadd.f32 %v3040_v19, %v2975_v18 }
 0x3f3   : > { %4825 = vmatmul.msk.f32.gmra.mxu1 %vm2827_vm1, %v6506_v24  ;;  %v3140_v24 = vadd.f32 %v6567_v37, %v3041_v50 }
 0x3f4   : > { %4835 = vmatmul.msk.f32.gmra.mxu2 %vm2827_vm1, %v6504_v23 }
 0x3f5   : > { %4845 = vmatmul.msk.f32.gmra.mxu3 %vm2827_vm1, %v6508_v38 }
 0x3fb   : > { %4826 = vmatmul.msk.f32.gmra.mxu1 %vm2827_vm1, %v3155_v41 }
 0x3fc   : > { %4836 = vmatmul.msk.f32.gmra.mxu2 %vm2827_vm1, %v3239_v11 }
 0x3fd   : > { %4846 = vmatmul.msk.f32.gmra.mxu3 %vm2827_vm1, %v3323_v36  ;;  %v4850_v36 = vld [vmem:[%s7000_s5 + $0x30] sm:$0xff] }
 0x3fe   : > { %3727 = vmatpush.msrb.mxu1 %v4850_v36  ;;  %v4869_v36 = vld [vmem:[%s7000_s5 + $0xa0] sm:$0xff] }
 0x400   : > { %v2996_v31 = vpop.f32.mrf.mxu1 }
 0x403   : > { %4827 = vmatmul.msk.f32.gmra.mxu1 %vm2827_vm1, %v3408_v49  ;;  %v4849_v49 = vld [vmem:[%s7000_s5 + $0x28] sm:$0xff] }
 0x404   : > { %4837 = vmatmul.msk.f32.gmra.mxu2 %vm2827_vm1, %v3492_v13  ;;  %3728 = vmatpush.msrb.mxu1 %v4849_v49 }
 0x405   : > { %4847 = vmatmul.msk.f32.gmra.mxu3 %vm2827_vm1, %v3576_v58  ;;  %v3044_v58 = vadd.f32 %v6577_v16, %v6575_v0  ;;  %v4862_v16 = vld [vmem:[%s7000_s5 + $0x78] sm:$0xff] }
 0x407   : > { %v3061_v45 = vpop.f32.mrf.mxu2 }
 0x408   : > { %v3062_v26 = vadd.f32 %v3061_v45, %v2996_v31  ;;  %v3137_v25 = vpop.f32.mrf.mxu3  ;;  %v3200_v8 = vpop.f32.mrf.mxu1  ;;  %v3702_v31 = vld [vmem:[%s7000_s5 + $0x8] sm:$0xff] }
 0x409   : > { %v3224_v38 = vadd.f32 %v3200_v8, %v3140_v24  ;;  %3750 = vmatpush.msrb.mxu2 %v3702_v31  ;;  %v4848_v8 = vld [vmem:[%s7000_s5 + $0x20] sm:$0xff] }
 0x40a   : > { %v6646_v23 = vadd.f32 %v3137_v25, %v3062_v26  ;;  %v3701_v26 = vld [vmem:[%s7000_s5] sm:$0xff]  ;;  %v3141_v25 = vadd.f32 %v6579_v35, %v3044_v58  ;;  %3729 = vmatpush.msrb.mxu1 %v4848_v8 }
 0x40b   : > { %3751 = vmatpush.msrb.mxu2 %v3701_v26  ;;  %v4854_v24 = vld [vmem:[%s7000_s5 + $0x40] sm:$0xff] }
 0x40c   : > { %3805 = vmatpush.msra.mxu1 %v4862_v16 }
 0x40e   : > { %3806 = vmatpush.msra.mxu1 %v4861_v62  ;;  %v4881_v62 = vld [vmem:[%s7000_s5 + $0xf0] sm:$0xff] }
 0x40f   : > { %v3284_v27 = vpop.f32.mrf.mxu2 }
 0x410   : > { %v3308_v20 = vadd.f32 %v3284_v27, %v3224_v38  ;;  %v3368_v33 = vpop.f32.mrf.mxu3  ;;  %v3203_v40 = vpop.f32.mrf.mxu1 }
 0x411   : > { %v3225_v38 = vadd.f32 %v3203_v40, %v3141_v25  ;;  %v4860_v40 = vld [vmem:[%s7000_s5 + $0x68] sm:$0xff]  ;;  %v3056_v25 = vadd.f32 %v6616_v29, %v6614_v14 }
 0x412   : > { %v6649_v30 = vadd.f32 %v3368_v33, %v3308_v20  ;;  %3807 = vmatpush.msra.mxu1 %v4860_v40 }
 0x417   : > { %v6651_v59 = vpop.f32.mrf.mxu2 }
 0x418   : > { %v6653_v46 = vpop.f32.mrf.mxu3  ;;  %v3206_v5 = vpop.f32.mrf.mxu1  ;;  %v3309_v27 = vadd.f32 %v6651_v59, %v3225_v38  ;;  %v4867_v59 = vld [vmem:[%s7000_s5 + $0x98] sm:$0xff] }
 0x419   : > { %v3226_v61 = vadd.f32 %v3206_v5, %v3142_v12  ;;  %3834 = vmatpush.msra.mxu2 %v4867_v59  ;;  %v4880_v59 = vld [vmem:[%s7000_s5 + $0xe8] sm:$0xff] }
 0x41a   : > { %v3393_v7 = vadd.f32 %v6653_v46, %v3309_v27  ;;  %v4866_v46 = vld [vmem:[%s7000_s5 + $0x90] sm:$0xff] }
 0x41b   : > { %3835 = vmatpush.msra.mxu2 %v4866_v46 }
 0x41d   : > { %3836 = vmatpush.msra.mxu2 %v4865_v4  ;;  %v4884_v4 = vld [vmem:[%s7000_s5 + $0x100] sm:$0xff] }
 0x41f   : > { %v3290_v47 = vpop.f32.mrf.mxu2  ;;  %3837 = vmatpush.msra.mxu2 %v4864_v15 }
 0x420   : > { %v3310_v60 = vadd.f32 %v3290_v47, %v3226_v61  ;;  %v3374_v2 = vpop.f32.mrf.mxu3  ;;  %v6658_v54 = vpop.f32.mrf.mxu1  ;;  %v6743_v61 = vld [vmem:[%s6999_s4] ss:$0 sm:$0xff] }
 0x422   : > { %v6660_v57 = vadd.f32 %v3374_v2, %v3310_v60  ;;  %v4872_v2 = vld [vmem:[%s7000_s5 + $0xb8] sm:$0xff] }
 0x427   : > { %v6668_v48 = vpop.f32.mrf.mxu2 }
 0x428   : > { %v6672_v22 = vpop.f32.mrf.mxu3  ;;  %v3212_v43 = vpop.f32.mrf.mxu1 }
 0x429   : > { %v3228_v3 = vadd.f32 %v3212_v43, %v3144_v32  ;;  %v4871_v32 = vld [vmem:[%s7000_s5 + $0xb0] sm:$0xff] }
 0x42f   : > { %v3296_v18 = vpop.f32.mrf.mxu2 }
 0x430   : > { %v3312_v19 = vadd.f32 %v3296_v18, %v3228_v3  ;;  %v3380_v37 = vpop.f32.mrf.mxu3  ;;  %v6678_v41 = vpop.f32.mrf.mxu1 }
 0x432   : > { %v6680_v11 = vadd.f32 %v3380_v37, %v3312_v19  ;;  %v3143_v19 = vadd.f32 %v6594_v21, %v3050_v17  ;;  %v4875_v17 = vld [vmem:[%s7000_s5 + $0xc8] sm:$0xff] }
 0x434   : > { %v3227_v51 = vadd.f32 %v6658_v54, %v3143_v19  ;;  %v4891_v19 = vld [vmem:[%s7000_s5 + $0x130] sm:$0xff] }
 0x437   : > { %v6688_v9 = vpop.f32.mrf.mxu2 }
 0x438   : > { %v6690_v53 = vpop.f32.mrf.mxu3  ;;  %v3218_v55 = vpop.f32.mrf.mxu1 }
 0x439   : > { %v3230_v52 = vadd.f32 %v3218_v55, %v6626_v44  ;;  %v4855_v44 = vld [vmem:[%s7000_s5 + $0x48] sm:$0xff] }
 0x43a   : > { %3778 = vmatpush.msra.mxu3 %v4855_v44 }
 0x43c   : > { %3779 = vmatpush.msra.mxu3 %v4854_v24 }
 0x43e   : > { %3863 = vmatpush.msrb.mxu3 %v4872_v2 }
 0x43f   : > { %v3302_v42 = vpop.f32.mrf.mxu2 }
 0x440   : > { %v3314_v1 = vadd.f32 %v3302_v42, %v3230_v52  ;;  %v3386_v6 = vpop.f32.mrf.mxu3  ;;  %v6693_v28 = vpop.f32.mrf.mxu1  ;;  %3864 = vmatpush.msrb.mxu3 %v4871_v32 }
 0x442   : > { %v6695_v10 = vadd.f32 %v3386_v6, %v3314_v1  ;;  %3865 = vmatpush.msrb.mxu3 %v4870_v34  ;;  %v3311_v1 = vadd.f32 %v6668_v48, %v3227_v51  ;;  %v4890_v51 = vld [vmem:[%s7000_s5 + $0x128] sm:$0xff] }
 0x444   : > { %3866 = vmatpush.msrb.mxu3 %v4869_v36  ;;  %v3395_v58 = vadd.f32 %v6672_v22, %v3311_v1  ;;  %v3145_v22 = vadd.f32 %v6618_v39, %v3056_v25  ;;  %v4907_v25 = vld [vmem:[%s7000_s5 + $0x198] sm:$0xff] }
 0x446   : > { %v3229_v39 = vadd.f32 %v6678_v41, %v3145_v22  ;;  %v4886_v41 = vld [vmem:[%s7000_s5 + $0x110] sm:$0xff]  ;;  %v4894_v22 = vld [vmem:[%s7000_s5 + $0x140] sm:$0xff] }
 0x447   : > { %v6706_v13 = vpop.f32.mrf.mxu2 }
 0x448   : > { %v6710_v45 = vpop.f32.mrf.mxu3  ;;  %v3453_v50 = vpop.f32.mrf.mxu1 }
 0x449   : > { %v3477_v35 = vadd.f32 %v3453_v50, %v6649_v30  ;;  %v4859_v30 = vld [vmem:[%s7000_s5 + $0x60] sm:$0xff] }
 0x44a   : > { %3808 = vmatpush.msra.mxu1 %v4859_v30  ;;  %v4876_v30 = vld [vmem:[%s7000_s5 + $0xd0] sm:$0xff] }
 0x44f   : > { %v3537_v0 = vpop.f32.mrf.mxu2 }
 0x450   : > { %v3621_v20 = vpop.f32.mrf.mxu3  ;;  %v3456_v33 = vpop.f32.mrf.mxu1  ;;  %v3561_v5 = vadd.f32 %v3537_v0, %v3477_v35  ;;  %v4882_v35 = vld [vmem:[%s7000_s5 + $0xf8] sm:$0xff] }
 0x451   : > { %v3478_v47 = vadd.f32 %v3456_v33, %v3393_v7  ;;  %v4877_v33 = vld [vmem:[%s7000_s5 + $0xd8] sm:$0xff] }
 0x452   : > { %v3645_v12 = vadd.f32 %v3621_v20, %v3561_v5  ;;  %v4887_v5 = vld [vmem:[%s7000_s5 + $0x118] sm:$0xff] }
 0x454   : > { %v3657_v3 = vadd.f32 %v6743_v61, %v3645_v12 }
 0x456   : > { %v3665_v55 = vmax.f32 %v3657_v3, 0.0 }
 0x457   : > { %v3540_v60 = vpop.f32.mrf.mxu2 }
 0x458   : > { %v3562_v63 = vadd.f32 %v3540_v60, %v3478_v47  ;;  %v3624_v56 = vpop.f32.mrf.mxu3  ;;  %v3459_v43 = vpop.f32.mrf.mxu1  ;;  %v3313_v47 = vadd.f32 %v6688_v9, %v3229_v39  ;;  %v4885_v9 = vld [vmem:[%s7000_s5 + $0x108] sm:$0xff] }
 0x459   : > { %v3479_v21 = vadd.f32 %v3459_v43, %v6660_v57  ;;  %v4874_v43 = vld [vmem:[%s7000_s5 + $0xc0] sm:$0xff] }
 0x45a   : > { %v3646_v18 = vadd.f32 %v3624_v56, %v3562_v63  ;;  %v4879_v63 = vld [vmem:[%s7000_s5 + $0xe0] sm:$0xff]  ;;  %v3397_v32 = vadd.f32 %v6690_v53, %v3313_v47 }
 0x45b   : > { %v4909_v47 = vld [vmem:[%s7000_s5 + $0x1a0] sm:$0xff] }
 0x45c   : > { %v3658_v37 = vadd.f32 %v6743_v61, %v3646_v18  ;;  %v4892_v18 = vld [vmem:[%s7000_s5 + $0x138] sm:$0xff] }
 0x45e   : > { %v3666_v52 = vmax.f32 %v3658_v37, 0.0 }
 0x45f   : > { %v3543_v42 = vpop.f32.mrf.mxu2 }
 0x460   : > { %v3673_v6 = vmax.f32 %v3665_v55, %v3666_v52  ;;  %v3627_v31 = vpop.f32.mrf.mxu3  ;;  %v3462_v49 = vpop.f32.mrf.mxu1  ;;  %v3563_v44 = vadd.f32 %v3543_v42, %v3479_v21 }
 0x461   : > { %v3480_v26 = vadd.f32 %v3462_v49, %v3395_v58  ;;  %v4889_v49 = vld [vmem:[%s7000_s5 + $0x120] sm:$0xff] }
 0x462   : > { %3678 = vst.msk [vmem:[#allocation4] sm:$0xff] %vm3677_vm3, %v3673_v6  ;;  %v3647_v50 = vadd.f32 %v3627_v31, %v3563_v44  ;;  %v4897_v31 = vld [vmem:[%s7000_s5 + $0x158] sm:$0xff] }
 0x464   : > { %v3659_v57 = vadd.f32 %v6743_v61, %v3647_v50 }
 0x466   : > { %v3667_v40 = vmax.f32 %v3659_v57, 0.0 }
 0x467   : > { %v3546_v54 = vpop.f32.mrf.mxu2 }
 0x468   : > { %v3564_v8 = vadd.f32 %v3546_v54, %v3480_v26  ;;  %v3630_v24 = vpop.f32.mrf.mxu3  ;;  %v3465_v38 = vpop.f32.mrf.mxu1  ;;  %v4896_v26 = vld [vmem:[%s7000_s5 + $0x150] sm:$0xff]  ;;  %v4902_v54 = vld [vmem:[%s7000_s5 + $0x178] sm:$0xff] }
 0x469   : > { %v3682_v48 = vld [vmem:[#allocation4] ss:$2 sm:$0xf]  ;;  %v3690_v0 = vld [vmem:[#allocation4 + $0x1] ss:$2 sm:$0xf]  ;;  %v3481_v46 = vadd.f32 %v3465_v38, %v6680_v11 }
 0x46a   : > { %v3648_v16 = vadd.f32 %v3630_v24, %v3564_v8  ;;  %v3697_v27 = vmax.f32 %v3682_v48, %v3690_v0  ;;  %v3231_v8 = vadd.f32 %v6693_v28, %v6646_v23  ;;  %v4895_v48 = vld [vmem:[%s7000_s5 + $0x148] sm:$0xff]  ;;  %v4901_v0 = vld [vmem:[%s7000_s5 + $0x170] sm:$0xff] }
 0x46b   : > { %v4906_v23 = vld [vmem:[%s7000_s5 + $0x190] sm:$0xff] }
 0x46c   : > { %v3660_v20 = vadd.f32 %v6743_v61, %v3648_v16  ;;  %4853 = vmatmul.msk.f32.vlgmr.msrb.gmra.mxu2 %vm3677_vm3, %v3697_v27  ;;  %v3711_v14 = vrot.slane %v3697_v27, 1  ;;  %v3761_v29 = vrot.slane %v3697_v27, 2  ;;  %v3790_v3 = vrot.slane %v3697_v27, 3 }
 0x46d   : > { %3921 = vmatpush.msrb.mxu2 %v4882_v35  ;;  %v3315_v28 = vadd.f32 %v6706_v13, %v3231_v8 }
 0x46e   : > { %v3668_v7 = vmax.f32 %v3660_v20, 0.0  ;;  %4852 = vmatmul.msk.f32.vlgmr.msrb.gmra.mxu1 %vm3677_vm3, %v3711_v14  ;;  %4858 = vmatmul.msk.f32.vlgmr.msra.gmra.mxu3 %vm3677_vm3, %v3761_v29  ;;  %v4900_v20 = vld [vmem:[%s7000_s5 + $0x168] sm:$0xff]  ;;  %v4899_v29 = vld [vmem:[%s7000_s5 + $0x160] sm:$0xff] }
 0x46f   : > { %v3549_v12 = vpop.f32.mrf.mxu2  ;;  %3892 = vmatpush.msrb.mxu1 %v4877_v33  ;;  %3922 = vmatpush.msrb.mxu2 %v4881_v62  ;;  %v4905_v14 = vld [vmem:[%s7000_s5 + $0x188] sm:$0xff]  ;;  %v4912_v33 = vld [vmem:[%s7000_s5 + $0x1b8] sm:$0xff]  ;;  %v3399_v39 = vadd.f32 %v6710_v45, %v3315_v28 }
 0x470   : > { %v3674_v60 = vmax.f32 %v3667_v40, %v3668_v7  ;;  %v3633_v2 = vpop.f32.mrf.mxu3  ;;  %3950 = vmatpush.msra.mxu3 %v4887_v5  ;;  %v3468_v56 = vpop.f32.mrf.mxu1  ;;  %v3565_v11 = vadd.f32 %v3549_v12, %v3481_v46  ;;  %v4904_v5 = vld [vmem:[%s7000_s5 + $0x180] sm:$0xff]  ;;  %v4911_v40 = vld [vmem:[%s7000_s5 + $0x1b0] sm:$0xff]  ;;  %v4166_v28 = vld [vmem:[%s7002_s7 + $0x8] sm:$0xff] }
 0x471   : > { %3893 = vmatpush.msrb.mxu1 %v4876_v30  ;;  %3923 = vmatpush.msrb.mxu2 %v4880_v59  ;;  %v3482_v34 = vadd.f32 %v3468_v56, %v3397_v32  ;;  %v4910_v59 = vld [vmem:[%s7000_s5 + $0x1a8] sm:$0xff]  ;;  %v4917_v56 = vld [vmem:[%s7000_s5 + $0x1d8] sm:$0xff] }
 0x472   : > { %3679 = vst.msk [vmem:[#allocation4 + $0x8] sm:$0xff] %vm3677_vm3, %v3674_v60  ;;  %3951 = vmatpush.msra.mxu3 %v4886_v41  ;;  %v3649_v15 = vadd.f32 %v3633_v2, %v3565_v11  ;;  %v4922_v32 = vld [vmem:[%s7000_s5 + $0x1f8] sm:$0xff] }
 0x473   : > { %3894 = vmatpush.msrb.mxu1 %v4875_v17  ;;  %3924 = vmatpush.msrb.mxu2 %v4879_v63 }
 0x474   : > { %3952 = vmatpush.msra.mxu3 %v4885_v9  ;;  %v3661_v1 = vadd.f32 %v6743_v61, %v3649_v15  ;;  %v4921_v15 = vld [vmem:[%s7000_s5 + $0x1f0] sm:$0xff] }
 0x475   : > { %3895 = vmatpush.msrb.mxu1 %v4874_v43 }
 0x476   : > { %4863 = vmatmul.msk.f32.vlgmr.msra.gmra.mxu1 %vm3677_vm3, %v3790_v3  ;;  %3953 = vmatpush.msra.mxu3 %v4884_v4  ;;  %v3669_v24 = vmax.f32 %v3661_v1, 0.0  ;;  %v4916_v4 = vld [vmem:[%s7000_s5 + $0x1d0] sm:$0xff] }
 0x477   : > { %v3552_v37 = vpop.f32.mrf.mxu2  ;;  %3979 = vmatpush.msra.mxu1 %v4892_v18 }
 0x478   : > { %v3566_v36 = vadd.f32 %v3552_v37, %v3482_v34  ;;  %v3636_v53 = vpop.f32.mrf.mxu3  ;;  %v3471_v55 = vpop.f32.mrf.mxu1  ;;  %v4920_v37 = vld [vmem:[%s7000_s5 + $0x1e8] sm:$0xff] }
 0x479   : > { %v3684_v52 = vld [vmem:[#allocation4 + $0x8] ss:$2 sm:$0xf]  ;;  %v3692_v42 = vld [vmem:[#allocation4 + $0x9] ss:$2 sm:$0xf]  ;;  %3980 = vmatpush.msra.mxu1 %v4891_v19  ;;  %v3483_v27 = vadd.f32 %v3471_v55, %v6695_v10 }
 0x47a   : > { %v3650_v6 = vadd.f32 %v3636_v53, %v3566_v36  ;;  %v3698_v21 = vmax.f32 %v3684_v52, %v3692_v42  ;;  %v4914_v19 = vld [vmem:[%s7000_s5 + $0x1c0] sm:$0xff] }
 0x47b   : > { %3981 = vmatpush.msra.mxu1 %v4890_v51  ;;  %v4919_v53 = vld [vmem:[%s7000_s5 + $0x1e0] sm:$0xff] }
 0x47c   : > { %v3662_v44 = vadd.f32 %v6743_v61, %v3650_v6  ;;  %4868 = vmatmul.msk.f32.vlgmr.msra.gmra.mxu2 %vm3677_vm3, %v3698_v21  ;;  %v3848_v58 = vrot.slane %v3698_v21, 1  ;;  %v3877_v50 = vrot.slane %v3698_v21, 2  ;;  %v3906_v10 = vrot.slane %v3698_v21, 3 }
 0x47d   : > { %4008 = vmatpush.msra.mxu2 %v4897_v31  ;;  %3982 = vmatpush.msra.mxu1 %v4889_v49  ;;  %v4172_v49 = vld [vmem:[%s7002_s7 + $0x38] sm:$0xff] }
 0x47e   : > { %v3670_v38 = vmax.f32 %v3662_v44, 0.0  ;;  %4873 = vmatmul.msk.f32.vlgmr.msrb.gmra.mxu3 %vm3677_vm3, %v3848_v58  ;;  %4878 = vmatmul.msk.f32.vlgmr.msrb.gmra.mxu1 %vm3677_vm3, %v3877_v50  ;;  %v4171_v44 = vld [vmem:[%s7002_s7 + $0x30] sm:$0xff] }
 0x47f   : > { %v3555_v57 = vpop.f32.mrf.mxu2  ;;  %4009 = vmatpush.msra.mxu2 %v4896_v26  ;;  %4037 = vmatpush.msrb.mxu3 %v4902_v54 }
 0x480   : > { %v3675_v16 = vmax.f32 %v3669_v24, %v3670_v38  ;;  %v3639_v35 = vpop.f32.mrf.mxu3  ;;  %4066 = vmatpush.msrb.mxu1 %v4907_v25  ;;  %v3567_v13 = vadd.f32 %v3555_v57, %v3483_v27  ;;  %v3474_v62 = vpop.f32.mrf.mxu1  ;;  %v4170_v25 = vld [vmem:[%s7002_s7 + $0x28] sm:$0xff]  ;;  %v4169_v24 = vld [vmem:[%s7002_s7 + $0x20] sm:$0xff] }
 0x481   : > { %4010 = vmatpush.msra.mxu2 %v4895_v48  ;;  %4038 = vmatpush.msrb.mxu3 %v4901_v0  ;;  %v3484_v30 = vadd.f32 %v3474_v62, %v3399_v39  ;;  %v4168_v48 = vld [vmem:[%s7002_s7 + $0x18] sm:$0xff]  ;;  %v4165_v27 = vld [vmem:[%s7002_s7] sm:$0xff] }
 0x482   : > { %3680 = vst.msk [vmem:[#allocation4 + $0x10] sm:$0xff] %vm3677_vm3, %v3675_v16  ;;  %4067 = vmatpush.msrb.mxu1 %v4906_v23  ;;  %v3651_v7 = vadd.f32 %v3639_v35, %v3567_v13  ;;  %v4167_v23 = vld [vmem:[%s7002_s7 + $0x10] sm:$0xff] }
 0x483   : > { %4011 = vmatpush.msra.mxu2 %v4894_v22  ;;  %4039 = vmatpush.msrb.mxu3 %v4900_v20 }
 0x484   : > { %4883 = vmatmul.msk.f32.vlgmr.msrb.gmra.mxu2 %vm3677_vm3, %v3906_v10  ;;  %4068 = vmatpush.msrb.mxu1 %v4905_v14  ;;  %v3663_v2 = vadd.f32 %v6743_v61, %v3651_v7 }
 0x485   : > { %4040 = vmatpush.msrb.mxu3 %v4899_v29  ;;  %4095 = vmatpush.msrb.mxu2 %v4912_v33 }
 0x486   : > { %4069 = vmatpush.msrb.mxu1 %v4904_v5  ;;  %v3671_v3 = vmax.f32 %v3663_v2, 0.0 }
 0x487   : > { %v3558_v12 = vpop.f32.mrf.mxu2  ;;  %4096 = vmatpush.msrb.mxu2 %v4911_v40 }
 0x488   : > { %v3568_v41 = vadd.f32 %v3558_v12, %v3484_v30  ;;  %v3642_v45 = vpop.f32.mrf.mxu3 }
 0x489   : > { %v3686_v60 = vld [vmem:[#allocation4 + $0x10] ss:$2 sm:$0xf]  ;;  %v3694_v46 = vld [vmem:[#allocation4 + $0x11] ss:$2 sm:$0xf]  ;;  %4097 = vmatpush.msrb.mxu2 %v4910_v59 }
 0x48a   : > { %v3652_v17 = vadd.f32 %v3642_v45, %v3568_v41  ;;  %v3699_v63 = vmax.f32 %v3686_v60, %v3694_v46  ;;  %v4162_v60 = vld [vmem:[%s7001_s6] sm:$0x1] }
 0x48b   : > { %4098 = vmatpush.msrb.mxu2 %v4909_v47 }
 0x48c   : > { %v3664_v9 = vadd.f32 %v6743_v61, %v3652_v17  ;;  %4888 = vmatmul.msk.f32.vlgmr.msra.gmra.mxu3 %vm3677_vm3, %v3699_v63  ;;  %v3964_v11 = vrot.slane %v3699_v63, 1  ;;  %v3993_v43 = vrot.slane %v3699_v63, 2  ;;  %v4915_v61 = vld [vmem:[%s7000_s5 + $0x1c8] sm:$0xff]  ;;  %v4022_v36 = vrot.slane %v3699_v63, 3  ;;  %v4173_v63 = vld [vmem:[%s7003_s8] sm:$0x1] }
 0x48d   : > { %4124 = vmatpush.msra.mxu3 %v4917_v56 }
 0x48e   : > { %v3672_v18 = vmax.f32 %v3664_v9, 0.0  ;;  %4893 = vmatmul.msk.f32.vlgmr.msra.gmra.mxu1 %vm3677_vm3, %v3964_v11  ;;  %4898 = vmatmul.msk.f32.vlgmr.msra.gmra.mxu2 %vm3677_vm3, %v3993_v43 }
 0x48f   : > { %4125 = vmatpush.msra.mxu3 %v4916_v4  ;;  %4153 = vmatpush.msra.mxu1 %v4922_v32 }
 0x490   : > { %v3676_v34 = vmax.f32 %v3671_v3, %v3672_v18  ;;  %4186 = vmatpush.msra.mxu2 %v4172_v49 }
 0x491   : > { %4126 = vmatpush.msra.mxu3 %v4915_v61  ;;  %4154 = vmatpush.msra.mxu1 %v4921_v15 }
 0x492   : > { %3681 = vst.msk [vmem:[#allocation4 + $0x18] sm:$0xff] %vm3677_vm3, %v3676_v34  ;;  %4187 = vmatpush.msra.mxu2 %v4171_v44 }
 0x493   : > { %4127 = vmatpush.msra.mxu3 %v4914_v19  ;;  %4155 = vmatpush.msra.mxu1 %v4920_v37 }
 0x494   : > { %4903 = vmatmul.msk.f32.vlgmr.msrb.gmra.mxu3 %vm3677_vm3, %v4022_v36  ;;  %4188 = vmatpush.msra.mxu2 %v4170_v25 }
 0x495   : > { %4156 = vmatpush.msra.mxu1 %v4919_v53 }
 0x496   : > { %4189 = vmatpush.msra.mxu2 %v4169_v24 }
 0x498   : > { %4190 = vmatpush.msra.mxu2 %v4168_v48 }
 0x499   : > { %v3688_v51 = vld [vmem:[#allocation4 + $0x18] ss:$2 sm:$0xf]  ;;  %v3696_v55 = vld [vmem:[#allocation4 + $0x19] ss:$2 sm:$0xf] }
 0x49a   : > { %v3700_v52 = vmax.f32 %v3688_v51, %v3696_v55  ;;  %4191 = vmatpush.msra.mxu2 %v4167_v23 }
 0x49c   : > { %4908 = vmatmul.msk.f32.vlgmr.msrb.gmra.mxu1 %vm3677_vm3, %v3700_v52  ;;  %v4080_v42 = vrot.slane %v3700_v52, 1  ;;  %v4109_v1 = vrot.slane %v3700_v52, 2  ;;  %v4138_v6 = vrot.slane %v3700_v52, 3  ;;  %4192 = vmatpush.msra.mxu2 %v4166_v28 }
 0x49e   : > { %4913 = vmatmul.msk.f32.vlgmr.msrb.gmra.mxu2 %vm3677_vm3, %v4080_v42  ;;  %4918 = vmatmul.msk.f32.vlgmr.msra.gmra.mxu3 %vm3677_vm3, %v4109_v1 }
 0x49f   : > { %4193 = vmatpush.msra.mxu2 %v4165_v27 }
 0x4a4   : > { %4923 = vmatmul.msk.f32.vlgmr.msra.gmra.mxu1 %vm3677_vm3, %v4138_v6 }
 0x4eb   : > { %v3731_v21 = vpop.f32.mrf.mxu1 }
 0x4ef   : > { %v3753_v31 = vpop.f32.mrf.mxu2 }
 0x4f0   : > { %v3754_v58 = vadd.f32 %v3753_v31, %v3731_v21 }
 0x4f1   : > { %v3781_v50 = vpop.f32.mrf.mxu3 }
 0x4f2   : > { %v3784_v26 = vadd.f32 %v3781_v50, %v3754_v58 }
 0x4f3   : > { %v3810_v54 = vpop.f32.mrf.mxu1 }
 0x4f4   : > { %v3813_v38 = vadd.f32 %v3810_v54, %v3784_v26 }
 0x4fb   : > { %v3897_v35 = vpop.f32.mrf.mxu1 }
 0x4ff   : > { %v3839_v8 = vpop.f32.mrf.mxu2 }
 0x500   : > { %v3842_v0 = vadd.f32 %v3839_v8, %v3813_v38 }
 0x501   : > { %v3868_v57 = vpop.f32.mrf.mxu3 }
 0x502   : > { %v3871_v16 = vadd.f32 %v3868_v57, %v3842_v0 }
 0x504   : > { %v3900_v20 = vadd.f32 %v3897_v35, %v3871_v16 }
 0x507   : > { %v3926_v22 = vpop.f32.mrf.mxu2 }
 0x508   : > { %v3929_v13 = vadd.f32 %v3926_v22, %v3900_v20 }
 0x50b   : > { %v3984_v29 = vpop.f32.mrf.mxu1 }
 0x50f   : > { %v3955_v14 = vpop.f32.mrf.mxu3 }
 0x510   : > { %v3958_v10 = vadd.f32 %v3955_v14, %v3929_v13 }
 0x511   : > { %v4013_v62 = vpop.f32.mrf.mxu2 }
 0x512   : > { %v3987_v33 = vadd.f32 %v3984_v29, %v3958_v10 }
 0x514   : > { %v4016_v39 = vadd.f32 %v4013_v62, %v3987_v33 }
 0x517   : > { %v4042_v5 = vpop.f32.mrf.mxu3 }
 0x518   : > { %v4045_v7 = vadd.f32 %v4042_v5, %v4016_v39 }
 0x519   : > { %v4071_v40 = vpop.f32.mrf.mxu1 }
 0x51a   : > { %v4074_v30 = vadd.f32 %v4071_v40, %v4045_v7 }
 0x521   : > { %v4100_v59 = vpop.f32.mrf.mxu2  ;;  %v4129_v41 = vpop.f32.mrf.mxu3 }
 0x522   : > { %v4103_v12 = vadd.f32 %v4100_v59, %v4074_v30  ;;  %v4158_v47 = vpop.f32.mrf.mxu1 }
 0x524   : > { %v4132_v45 = vadd.f32 %v4129_v41, %v4103_v12 }
 0x526   : > { %v4161_v46 = vadd.f32 %v4158_v47, %v4132_v45 }
 0x528   : > { %v4163_v2 = vadd.f32 %v4162_v60, %v4161_v46 }
 0x52a   : > { %v4164_v17 = vmax.f32 %v4163_v2, 0.0 }
 0x52c   : > { %4924 = vmatmul.msk.f32.vlgmr.msra.gmra.mxu2 %vm4174_vm4, %v4164_v17 }
 0x5af   : > { %v4195_v56 = vpop.f32.mrf.mxu2 }
 0x5b0   : > { %v4196_v9 = vadd.f32 %v4195_v56, %v4173_v63 }
 0x5b2   : > { %4198 = vst [vmem:[%s324_s21] sm:$0x1] %v4196_v9 }
 0x5b3   : > { %4998 = shalt.err (!%p4995_p3)
}
 0x5b4   : > { %4929 = dma.vmem_to_hbm [thread:$0]  (%p5124_p5), %s4211_s22, 16, %s4213_s23, %s4200_s24  }
 0x5b5 PF: > { %p4935_p4 = scmp.ge.s32.totalorder %s5033_s12, 2  ;;  %s4224_s27 = sand.u32 1, %s5021_s30  }
 0x5b6   : > { %s4225_s14 = scalar_lea.sflag [#allocation6], %s4224_s27 }
 0x5b7   : > { %p4932_p7 = pnand %p4935_p4, %p5128_p6 }
 0x5b9   : > { %p4933_p8 = pneg %p4932_p7 }
 0x5bb   : > { %5016 = dma.done.wait (%p4933_p8), %s4225_s14, 16  }
 0x5bc   : > { %5018 = vsyncadd (%p4933_p8), %s4225_s14, 4294967280  ;;  %p19_p9 = scmp.ge.s32.totalorder %s5111_s15, 4   ;;  %s7197_s30 = smov %s5025_s10 }
 0x5bd   : > { %s7198_s10 = smov %s5029_s11  ;;  %s7199_s11 = smov %s5122_s18 }
 0x5be   : > { %s7200_s12 = smov %s5111_s15  ;;  %21 = sbr.rel (!%p19_p9) target bundleno = 3 (0x3), region = 148 }
 0x5c3   :  { %4230 = vsyncpa [#allocation6], 1 }
 0x5c4   :  { %4232 = vsyncpa [#allocation6 + $0x1], 1 }

</bundles_post_ra>
